<compile_context>
chip_gen: v7x
topology: tpu7x:2x2x1
jax: 0.10.0
libtpu: 0.0.40
codegen_flags: <defaults>
</compile_context>

<pallas_src>
import functools

import jax
import jax.numpy as jnp
from jax.experimental import pallas as pl
from jax.experimental.pallas import tpu as pltpu


def _round_up(x, m):
    return ((x + m - 1) // m) * m


def _model_kernel(x_ref, w1_ref, b1_ref, w2_ref, b2_ref, out_ref, acc_ref):
    # x_ref:  [Bp, tk]        flattened image features, K-tile k
    # w1_ref: [tk, Fp]        backbone weight tile (orig_model stand-in), K-tile k
    # b1_ref: [1,  Fp]
    # w2_ref: [Fp, Cp]        classify.weight^T (padded lanes)
    # b2_ref: [1,  Cp]
    # out_ref:[Bp, Cp]        lane-dense padded logits
    # acc_ref:[Bp, Fp] f32    VMEM accumulator, resident across the K grid axis
    k = pl.program_id(0)

    @pl.when(k == 0)
    def _():
        # Add b1 exactly once, as the accumulator init (not per K step).
        acc_ref[...] = jnp.broadcast_to(b1_ref[...], acc_ref.shape)

    acc_ref[...] += jnp.dot(
        x_ref[...], w1_ref[...], preferred_element_type=jnp.float32
    )

    @pl.when(k == pl.num_programs(0) - 1)
    def _():
        # classify: Linear(1000, 271) -> y = feat @ W2 + b2 (lane-padded to 384).
        out_ref[...] = (
            jnp.dot(acc_ref[...], w2_ref[...], preferred_element_type=jnp.float32)
            + b2_ref[...]
        ).astype(out_ref.dtype)


@functools.partial(jax.jit, static_argnames=("tk",))
def build_model_forward(x_nchw, w1, b1, w2, b2, *, tk=512):
    """Forward pass of build_model. x_nchw: [B, C, H, W] float32."""
    B = x_nchw.shape[0]
    D = x_nchw.shape[1] * x_nchw.shape[2] * x_nchw.shape[3]
    n_feat = w1.shape[1]  # 1000
    n_cls = w2.shape[1]   # 271

    # Padded, lane-dense shapes (glue padding done once in plain JAX, outside the kernel).
    Bp = _round_up(max(B, 8), 8)          # fill the (8,128) f32 vreg sublanes
    Fp = _round_up(n_feat, 128)           # 1000 -> 1024
    Cp = _round_up(n_cls, 128)            # 271  -> 384
    tk = min(tk, _round_up(D, 128))       # K tile, 128-aligned, capped at D
    Dp = _round_up(D, tk)                 # reduction dim padded to a multiple of tk

    x_flat = x_nchw.reshape(B, D)
    x_p = jnp.zeros((Bp, Dp), jnp.float32).at[:B, :D].set(x_flat)
    w1_p = jnp.zeros((Dp, Fp), jnp.float32).at[:D, :n_feat].set(w1)
    b1_p = jnp.zeros((1, Fp), jnp.float32).at[:, :n_feat].set(b1)
    w2_p = jnp.zeros((Fp, Cp), jnp.float32).at[:n_feat, :n_cls].set(w2)
    b2_p = jnp.zeros((1, Cp), jnp.float32).at[:, :n_cls].set(b2)

    n_k = Dp // tk

    cost = pl.CostEstimate(
        flops=2 * Bp * Dp * Fp + 2 * Bp * Fp * Cp,
        transcendentals=0,
        bytes_accessed=(Bp * Dp + Dp * Fp + Fp + Fp * Cp + Cp + Bp * Cp) * 4,
    )

    out_p = pl.pallas_call(
        _model_kernel,
        out_shape=jax.ShapeDtypeStruct((Bp, Cp), jnp.float32),
        grid=(n_k,),
        in_specs=[
            pl.BlockSpec((Bp, tk), lambda k: (0, k)),   # x: stream K tiles
            pl.BlockSpec((tk, Fp), lambda k: (k, 0)),   # w1: stream K tiles (double-buffered)
            pl.BlockSpec((1, Fp), lambda k: (0, 0)),    # b1: resident
            pl.BlockSpec((Fp, Cp), lambda k: (0, 0)),   # w2: resident
            pl.BlockSpec((1, Cp), lambda k: (0, 0)),    # b2: resident
        ],
        out_specs=pl.BlockSpec((Bp, Cp), lambda k: (0, 0)),  # resident across K
        scratch_shapes=[pltpu.VMEM((Bp, Fp), jnp.float32)],
        compiler_params=pltpu.CompilerParams(
            dimension_semantics=("arbitrary",),         # K is a reduction axis
            vmem_limit_bytes=64 * 1024 * 1024,
        ),
        cost_estimate=cost,
    )(x_p, w1_p, b1_p, w2_p, b2_p)

    # Slice the zero-padded lanes / rows back to the real logits.
    return out_p[:B, :n_cls]


def init_params(key, in_dim, feat_dim=1000, num_classes=271):
    """Deterministic parameter init (PyTorch Linear-style uniform bounds)."""
    k1, k2, k3, k4 = jax.random.split(key, 4)
    bound1 = 1.0 / jnp.sqrt(in_dim)
    w1 = jax.random.uniform(k1, (in_dim, feat_dim), jnp.float32, -bound1, bound1)
    b1 = jax.random.uniform(k2, (1, feat_dim), jnp.float32, -bound1, bound1)
    bound2 = 1.0 / jnp.sqrt(feat_dim)
    w2 = jax.random.uniform(k3, (feat_dim, num_classes), jnp.float32, -bound2, bound2)
    b2 = jax.random.uniform(k4, (1, num_classes), jnp.float32, -bound2, bound2)
    return w1, b1, w2, b2


if __name__ == "__main__":
    key = jax.random.PRNGKey(0)
    kx, kp = jax.random.split(key)

    # Small NCHW image batch consistent with an image-classification forward.
    B, C, H, W = 2, 4, 16, 16
    x = jax.random.normal(kx, (B, C, H, W), jnp.float32)

    D = C * H * W
    w1, b1, w2, b2 = init_params(kp, D)

    out = build_model_forward(x, w1, b1, w2, b2)
    out = jax.block_until_ready(out)

    # Reference check in plain JAX (same math, outside Pallas).
    ref = (x.reshape(B, D) @ w1 + b1) @ w2 + b2
    assert out.shape == (B, 271), out.shape
    assert jnp.allclose(out, ref, atol=2e-3, rtol=2e-3), "mismatch vs reference"

    print("KERNEL_OK")
</pallas_src>

<mosaic_0001>
module attributes {stable_mosaic.version = 11 : i64} {
  func.func @_model_kernel(%arg0: i32, %arg1: memref<8x512xf32, #tpu.memory_space<vmem>>, %arg2: memref<512x1024xf32, #tpu.memory_space<vmem>>, %arg3: memref<1x1024xf32, #tpu.memory_space<vmem>>, %arg4: memref<1024x384xf32, #tpu.memory_space<vmem>>, %arg5: memref<1x384xf32, #tpu.memory_space<vmem>>, %arg6: memref<8x384xf32, #tpu.memory_space<vmem>>, %arg7: memref<8x1024xf32, #tpu.memory_space<vmem>>) attributes {dimension_semantics = [#tpu.dimension_semantics<arbitrary>], iteration_bounds = array<i64: 2>, scalar_prefetch = 0 : i64, scratch_operands = 1 : i64, tpu.core_type = #tpu.core_type<tc>, window_params = [{transform_indices = @transform_0, window_bounds = array<i64: 8, 512>}, {transform_indices = @transform_1, window_bounds = array<i64: 512, 1024>}, {pipeline_mode = #tpu.pipeline_mode<synchronous>, transform_indices = @transform_2, window_bounds = array<i64: 1, 1024>}, {pipeline_mode = #tpu.pipeline_mode<synchronous>, transform_indices = @transform_3, window_bounds = array<i64: 1024, 384>}, {pipeline_mode = #tpu.pipeline_mode<synchronous>, transform_indices = @transform_4, window_bounds = array<i64: 1, 384>}, {pipeline_mode = #tpu.pipeline_mode<synchronous>, transform_indices = @transform_5, window_bounds = array<i64: 8, 384>}]} {
    %c0_i32 = arith.constant 0 : i32
    %0 = arith.cmpi eq, %arg0, %c0_i32 : i32
    %1 = arith.extui %0 : i1 to i32
    %c0_i32_0 = arith.constant 0 : i32
    %2 = arith.cmpi ne, %1, %c0_i32_0 : i32
    scf.if %2 {
      %c0_9 = arith.constant 0 : index
      %c0_10 = arith.constant 0 : index
      %12 = vector.load %arg3[%c0_9, %c0_10] : memref<1x1024xf32, #tpu.memory_space<vmem>>, vector<1x1024xf32>
      %13 = vector.shape_cast %12 : vector<1x1024xf32> to vector<1x1024xf32>
      %14 = vector.broadcast %13 : vector<1x1024xf32> to vector<8x1024xf32>
      %c0_11 = arith.constant 0 : index
      %c0_12 = arith.constant 0 : index
      %15 = vector.load %arg7[%c0_11, %c0_12] : memref<8x1024xf32, #tpu.memory_space<vmem>>, vector<8x1024xf32>
      tpu.vector_store %arg7[%c0_11, %c0_12], %14 {strides = array<i32>} : memref<8x1024xf32, #tpu.memory_space<vmem>>, vector<8x1024xf32>,
    } else {
    }
    %c0 = arith.constant 0 : index
    %c0_1 = arith.constant 0 : index
    %3 = vector.load %arg7[%c0, %c0_1] : memref<8x1024xf32, #tpu.memory_space<vmem>>, vector<8x1024xf32>
    %c0_2 = arith.constant 0 : index
    %c0_3 = arith.constant 0 : index
    %4 = vector.load %arg1[%c0_2, %c0_3] : memref<8x512xf32, #tpu.memory_space<vmem>>, vector<8x512xf32>
    %c0_4 = arith.constant 0 : index
    %c0_5 = arith.constant 0 : index
    %5 = vector.load %arg2[%c0_4, %c0_5] : memref<512x1024xf32, #tpu.memory_space<vmem>>, vector<512x1024xf32>
    %cst = arith.constant dense<0.000000e+00> : vector<8x1024xf32>
    %6 = tpu.matmul %4, %5, %cst {dimension_numbers = #tpu.dot_dimension_numbers<[1], [0], [0], [1], [0, 0, 1, 1], [], []>} : vector<8x512xf32>, vector<512x1024xf32>, vector<8x1024xf32> -> vector<8x1024xf32>
    %7 = arith.addf %3, %6 : vector<8x1024xf32>
    %c0_6 = arith.constant 0 : index
    %c0_7 = arith.constant 0 : index
    %8 = vector.load %arg7[%c0_6, %c0_7] : memref<8x1024xf32, #tpu.memory_space<vmem>>, vector<8x1024xf32>
    tpu.vector_store %arg7[%c0_6, %c0_7], %7 {strides = array<i32>} : memref<8x1024xf32, #tpu.memory_space<vmem>>, vector<8x1024xf32>,
    %c1_i32 = arith.constant 1 : i32
    %9 = arith.cmpi eq, %arg0, %c1_i32 : i32
    %10 = arith.extui %9 : i1 to i32
    %c0_i32_8 = arith.constant 0 : i32
    %11 = arith.cmpi ne, %10, %c0_i32_8 : i32
    scf.if %11 {
      %c0_9 = arith.constant 0 : index
      %c0_10 = arith.constant 0 : index
      %12 = vector.load %arg7[%c0_9, %c0_10] : memref<8x1024xf32, #tpu.memory_space<vmem>>, vector<8x1024xf32>
      %c0_11 = arith.constant 0 : index
      %c0_12 = arith.constant 0 : index
      %13 = vector.load %arg4[%c0_11, %c0_12] : memref<1024x384xf32, #tpu.memory_space<vmem>>, vector<1024x384xf32>
      %cst_13 = arith.constant dense<0.000000e+00> : vector<8x384xf32>
      %14 = tpu.matmul %12, %13, %cst_13 {dimension_numbers = #tpu.dot_dimension_numbers<[1], [0], [0], [1], [0, 0, 1, 1], [], []>} : vector<8x1024xf32>, vector<1024x384xf32>, vector<8x384xf32> -> vector<8x384xf32>
      %c0_14 = arith.constant 0 : index
      %c0_15 = arith.constant 0 : index
      %15 = vector.load %arg5[%c0_14, %c0_15] : memref<1x384xf32, #tpu.memory_space<vmem>>, vector<1x384xf32>
      %16 = vector.broadcast %15 : vector<1x384xf32> to vector<8x384xf32>
      %17 = arith.addf %14, %16 : vector<8x384xf32>
      %c0_16 = arith.constant 0 : index
      %c0_17 = arith.constant 0 : index
      %18 = vector.load %arg6[%c0_16, %c0_17] : memref<8x384xf32, #tpu.memory_space<vmem>>, vector<8x384xf32>
      tpu.vector_store %arg6[%c0_16, %c0_17], %17 {strides = array<i32>} : memref<8x384xf32, #tpu.memory_space<vmem>>, vector<8x384xf32>,
    } else {
    }
    return
  }
  func.func @transform_0(%arg0: i32) -> (i32, i32) {
    %c0_i32 = arith.constant 0 : i32
    %c0_i32_0 = arith.constant 0 : i32
    return %c0_i32, %arg0 : i32, i32
  }
  func.func @transform_1(%arg0: i32) -> (i32, i32) {
    %c0_i32 = arith.constant 0 : i32
    %c0_i32_0 = arith.constant 0 : i32
    return %arg0, %c0_i32 : i32, i32
  }
  func.func @transform_2(%arg0: i32) -> (i32, i32) {
    %c0_i32 = arith.constant 0 : i32
    %c0_i32_0 = arith.constant 0 : i32
    %c0_i32_1 = arith.constant 0 : i32
    return %c0_i32, %c0_i32_0 : i32, i32
  }
  func.func @transform_3(%arg0: i32) -> (i32, i32) {
    %c0_i32 = arith.constant 0 : i32
    %c0_i32_0 = arith.constant 0 : i32
    %c0_i32_1 = arith.constant 0 : i32
    return %c0_i32, %c0_i32_0 : i32, i32
  }
  func.func @transform_4(%arg0: i32) -> (i32, i32) {
    %c0_i32 = arith.constant 0 : i32
    %c0_i32_0 = arith.constant 0 : i32
    %c0_i32_1 = arith.constant 0 : i32
    return %c0_i32, %c0_i32_0 : i32, i32
  }
  func.func @transform_5(%arg0: i32) -> (i32, i32) {
    %c0_i32 = arith.constant 0 : i32
    %c0_i32_0 = arith.constant 0 : i32
    %c0_i32_1 = arith.constant 0 : i32
    return %c0_i32, %c0_i32_0 : i32, i32
  }
}

</mosaic_0001>

<bundles_post_ra>
// kernel: build_model_forward.1
= control target key start
LH: loop header
LB: loop body
LE: loop exit
PB: predicated region body
PF: predicated region fallthrough
CT: control target
= control target key end

     0   :  { %10 = vsyncpa [#allocation4], 0  ;;  %s4825_s0 = inlined_call_operand.hbm [shape: f32[8,1024], index: 0, kind: input, shape index: {}]   ;;  %s4826_s1 = inlined_call_operand.hbm [shape: f32[1024,1024], index: 1, kind: input, shape index: {}]   ;;  %s4827_s2 = inlined_call_operand.hbm [shape: f32[1,1024], index: 2, kind: input, shape index: {}]   ;;  %s4828_s3 = inlined_call_operand.hbm [shape: f32[1024,384], index: 3, kind: input, shape index: {}]   ;;  %s4829_s4 = inlined_call_operand.hbm [shape: f32[1,384], index: 4, kind: input, shape index: {}]   ;;  %s4830_s5 = inlined_call_operand.hbm [shape: f32[8,384], index: 5, kind: output, shape index: {}]  }
   0x1   :  { %12 = vsyncpa [#allocation4 + $0x1], 0 }
   0x2   :  { %13 = vsyncpa [#allocation7], 0 }
   0x3   :  { %15 = vsyncpa [#allocation7 + $0x1], 0 }
   0x4   :  { %16 = vsyncpa [#allocation10], 0 }
   0x5   :  { %17 = vsyncpa [#allocation5], 0  ;;  %s3990_s18 = smov 0   ;;  %s3992_s19 = smov 0  }
   0x6   :  { %s3994_s20 = smov 0   ;;  %s3996_s21 = smov 0  }
   0x7 LB: > { %s4009_s22 = sadd.s32 4294967295, %s3948_s21   ;;  %p43_p0 = scmp.ne.s32.totalorder %s3940_s19, %s3936_s18  ;;  %s3948_s21 = sphi %s3996_s21, %s4849_s21   ;;  %s3944_s20 = sphi %s3994_s20, %s4848_s20   ;;  %s3940_s19 = sphi %s3992_s19, %s4847_s19   ;;  %s3936_s18 = sphi %s3990_s18, %s4846_s18  }
   0x8   : > { %p4831_p1 = scmp.eq.s32.totalorder %s4009_s22, 0  ;;  %p2562_p2 = scmp.ge.s32.totalorder %s3948_s21, 1 }
   0x9   : > { %p164_p3 = scmp.lt.s32.totalorder %s3948_s21, 3  ;;  %s3950_s25 = smov [#allocation8]  }
   0xa   : > { %p4018_p5 = por %p4831_p1, %p43_p0  ;;  %s177_s26 = sshll.u32 %s3950_s25, 4  ;;  %s178_s26 = int_to_ptr.vmem [resolvable:$true] %s177_s26 }
   0xb   : > { %p4022_p6 = pnand %p2562_p2, %p164_p3  ;;  %s3951_s27 = smov [#allocation9]  }
   0xc   : > { %s4834_s23 = scalar_select %p4018_p5, 1, 0 }
   0xd   : > { %s4835_s24 = scalar_select %p4022_p6, 1, 0 }
   0xe   : > { %p3661_p7 = pneg %p4022_p6  ;;  %s187_s28 = sshll.u32 %s3951_s27, 4  ;;  %s4034_s28 = int_to_ptr.vmem [resolvable:$true] %s187_s28 }
   0xf   : > { %s3952_s30 = smov [#allocation11]   ;;  %s3728_s9 = scalar_lea.hbm %s4827_s2, 128 }
  0x10   : > { %p4030_p8 = pnand %p3661_p7, %p4831_p1  ;;  %s4036_s6 = sshll.u32 %s3952_s30, 4  ;;  %s202_s6 = int_to_ptr.vmem [resolvable:$true] %s4036_s6 }
  0x11   : > { %p3729_p9 = scmp.ne.s32.totalorder %s4827_s2, %s3728_s9  ;;  %p3735_p13 = scmp.lt.u32.totalorder %s3728_s9, %s4827_s2 }
  0x12   : > { %p4046_p10 = pneg %p4030_p8 }
  0x14   : > { %p3731_p11 = pnand %p4046_p10, %p3729_p9 }
  0x16   : > { %p3732_p12 = pneg %p3731_p11 }
  0x18   : > { %p3737_p0 = pnand %p3735_p13, %p3732_p12 }
  0x1a   : > { %3740 = shalt.err (!%p3737_p0)
}
  0x1b   : > { %s3741_s15 = scalar_lea.vmem %s178_s26, 128  ;;  %p3749_p4 = scmp.lt.s32.totalorder %s178_s26, %s178_s26 }
  0x1c   : > { %p3742_p2 = scmp.ne.s32.totalorder %s178_s26, %s3741_s15  ;;  %p3750_p1 = scmp.lt.s32.totalorder %s3741_s15, %s3741_s15 }
  0x1e   : > { %p3744_p3 = pnand %p3742_p2, %p4046_p10  ;;  %p3751_p5 = por %p3750_p1, %p3749_p4 }
  0x20   : > { %p3745_p7 = pneg %p3744_p3 }
  0x22   : > { %p3752_p6 = pnand %p3751_p5, %p3745_p7 }
  0x24   : > { %3755 = shalt.err (!%p3752_p6)
}
  0x25   : > { %3664 = dma.hbm_to_vmem [thread:$0]  (!%p4030_p8), %s4827_s2, 128, %s178_s26, [#allocation7]  }
  0x26   : > { %s3756_s27 = scalar_lea.hbm %s4828_s3, 49152 }
  0x27   : > { %p3757_p9 = scmp.ne.s32.totalorder %s4828_s3, %s3756_s27  ;;  %p3763_p4 = scmp.lt.u32.totalorder %s3756_s27, %s4828_s3 }
  0x29   : > { %p3759_p11 = pnand %p3757_p9, %p4046_p10 }
  0x2b   : > { %p3760_p1 = pneg %p3759_p11 }
  0x2d   : > { %p3765_p5 = pnand %p3763_p4, %p3760_p1 }
  0x2f   : > { %3768 = shalt.err (!%p3765_p5)
}
  0x30   : > { %s3769_s26 = scalar_lea.vmem %s4034_s28, 49152  ;;  %p3777_p0 = scmp.lt.s32.totalorder %s4034_s28, %s4034_s28 }
  0x31   : > { %p3770_p6 = scmp.ne.s32.totalorder %s4034_s28, %s3769_s26  ;;  %p3778_p2 = scmp.lt.s32.totalorder %s3769_s26, %s3769_s26 }
  0x33   : > { %p3772_p12 = pnand %p3770_p6, %p4046_p10  ;;  %p3779_p3 = por %p3778_p2, %p3777_p0 }
  0x35   : > { %p3773_p13 = pneg %p3772_p12 }
  0x37   : > { %p3780_p7 = pnand %p3779_p3, %p3773_p13 }
  0x39   : > { %3783 = shalt.err (!%p3780_p7)
}
  0x3a   : > { %s3953_s10 = smov 384   ;;  %s3954_s11 = smov 24  }
  0x3b   : > { %3667 = dma.hbm_to_vmem [thread:$0]  (!%p4030_p8), %s4828_s3, 49152, %s4034_s28, [#allocation10], %s3953_s10, %s3953_s10, %s3954_s11  }
  0x3c   : > { %s3784_s17 = scalar_lea.hbm %s4829_s4, 48 }
  0x3d   : > { %p3785_p9 = scmp.ne.s32.totalorder %s4829_s4, %s3784_s17  ;;  %p3791_p4 = scmp.lt.u32.totalorder %s3784_s17, %s4829_s4 }
  0x3f   : > { %p3787_p11 = pnand %p3785_p9, %p4046_p10 }
  0x41   : > { %p3788_p1 = pneg %p3787_p11 }
  0x43   : > { %p3793_p5 = pnand %p3791_p4, %p3788_p1 }
  0x45   : > { %3796 = shalt.err (!%p3793_p5)
}
  0x46   : > { %s3797_s7 = scalar_lea.vmem %s202_s6, 48  ;;  %s3804_s28 = scalar_lea.vmem %s202_s6, 64 }
  0x47   : > { %p3798_p6 = scmp.ne.s32.totalorder %s202_s6, %s3797_s7  ;;  %p3805_p0 = scmp.lt.s32.totalorder %s202_s6, %s202_s6 }
  0x48   : > { %p3806_p2 = scmp.lt.s32.totalorder %s3804_s28, %s3797_s7 }
  0x49   : > { %p3800_p12 = pnand %p3798_p6, %p4046_p10 }
  0x4a   : > { %p3807_p3 = por %p3806_p2, %p3805_p0 }
  0x4b   : > { %p3801_p13 = pneg %p3800_p12 }
  0x4d   : > { %p3808_p7 = pnand %p3807_p3, %p3801_p13 }
  0x4f   : > { %3811 = shalt.err (!%p3808_p7)
}
  0x50   : > { %3670 = dma.hbm_to_vmem [thread:$0]  (!%p4030_p8), %s4829_s4, 48, %s202_s6, [#allocation10]  }
  0x51   : > { %s4105_s12 = sadd.s32 1, %s3948_s21   ;;  %s30_s10 = sadd.s32 1, %s3944_s20 }
  0x52   : > { %s27_s26 = ssub.s32 %s3948_s21, %s4105_s12  ;;  %p37_p9 = scmp.ne.s32.totalorder %s3944_s20, %s3940_s19 }
  0x53   : > { %p28_p10 = scmp.eq.s32.totalorder %s27_s26, 0  ;;  %p38_p11 = scmp.eq.s32.totalorder %s3948_s21, 0 }
  0x54   : > { %p3681_p1 = scmp.lt.s32.totalorder %s3948_s21, 2  ;;  %s4118_s11 = sand.u32 1, %s3944_s20  }
  0x55   : > { %s4115_s29 = scalar_select %p28_p10, %s3944_s20, %s30_s10  }
  0x56   : > { %p39_p4 = por %p38_p11, %p37_p9  ;;  %s2567_s13 = sshll.u32 %s4118_s11, 5 }
  0x57   : > { %s2586_s6 = sshll.u32 %s3948_s21, 9  ;;  %s216_s17 = scalar_lea.vmem [#allocation3], %s2567_s13 }
  0x58   : > { %s4125_s16 = scalar_lea.hbm %s4825_s0, %s2586_s6  ;;  %s224_s18 = sshll.u32 %s216_s17, 4  ;;  %s4127_s18 = int_to_ptr.vmem [resolvable:$true] %s224_s18 }
  0x59   : > { %p4129_p8 = pnand %p3681_p1, %p39_p4  ;;  %s2570_s27 = sshll.u32 %s4118_s11, 12 }
  0x5a   : > { %s231_s30 = sand.u32 1, %s3948_s21   ;;  %s213_s7 = scalar_lea.sflag [#allocation4], %s4118_s11 }
  0x5b   : > { %s3812_s28 = scalar_lea.hbm %s4125_s16, 512  ;;  %p3814_p6 = pneg %p4129_p8 }
  0x5c   : > { %p3813_p5 = scmp.ne.s32.totalorder %s4125_s16, %s3812_s28  ;;  %s3817_s26 = scalar_lea.hbm %s4825_s0, 1024 }
  0x5d   : > { %p3818_p0 = scmp.lt.u32.totalorder %s4125_s16, %s4825_s0  ;;  %p3819_p2 = scmp.lt.u32.totalorder %s3817_s26, %s3812_s28 }
  0x5e   : > { %p3815_p12 = pnand %p3814_p6, %p3813_p5  ;;  %p3821_p7 = scmp.lt.u32.totalorder %s3812_s28, %s4125_s16 }
  0x5f   : > { %p3820_p3 = por %p3819_p2, %p3818_p0 }
  0x60   : > { %p3816_p13 = pneg %p3815_p12 }
  0x61   : > { %p3822_p10 = por %p3821_p7, %p3820_p3 }
  0x63   : > { %p3823_p9 = pnand %p3822_p10, %p3816_p13 }
  0x65   : > { %3826 = shalt.err (!%p3823_p9)
}
  0x66   : > { %s3827_s6 = scalar_lea.vmem %s4127_s18, 512  ;;  %s3955_s14 = smov [#allocation3]  }
  0x67   : > { %p3828_p11 = scmp.ne.s32.totalorder %s4127_s18, %s3827_s6  ;;  %s3832_s15 = sshll.u32 %s3955_s14, 4  ;;  %s3833_s15 = int_to_ptr.vmem [resolvable:$false] %s3832_s15 }
  0x68   : > { %s3834_s17 = scalar_lea.vmem %s3833_s15, 1024  ;;  %p3835_p5 = scmp.lt.s32.totalorder %s4127_s18, %s3833_s15 }
  0x69   : > { %p3830_p1 = pnand %p3828_p11, %p3814_p6  ;;  %p3836_p12 = scmp.lt.s32.totalorder %s3834_s17, %s3827_s6 }
  0x6b   : > { %p3831_p4 = pneg %p3830_p1  ;;  %p3837_p0 = por %p3836_p12, %p3835_p5 }
  0x6d   : > { %p3838_p2 = pnand %p3837_p0, %p3831_p4 }
  0x6f   : > { %3841 = shalt.err (!%p3838_p2)
}
  0x70   : > { %3674 = dma.hbm_to_vmem [thread:$0]  (!%p4129_p8), %s4125_s16, 512, %s4127_s18, %s213_s7  }
  0x71   : > { %s235_s28 = scalar_lea.vmem [#allocation6], %s2570_s27  ;;  %s2588_s9 = sshll.u32 %s3948_s21, 16 }
  0x72   : > { %s243_s8 = sshll.u32 %s235_s28, 4  ;;  %s4169_s13 = scalar_lea.hbm %s4826_s1, %s2588_s9  ;;  %s4163_s8 = int_to_ptr.vmem [resolvable:$true] %s243_s8 }
  0x73   : > { %s4173_s6 = scalar_lea.sflag [#allocation7], %s231_s30  ;;  %s3842_s14 = scalar_lea.hbm %s4169_s13, 65536 }
  0x74   : > { %p3843_p13 = scmp.ne.s32.totalorder %s4169_s13, %s3842_s14  ;;  %s3847_s18 = scalar_lea.hbm %s4826_s1, 131072 }
  0x75   : > { %p3848_p10 = scmp.lt.u32.totalorder %s4169_s13, %s4826_s1  ;;  %p3849_p9 = scmp.lt.u32.totalorder %s3847_s18, %s3842_s14 }
  0x76   : > { %p3845_p3 = pnand %p3843_p13, %p3814_p6  ;;  %p3851_p1 = scmp.lt.u32.totalorder %s3842_s14, %s4169_s13 }
  0x77   : > { %p3850_p11 = por %p3849_p9, %p3848_p10 }
  0x78   : > { %p3846_p7 = pneg %p3845_p3 }
  0x79   : > { %p3852_p4 = por %p3851_p1, %p3850_p11 }
  0x7b   : > { %p3853_p5 = pnand %p3852_p4, %p3846_p7 }
  0x7d   : > { %3856 = shalt.err (!%p3853_p5)
}
  0x7e   : > { %s3857_s21 = scalar_lea.vmem %s4163_s8, 65536  ;;  %s3956_s30 = smov [#allocation6]  }
  0x7f   : > { %p3858_p12 = scmp.ne.s32.totalorder %s4163_s8, %s3857_s21  ;;  %s3862_s15 = sshll.u32 %s3956_s30, 4  ;;  %s3863_s15 = int_to_ptr.vmem [resolvable:$false] %s3862_s15 }
  0x80   : > { %s3864_s17 = scalar_lea.vmem %s3863_s15, 131072  ;;  %p3865_p13 = scmp.lt.s32.totalorder %s4163_s8, %s3863_s15 }
  0x81   : > { %p3860_p0 = pnand %p3858_p12, %p3814_p6  ;;  %p3866_p3 = scmp.lt.s32.totalorder %s3864_s17, %s3857_s21 }
  0x83   : > { %p3861_p2 = pneg %p3860_p0  ;;  %p3867_p10 = por %p3866_p3, %p3865_p13 }
  0x85   : > { %p3868_p9 = pnand %p3867_p10, %p3861_p2 }
  0x87   : > { %3871 = shalt.err (!%p3868_p9)
}
  0x88   : > { %s3957_s28 = smov 1024   ;;  %s3958_s9 = smov 64  }
  0x89   : > { %3677 = dma.hbm_to_vmem [thread:$0]  (!%p4129_p8), %s4169_s13, 65536, %s4163_s8, %s4173_s6, %s3957_s28, %s3957_s28, %s3958_s9  }
  0x8a   : > { %p4839_p6 = scmp.ne.s32.totalorder %s4835_s24, 0 }
  0x8b   : > { %s257_s26 = sand.u32 (!%p4839_p6), 1, %s3940_s19   ;;  %p4840_p7 = scmp.ne.s32.totalorder (!%p4839_p6), %s4834_s23, 0 }
  0x8c   : > { %255 = sbr.rel (%p4839_p6) target bundleno = 1064 (0x428), region = 40  ;;  %s2575_s10 = sshll.u32 (!%p4839_p6), %s257_s26, 5 }
  0x8d   : > { %s258_s14 = scalar_lea.sflag (!%p4839_p6), [#allocation4], %s257_s26  ;;  %s4202_s11 = scalar_lea.vmem (!%p4839_p6), [#allocation3], %s2575_s10 }
  0x93   : > { %3915 = dma.done.wait (%p4840_p7), %s258_s14, 512  }
  0x94   : > { %3917 = vsyncadd (%p4840_p7), %s258_s14, 4294966784  ;;  %s266_s16 = sand.u32 1, %s4009_s22   ;;  %s2576_s25 = sshll.u32 %s257_s26, 12 }
  0x95   : > { %s267_s8 = scalar_lea.sflag [#allocation7], %s266_s16  ;;  %s4209_s13 = scalar_lea.vmem [#allocation6], %s2576_s25 }
  0x96   : > { %3919 = dma.done.wait (%p4840_p7), %s267_s8, 65536  }
  0x97   : > { %3921 = vsyncadd (%p4840_p7), %s267_s8, 4294901760  ;;  %p4841_p8 = scmp.eq.s32.totalorder %s4009_s22, 0 }
  0x99   : > { %3923 = dma.done.wait (%p4841_p8), [#allocation7], 128   ;;  %p4842_p11 = pmov %p4841_p8 }
  0x9a   : > { %p4843_p1 = pmov %p4841_p8 }
  0x9b   : > { %3925 = vsyncadd (%p4842_p11), [#allocation7], 4294967168 }
  0x9c   : > { %3927 = dma.done.wait (%p4843_p1), [#allocation10], 49200   ;;  %p4844_p4 = pmov %p4843_p1 }
  0x9d   : > { %p4845_p5 = scmp.ne.s32.totalorder %s4009_s22, 0 }
  0x9e   : > { %3929 = vsyncadd (%p4844_p4), [#allocation10], 4294918096  ;;  %v317_v0 = vlaneseq (!%p4845_p5)  ;;  %v315_v2 = vld [vmem:[#allocation8] sm:$0xff] (!%p4845_p5) }
  0x9f   : > { %314 = sbr.rel (%p4845_p5) target bundleno = 170 (0xaa), region = 64 }
  0xa0   : > { %v318_v1 = vshrl.u32 (!%p4845_p5), %v317_v0, 7 }
  0xa2   : > { %v319_v3 = vsub.s32 (!%p4845_p5), 0, %v318_v1  ;;  %v323_v4 = vsub.s32 (!%p4845_p5), 1, %v318_v1  ;;  %v327_v5 = vsub.s32 (!%p4845_p5), 2, %v318_v1  ;;  %v331_v6 = vsub.s32 (!%p4845_p5), 3, %v318_v1 }
  0xa3   : > { %v335_v7 = vsub.s32 (!%p4845_p5), 4, %v318_v1  ;;  %v339_v8 = vsub.s32 (!%p4845_p5), 5, %v318_v1  ;;  %v343_v9 = vsub.s32 (!%p4845_p5), 6, %v318_v1  ;;  %v347_v10 = vsub.s32 (!%p4845_p5), 7, %v318_v1 }
  0xa4   : > { %v320_v11 = vrot.slane (!%p4845_p5), %v315_v2, %v319_v3  ;;  %v324_v12 = vrot.slane (!%p4845_p5), %v315_v2, %v323_v4  ;;  %v328_v13 = vrot.slane (!%p4845_p5), %v315_v2, %v327_v5  ;;  %v332_v14 = vrot.slane (!%p4845_p5), %v315_v2, %v331_v6 }
  0xa5   : > { %v336_v15 = vrot.slane (!%p4845_p5), %v315_v2, %v335_v7  ;;  %v340_v16 = vrot.slane (!%p4845_p5), %v315_v2, %v339_v8  ;;  %v344_v17 = vrot.slane (!%p4845_p5), %v315_v2, %v343_v9  ;;  %v348_v18 = vrot.slane (!%p4845_p5), %v315_v2, %v347_v10 }
  0xa6   : > { %357 = vst [vmem:[#allocation2] sm:$0xff] %v320_v11  ;;  %358 = vst [vmem:[#allocation2 + $0x8] sm:$0xff] %v324_v12 }
  0xa7   : > { %359 = vst [vmem:[#allocation2 + $0x10] sm:$0xff] %v328_v13  ;;  %360 = vst [vmem:[#allocation2 + $0x18] sm:$0xff] %v332_v14 }
  0xa8   : > { %361 = vst [vmem:[#allocation2 + $0x20] sm:$0xff] %v336_v15  ;;  %362 = vst [vmem:[#allocation2 + $0x28] sm:$0xff] %v340_v16 }
  0xa9   : > { %363 = vst [vmem:[#allocation2 + $0x30] sm:$0xff] %v344_v17  ;;  %364 = vst [vmem:[#allocation2 + $0x38] sm:$0xff] %v348_v18 }
  0xaa PF: > { %v378_v19 = vld [vmem:[%s4209_s13 + $0x8] sm:$0xff]  ;;  %v380_v21 = vld [vmem:[%s4209_s13 + $0x18] sm:$0xff]  ;;  %v377_v24 = vld [vmem:[%s4209_s13] sm:$0xff]  ;;  %p2581_p12 = scmp.ne.s32.totalorder %s4009_s22, 1 }
  0xab   : > { %v386_v20 = vld [vmem:[%s4209_s13 + $0x48] sm:$0xff]  ;;  %v388_v23 = vld [vmem:[%s4209_s13 + $0x58] sm:$0xff]  ;;  %v385_v25 = vld [vmem:[%s4209_s13 + $0x40] sm:$0xff] }
  0xac   : > { %v2729_v22 = vpack.c.bf16 %v386_v20, %v378_v19  ;;  %v2857_v26 = vpack.c.bf16 %v388_v23, %v380_v21  ;;  %v2731_v27 = vpack.c.bf16 %v385_v25, %v377_v24  ;;  %v379_v28 = vld [vmem:[%s4209_s13 + $0x10] sm:$0xff]  ;;  %v394_v30 = vld [vmem:[%s4209_s13 + $0x88] sm:$0xff]  ;;  %v396_v33 = vld [vmem:[%s4209_s13 + $0x98] sm:$0xff] }
  0xad   : > { %v387_v29 = vld [vmem:[%s4209_s13 + $0x50] sm:$0xff]  ;;  %v402_v32 = vld [vmem:[%s4209_s13 + $0xc8] sm:$0xff]  ;;  %v404_v34 = vld [vmem:[%s4209_s13 + $0xd8] sm:$0xff] }
  0xae   : > { %2730 = vmatprep.subr.bf16.mxu0 %v2729_v22  ;;  %v2859_v31 = vpack.c.bf16 %v387_v29, %v379_v28  ;;  %2858 = vmatprep.subr.bf16.mxu1 %v2857_v26  ;;  %v2733_v35 = vpack.c.bf16 %v402_v32, %v394_v30  ;;  %v2861_v36 = vpack.c.bf16 %v404_v34, %v396_v33  ;;  %v393_v37 = vld [vmem:[%s4209_s13 + $0x80] sm:$0xff]  ;;  %v395_v39 = vld [vmem:[%s4209_s13 + $0x90] sm:$0xff]  ;;  %v410_v42 = vld [vmem:[%s4209_s13 + $0x108] sm:$0xff] }
  0xaf   : > { %2732 = vmatpush1.bf16.msra.mxu0 %v2731_v27  ;;  %v401_v38 = vld [vmem:[%s4209_s13 + $0xc0] sm:$0xff]  ;;  %v403_v41 = vld [vmem:[%s4209_s13 + $0xd0] sm:$0xff]  ;;  %v418_v43 = vld [vmem:[%s4209_s13 + $0x148] sm:$0xff] }
  0xb0   : > { %2860 = vmatpush1.bf16.msra.mxu1 %v2859_v31  ;;  %v2735_v40 = vpack.c.bf16 %v401_v38, %v393_v37  ;;  %2734 = vmatprep.subr.bf16.mxu0 %v2733_v35  ;;  %v2863_v44 = vpack.c.bf16 %v403_v41, %v395_v39  ;;  %v2737_v45 = vpack.c.bf16 %v418_v43, %v410_v42  ;;  %v412_v46 = vld [vmem:[%s4209_s13 + $0x118] sm:$0xff]  ;;  %v409_v48 = vld [vmem:[%s4209_s13 + $0x100] sm:$0xff]  ;;  %v411_v51 = vld [vmem:[%s4209_s13 + $0x110] sm:$0xff] }
  0xb1   : > { %2862 = vmatprep.subr.bf16.mxu1 %v2861_v36  ;;  %v420_v47 = vld [vmem:[%s4209_s13 + $0x158] sm:$0xff]  ;;  %v417_v50 = vld [vmem:[%s4209_s13 + $0x140] sm:$0xff]  ;;  %v419_v52 = vld [vmem:[%s4209_s13 + $0x150] sm:$0xff] }
  0xb2   : > { %v2865_v49 = vpack.c.bf16 %v420_v47, %v412_v46  ;;  %v2739_v53 = vpack.c.bf16 %v417_v50, %v409_v48  ;;  %v426_v54 = vld [vmem:[%s4209_s13 + $0x188] sm:$0xff]  ;;  %v428_v56 = vld [vmem:[%s4209_s13 + $0x198] sm:$0xff]  ;;  %v2867_v57 = vpack.c.bf16 %v419_v52, %v411_v51  ;;  %v425_v60 = vld [vmem:[%s4209_s13 + $0x180] sm:$0xff] }
  0xb3   : > { %2736 = vmatpush1.bf16.msra.mxu0 %v2735_v40  ;;  %v434_v55 = vld [vmem:[%s4209_s13 + $0x1c8] sm:$0xff]  ;;  %v436_v59 = vld [vmem:[%s4209_s13 + $0x1d8] sm:$0xff]  ;;  %v433_v61 = vld [vmem:[%s4209_s13 + $0x1c0] sm:$0xff] }
  0xb4   : > { %2864 = vmatpush1.bf16.msra.mxu1 %v2863_v44  ;;  %2738 = vmatprep.subr.bf16.mxu0 %v2737_v45  ;;  %v2741_v58 = vpack.c.bf16 %v434_v55, %v426_v54  ;;  %v2869_v62 = vpack.c.bf16 %v436_v59, %v428_v56  ;;  %v427_v63 = vld [vmem:[%s4209_s13 + $0x190] sm:$0xff]  ;;  %v442_v1 = vld [vmem:[%s4209_s13 + $0x208] sm:$0xff]  ;;  %v444_v3 = vld [vmem:[%s4209_s13 + $0x218] sm:$0xff]  ;;  %v2743_v5 = vpack.c.bf16 %v433_v61, %v425_v60 }
  0xb5   : > { %2866 = vmatprep.subr.bf16.mxu1 %v2865_v49  ;;  %v435_v0 = vld [vmem:[%s4209_s13 + $0x1d0] sm:$0xff]  ;;  %v450_v2 = vld [vmem:[%s4209_s13 + $0x248] sm:$0xff]  ;;  %v452_v4 = vld [vmem:[%s4209_s13 + $0x258] sm:$0xff] }
  0xb6   : > { %v2871_v6 = vpack.c.bf16 %v435_v0, %v427_v63  ;;  %v2745_v7 = vpack.c.bf16 %v450_v2, %v442_v1  ;;  %v441_v8 = vld [vmem:[%s4209_s13 + $0x200] sm:$0xff]  ;;  %v443_v10 = vld [vmem:[%s4209_s13 + $0x210] sm:$0xff]  ;;  %v2873_v11 = vpack.c.bf16 %v452_v4, %v444_v3  ;;  %v458_v13 = vld [vmem:[%s4209_s13 + $0x288] sm:$0xff] }
  0xb7   : > { %2740 = vmatpush1.bf16.msra.mxu0 %v2739_v53  ;;  %v449_v9 = vld [vmem:[%s4209_s13 + $0x240] sm:$0xff]  ;;  %v451_v12 = vld [vmem:[%s4209_s13 + $0x250] sm:$0xff]  ;;  %v466_v14 = vld [vmem:[%s4209_s13 + $0x2c8] sm:$0xff] }
  0xb8   : > { %2868 = vmatpush1.bf16.msra.mxu1 %v2867_v57  ;;  %2742 = vmatprep.subr.bf16.mxu0 %v2741_v58  ;;  %v460_v15 = vld [vmem:[%s4209_s13 + $0x298] sm:$0xff]  ;;  %v2747_v17 = vpack.c.bf16 %v449_v9, %v441_v8  ;;  %v2875_v18 = vpack.c.bf16 %v451_v12, %v443_v10  ;;  %v2749_v19 = vpack.c.bf16 %v466_v14, %v458_v13  ;;  %v457_v20 = vld [vmem:[%s4209_s13 + $0x280] sm:$0xff]  ;;  %v459_v22 = vld [vmem:[%s4209_s13 + $0x290] sm:$0xff] }
  0xb9   : > { %2870 = vmatprep.subr.bf16.mxu1 %v2869_v62  ;;  %v468_v16 = vld [vmem:[%s4209_s13 + $0x2d8] sm:$0xff]  ;;  %v465_v21 = vld [vmem:[%s4209_s13 + $0x2c0] sm:$0xff]  ;;  %v467_v24 = vld [vmem:[%s4209_s13 + $0x2d0] sm:$0xff] }
  0xba   : > { %v2877_v23 = vpack.c.bf16 %v468_v16, %v460_v15  ;;  %v474_v25 = vld [vmem:[%s4209_s13 + $0x308] sm:$0xff]  ;;  %v476_v27 = vld [vmem:[%s4209_s13 + $0x318] sm:$0xff]  ;;  %v2751_v29 = vpack.c.bf16 %v465_v21, %v457_v20  ;;  %v2879_v30 = vpack.c.bf16 %v467_v24, %v459_v22  ;;  %v473_v32 = vld [vmem:[%s4209_s13 + $0x300] sm:$0xff] }
  0xbb   : > { %2744 = vmatpush1.bf16.msra.mxu0 %v2743_v5  ;;  %v482_v26 = vld [vmem:[%s4209_s13 + $0x348] sm:$0xff]  ;;  %v484_v28 = vld [vmem:[%s4209_s13 + $0x358] sm:$0xff]  ;;  %v481_v33 = vld [vmem:[%s4209_s13 + $0x340] sm:$0xff] }
  0xbc   : > { %2872 = vmatpush1.bf16.msra.mxu1 %v2871_v6  ;;  %2746 = vmatprep.subr.bf16.mxu0 %v2745_v7  ;;  %v2753_v31 = vpack.c.bf16 %v482_v26, %v474_v25  ;;  %v475_v34 = vld [vmem:[%s4209_s13 + $0x310] sm:$0xff]  ;;  %v2881_v35 = vpack.c.bf16 %v484_v28, %v476_v27  ;;  %v490_v37 = vld [vmem:[%s4209_s13 + $0x388] sm:$0xff]  ;;  %v492_v39 = vld [vmem:[%s4209_s13 + $0x398] sm:$0xff]  ;;  %v2755_v41 = vpack.c.bf16 %v481_v33, %v473_v32 }
  0xbd   : > { %2874 = vmatprep.subr.bf16.mxu1 %v2873_v11  ;;  %v483_v36 = vld [vmem:[%s4209_s13 + $0x350] sm:$0xff]  ;;  %v498_v38 = vld [vmem:[%s4209_s13 + $0x3c8] sm:$0xff]  ;;  %v500_v40 = vld [vmem:[%s4209_s13 + $0x3d8] sm:$0xff] }
  0xbe   : > { %v2883_v42 = vpack.c.bf16 %v483_v36, %v475_v34  ;;  %v2757_v43 = vpack.c.bf16 %v498_v38, %v490_v37  ;;  %v489_v44 = vld [vmem:[%s4209_s13 + $0x380] sm:$0xff]  ;;  %v491_v46 = vld [vmem:[%s4209_s13 + $0x390] sm:$0xff]  ;;  %v2885_v47 = vpack.c.bf16 %v500_v40, %v492_v39  ;;  %v506_v49 = vld [vmem:[%s4209_s13 + $0x408] sm:$0xff] }
  0xbf   : > { %2748 = vmatpush1.bf16.msra.mxu0 %v2747_v17  ;;  %v497_v45 = vld [vmem:[%s4209_s13 + $0x3c0] sm:$0xff]  ;;  %v499_v48 = vld [vmem:[%s4209_s13 + $0x3d0] sm:$0xff]  ;;  %v514_v50 = vld [vmem:[%s4209_s13 + $0x448] sm:$0xff] }
  0xc0   : > { %2876 = vmatpush1.bf16.msra.mxu1 %v2875_v18  ;;  %2750 = vmatprep.subr.bf16.mxu0 %v2749_v19  ;;  %v508_v51 = vld [vmem:[%s4209_s13 + $0x418] sm:$0xff]  ;;  %v2759_v53 = vpack.c.bf16 %v497_v45, %v489_v44  ;;  %v2887_v54 = vpack.c.bf16 %v499_v48, %v491_v46  ;;  %v2761_v55 = vpack.c.bf16 %v514_v50, %v506_v49  ;;  %v505_v56 = vld [vmem:[%s4209_s13 + $0x400] sm:$0xff]  ;;  %v507_v58 = vld [vmem:[%s4209_s13 + $0x410] sm:$0xff] }
  0xc1   : > { %2878 = vmatprep.subr.bf16.mxu1 %v2877_v23  ;;  %v516_v52 = vld [vmem:[%s4209_s13 + $0x458] sm:$0xff]  ;;  %v513_v57 = vld [vmem:[%s4209_s13 + $0x440] sm:$0xff]  ;;  %v515_v60 = vld [vmem:[%s4209_s13 + $0x450] sm:$0xff] }
  0xc2   : > { %v2889_v59 = vpack.c.bf16 %v516_v52, %v508_v51  ;;  %v522_v61 = vld [vmem:[%s4209_s13 + $0x488] sm:$0xff]  ;;  %v524_v63 = vld [vmem:[%s4209_s13 + $0x498] sm:$0xff]  ;;  %v2763_v1 = vpack.c.bf16 %v513_v57, %v505_v56  ;;  %v2891_v2 = vpack.c.bf16 %v515_v60, %v507_v58  ;;  %v521_v4 = vld [vmem:[%s4209_s13 + $0x480] sm:$0xff] }
  0xc3   : > { %2752 = vmatpush1.bf16.msra.mxu0 %v2751_v29  ;;  %v530_v62 = vld [vmem:[%s4209_s13 + $0x4c8] sm:$0xff]  ;;  %v532_v0 = vld [vmem:[%s4209_s13 + $0x4d8] sm:$0xff]  ;;  %v529_v5 = vld [vmem:[%s4209_s13 + $0x4c0] sm:$0xff] }
  0xc4   : > { %2880 = vmatpush1.bf16.msra.mxu1 %v2879_v30  ;;  %2754 = vmatprep.subr.bf16.mxu0 %v2753_v31  ;;  %v2765_v3 = vpack.c.bf16 %v530_v62, %v522_v61  ;;  %v523_v6 = vld [vmem:[%s4209_s13 + $0x490] sm:$0xff]  ;;  %v2893_v7 = vpack.c.bf16 %v532_v0, %v524_v63  ;;  %v538_v9 = vld [vmem:[%s4209_s13 + $0x508] sm:$0xff]  ;;  %v540_v11 = vld [vmem:[%s4209_s13 + $0x518] sm:$0xff]  ;;  %v2767_v13 = vpack.c.bf16 %v529_v5, %v521_v4 }
  0xc5   : > { %2882 = vmatprep.subr.bf16.mxu1 %v2881_v35  ;;  %v531_v8 = vld [vmem:[%s4209_s13 + $0x4d0] sm:$0xff]  ;;  %v546_v10 = vld [vmem:[%s4209_s13 + $0x548] sm:$0xff]  ;;  %v548_v12 = vld [vmem:[%s4209_s13 + $0x558] sm:$0xff] }
  0xc6   : > { %v2895_v14 = vpack.c.bf16 %v531_v8, %v523_v6  ;;  %v2769_v15 = vpack.c.bf16 %v546_v10, %v538_v9  ;;  %v537_v16 = vld [vmem:[%s4209_s13 + $0x500] sm:$0xff]  ;;  %v539_v18 = vld [vmem:[%s4209_s13 + $0x510] sm:$0xff]  ;;  %v2897_v19 = vpack.c.bf16 %v548_v12, %v540_v11  ;;  %v554_v21 = vld [vmem:[%s4209_s13 + $0x588] sm:$0xff] }
  0xc7   : > { %2756 = vmatpush1.bf16.msra.mxu0 %v2755_v41  ;;  %v545_v17 = vld [vmem:[%s4209_s13 + $0x540] sm:$0xff]  ;;  %v547_v20 = vld [vmem:[%s4209_s13 + $0x550] sm:$0xff]  ;;  %v562_v22 = vld [vmem:[%s4209_s13 + $0x5c8] sm:$0xff] }
  0xc8   : > { %2884 = vmatpush1.bf16.msra.mxu1 %v2883_v42  ;;  %2758 = vmatprep.subr.bf16.mxu0 %v2757_v43  ;;  %v556_v23 = vld [vmem:[%s4209_s13 + $0x598] sm:$0xff]  ;;  %v2771_v25 = vpack.c.bf16 %v545_v17, %v537_v16  ;;  %v553_v26 = vld [vmem:[%s4209_s13 + $0x580] sm:$0xff]  ;;  %v2899_v27 = vpack.c.bf16 %v547_v20, %v539_v18  ;;  %v2773_v28 = vpack.c.bf16 %v562_v22, %v554_v21  ;;  %v555_v30 = vld [vmem:[%s4209_s13 + $0x590] sm:$0xff] }
  0xc9   : > { %2886 = vmatprep.subr.bf16.mxu1 %v2885_v47  ;;  %v564_v24 = vld [vmem:[%s4209_s13 + $0x5d8] sm:$0xff]  ;;  %v561_v29 = vld [vmem:[%s4209_s13 + $0x5c0] sm:$0xff]  ;;  %v563_v31 = vld [vmem:[%s4209_s13 + $0x5d0] sm:$0xff] }
  0xca   : > { %v2901_v32 = vpack.c.bf16 %v564_v24, %v556_v23  ;;  %v570_v33 = vld [vmem:[%s4209_s13 + $0x608] sm:$0xff]  ;;  %v572_v36 = vld [vmem:[%s4209_s13 + $0x618] sm:$0xff]  ;;  %v2775_v38 = vpack.c.bf16 %v561_v29, %v553_v26  ;;  %v2903_v39 = vpack.c.bf16 %v563_v31, %v555_v30  ;;  %v569_v41 = vld [vmem:[%s4209_s13 + $0x600] sm:$0xff] }
  0xcb   : > { %2760 = vmatpush1.bf16.msra.mxu0 %v2759_v53  ;;  %v578_v34 = vld [vmem:[%s4209_s13 + $0x648] sm:$0xff]  ;;  %v580_v37 = vld [vmem:[%s4209_s13 + $0x658] sm:$0xff]  ;;  %v577_v42 = vld [vmem:[%s4209_s13 + $0x640] sm:$0xff] }
  0xcc   : > { %2888 = vmatpush1.bf16.msra.mxu1 %v2887_v54  ;;  %2762 = vmatprep.subr.bf16.mxu0 %v2761_v55  ;;  %v4324_v35 = vld [vmem:[%s4202_s11 + $0x8] sm:$0xff]  ;;  %v2777_v40 = vpack.c.bf16 %v578_v34, %v570_v33  ;;  %v571_v43 = vld [vmem:[%s4209_s13 + $0x610] sm:$0xff]  ;;  %v2905_v44 = vpack.c.bf16 %v580_v37, %v572_v36  ;;  %v588_v48 = vld [vmem:[%s4209_s13 + $0x698] sm:$0xff]  ;;  %v2779_v50 = vpack.c.bf16 %v577_v42, %v569_v41 }
  0xcd   : > { %2890 = vmatprep.subr.bf16.mxu1 %v2889_v59  ;;  %953 = vmatprep.mubr.f32.mxu0 %v4324_v35  ;;  %v579_v45 = vld [vmem:[%s4209_s13 + $0x650] sm:$0xff]  ;;  %v586_v46 = vld [vmem:[%s4209_s13 + $0x688] sm:$0xff]  ;;  %v596_v49 = vld [vmem:[%s4209_s13 + $0x6d8] sm:$0xff] }
  0xce   : > { %1095 = vmatprep.mubr.f32.mxu1 %v4324_v35  ;;  %v594_v47 = vld [vmem:[%s4209_s13 + $0x6c8] sm:$0xff]  ;;  %v2907_v51 = vpack.c.bf16 %v579_v45, %v571_v43  ;;  %v585_v53 = vld [vmem:[%s4209_s13 + $0x680] sm:$0xff]  ;;  %v587_v55 = vld [vmem:[%s4209_s13 + $0x690] sm:$0xff]  ;;  %v2909_v56 = vpack.c.bf16 %v596_v49, %v588_v48 }
  0xcf   : > { %2764 = vmatpush1.bf16.msra.mxu0 %v2763_v1  ;;  %v2781_v52 = vpack.c.bf16 %v594_v47, %v586_v46  ;;  %v593_v54 = vld [vmem:[%s4209_s13 + $0x6c0] sm:$0xff]  ;;  %v595_v57 = vld [vmem:[%s4209_s13 + $0x6d0] sm:$0xff]  ;;  %v602_v58 = vld [vmem:[%s4209_s13 + $0x708] sm:$0xff] }
  0xd0   : > { %2892 = vmatpush1.bf16.msra.mxu1 %v2891_v2  ;;  %2766 = vmatprep.subr.bf16.mxu0 %v2765_v3  ;;  %v610_v59 = vld [vmem:[%s4209_s13 + $0x748] sm:$0xff]  ;;  %v604_v60 = vld [vmem:[%s4209_s13 + $0x718] sm:$0xff]  ;;  %v2783_v62 = vpack.c.bf16 %v593_v54, %v585_v53  ;;  %v2911_v63 = vpack.c.bf16 %v595_v57, %v587_v55  ;;  %v601_v1 = vld [vmem:[%s4209_s13 + $0x700] sm:$0xff] }
  0xd1   : > { %2894 = vmatprep.subr.bf16.mxu1 %v2893_v7  ;;  %v612_v61 = vld [vmem:[%s4209_s13 + $0x758] sm:$0xff]  ;;  %v2785_v0 = vpack.c.bf16 %v610_v59, %v602_v58  ;;  %v609_v2 = vld [vmem:[%s4209_s13 + $0x740] sm:$0xff]  ;;  %v603_v3 = vld [vmem:[%s4209_s13 + $0x710] sm:$0xff] }
  0xd2   : > { %v2913_v4 = vpack.c.bf16 %v612_v61, %v604_v60  ;;  %v611_v5 = vld [vmem:[%s4209_s13 + $0x750] sm:$0xff]  ;;  %v618_v6 = vld [vmem:[%s4209_s13 + $0x788] sm:$0xff]  ;;  %v620_v8 = vld [vmem:[%s4209_s13 + $0x798] sm:$0xff]  ;;  %v2787_v10 = vpack.c.bf16 %v609_v2, %v601_v1 }
  0xd3   : > { %2768 = vmatpush1.bf16.msra.mxu0 %v2767_v13  ;;  %v626_v7 = vld [vmem:[%s4209_s13 + $0x7c8] sm:$0xff]  ;;  %v628_v9 = vld [vmem:[%s4209_s13 + $0x7d8] sm:$0xff]  ;;  %v2915_v11 = vpack.c.bf16 %v611_v5, %v603_v3  ;;  %v617_v13 = vld [vmem:[%s4209_s13 + $0x780] sm:$0xff] }
  0xd4   : > { %2896 = vmatpush1.bf16.msra.mxu1 %v2895_v14  ;;  %2770 = vmatprep.subr.bf16.mxu0 %v2769_v15  ;;  %v2789_v12 = vpack.c.bf16 %v626_v7, %v618_v6  ;;  %v625_v14 = vld [vmem:[%s4209_s13 + $0x7c0] sm:$0xff]  ;;  %v619_v15 = vld [vmem:[%s4209_s13 + $0x790] sm:$0xff]  ;;  %v2917_v16 = vpack.c.bf16 %v628_v9, %v620_v8  ;;  %v634_v18 = vld [vmem:[%s4209_s13 + $0x808] sm:$0xff] }
  0xd5   : > { %2898 = vmatprep.subr.bf16.mxu1 %v2897_v19  ;;  %v627_v17 = vld [vmem:[%s4209_s13 + $0x7d0] sm:$0xff]  ;;  %v642_v19 = vld [vmem:[%s4209_s13 + $0x848] sm:$0xff]  ;;  %v636_v20 = vld [vmem:[%s4209_s13 + $0x818] sm:$0xff]  ;;  %v2791_v22 = vpack.c.bf16 %v625_v14, %v617_v13 }
  0xd6   : > { %v644_v21 = vld [vmem:[%s4209_s13 + $0x858] sm:$0xff]  ;;  %v2919_v23 = vpack.c.bf16 %v627_v17, %v619_v15  ;;  %v2793_v24 = vpack.c.bf16 %v642_v19, %v634_v18  ;;  %v641_v26 = vld [vmem:[%s4209_s13 + $0x840] sm:$0xff]  ;;  %v643_v29 = vld [vmem:[%s4209_s13 + $0x850] sm:$0xff] }
  0xd7   : > { %2772 = vmatpush1.bf16.msra.mxu0 %v2771_v25  ;;  %v633_v25 = vld [vmem:[%s4209_s13 + $0x800] sm:$0xff]  ;;  %v650_v30 = vld [vmem:[%s4209_s13 + $0x888] sm:$0xff]  ;;  %v660_v33 = vld [vmem:[%s4209_s13 + $0x8d8] sm:$0xff] }
  0xd8   : > { %2900 = vmatpush1.bf16.msra.mxu1 %v2899_v27  ;;  %2774 = vmatprep.subr.bf16.mxu0 %v2773_v28  ;;  %v635_v27 = vld [vmem:[%s4209_s13 + $0x810] sm:$0xff]  ;;  %v2921_v28 = vpack.c.bf16 %v644_v21, %v636_v20  ;;  %v658_v31 = vld [vmem:[%s4209_s13 + $0x8c8] sm:$0xff]  ;;  %v373_v34 = vld [vmem:[%s4202_s11] sm:$0xff]  ;;  %v2795_v36 = vpack.c.bf16 %v641_v26, %v633_v25 }
  0xd9   : > { %2902 = vmatprep.subr.bf16.mxu1 %v2901_v32  ;;  %v652_v32 = vld [vmem:[%s4209_s13 + $0x898] sm:$0xff]  ;;  %v2923_v37 = vpack.c.bf16 %v643_v29, %v635_v27  ;;  %v651_v41 = vld [vmem:[%s4209_s13 + $0x890] sm:$0xff]  ;;  %v674_v45 = vld [vmem:[%s4209_s13 + $0x948] sm:$0xff] }
  0xda   : > { %v2925_v42 = vpack.c.bf16 %v660_v33, %v652_v32  ;;  %v659_v43 = vld [vmem:[%s4209_s13 + $0x8d0] sm:$0xff]  ;;  %v668_v46 = vld [vmem:[%s4209_s13 + $0x918] sm:$0xff]  ;;  %v690_v57 = vld [vmem:[%s4209_s13 + $0x9c8] sm:$0xff] }
  0xdb   : > { %2776 = vmatpush1.bf16.msra.mxu0 %v2775_v38  ;;  %v2797_v38 = vpack.c.bf16 %v658_v31, %v650_v30  ;;  %v676_v47 = vld [vmem:[%s4209_s13 + $0x958] sm:$0xff]  ;;  %v2927_v49 = vpack.c.bf16 %v659_v43, %v651_v41  ;;  %v667_v53 = vld [vmem:[%s4209_s13 + $0x910] sm:$0xff]  ;;  %v706_v5 = vld [vmem:[%s4209_s13 + $0xa48] sm:$0xff] }
  0xdc   : > { %2904 = vmatpush1.bf16.msra.mxu1 %v2903_v39  ;;  %2778 = vmatprep.subr.bf16.mxu0 %v2777_v40  ;;  %v649_v39 = vld [vmem:[%s4209_s13 + $0x880] sm:$0xff]  ;;  %v2929_v54 = vpack.c.bf16 %v676_v47, %v668_v46  ;;  %v675_v55 = vld [vmem:[%s4209_s13 + $0x950] sm:$0xff]  ;;  %v684_v58 = vld [vmem:[%s4209_s13 + $0x998] sm:$0xff] }
  0xdd   : > { %2906 = vmatprep.subr.bf16.mxu1 %v2905_v44  ;;  %v657_v40 = vld [vmem:[%s4209_s13 + $0x8c0] sm:$0xff]  ;;  %v666_v44 = vld [vmem:[%s4209_s13 + $0x908] sm:$0xff]  ;;  %v692_v59 = vld [vmem:[%s4209_s13 + $0x9d8] sm:$0xff]  ;;  %v2931_v61 = vpack.c.bf16 %v675_v55, %v667_v53 }
  0xde   : > { %v2799_v48 = vpack.c.bf16 %v657_v40, %v649_v39  ;;  %v683_v1 = vld [vmem:[%s4209_s13 + $0x990] sm:$0xff]  ;;  %v2933_v2 = vpack.c.bf16 %v692_v59, %v684_v58  ;;  %v700_v6 = vld [vmem:[%s4209_s13 + $0xa18] sm:$0xff]  ;;  %v722_v17 = vld [vmem:[%s4209_s13 + $0xac8] sm:$0xff] }
  0xdf   : > { %2780 = vmatpush1.bf16.msra.mxu0 %v2779_v50  ;;  %v2801_v50 = vpack.c.bf16 %v674_v45, %v666_v44  ;;  %v691_v3 = vld [vmem:[%s4209_s13 + $0x9d0] sm:$0xff]  ;;  %v708_v7 = vld [vmem:[%s4209_s13 + $0xa58] sm:$0xff]  ;;  %v738_v29 = vld [vmem:[%s4209_s13 + $0xb48] sm:$0xff] }
  0xe0   : > { %2908 = vmatpush1.bf16.msra.mxu1 %v2907_v51  ;;  %2782 = vmatprep.subr.bf16.mxu0 %v2781_v52  ;;  %v665_v51 = vld [vmem:[%s4209_s13 + $0x900] sm:$0xff]  ;;  %v2935_v9 = vpack.c.bf16 %v691_v3, %v683_v1  ;;  %v699_v13 = vld [vmem:[%s4209_s13 + $0xa10] sm:$0xff]  ;;  %v2937_v14 = vpack.c.bf16 %v708_v7, %v700_v6  ;;  %v716_v18 = vld [vmem:[%s4209_s13 + $0xa98] sm:$0xff] }
  0xe1   : > { %2910 = vmatprep.subr.bf16.mxu1 %v2909_v56  ;;  %v673_v52 = vld [vmem:[%s4209_s13 + $0x940] sm:$0xff]  ;;  %v682_v56 = vld [vmem:[%s4209_s13 + $0x988] sm:$0xff]  ;;  %v707_v15 = vld [vmem:[%s4209_s13 + $0xa50] sm:$0xff] }
  0xe2   : > { %v2803_v60 = vpack.c.bf16 %v673_v52, %v665_v51  ;;  %v724_v19 = vld [vmem:[%s4209_s13 + $0xad8] sm:$0xff]  ;;  %v2939_v21 = vpack.c.bf16 %v707_v15, %v699_v13  ;;  %v715_v25 = vld [vmem:[%s4209_s13 + $0xa90] sm:$0xff]  ;;  %v729_v33 = vld [vmem:[%s4209_s13 + $0xb00] sm:$0xff] }
  0xe3   : > { %2784 = vmatpush1.bf16.msra.mxu0 %v2783_v62  ;;  %v2805_v62 = vpack.c.bf16 %v690_v57, %v682_v56  ;;  %v2941_v26 = vpack.c.bf16 %v724_v19, %v716_v18  ;;  %v723_v27 = vld [vmem:[%s4209_s13 + $0xad0] sm:$0xff]  ;;  %v732_v30 = vld [vmem:[%s4209_s13 + $0xb18] sm:$0xff]  ;;  %v746_v41 = vld [vmem:[%s4209_s13 + $0xb88] sm:$0xff] }
  0xe4   : > { %2912 = vmatpush1.bf16.msra.mxu1 %v2911_v63  ;;  %2786 = vmatprep.subr.bf16.mxu0 %v2785_v0  ;;  %v681_v63 = vld [vmem:[%s4209_s13 + $0x980] sm:$0xff]  ;;  %v740_v31 = vld [vmem:[%s4209_s13 + $0xb58] sm:$0xff]  ;;  %v739_v39 = vld [vmem:[%s4209_s13 + $0xb50] sm:$0xff] }
  0xe5   : > { %2914 = vmatprep.subr.bf16.mxu1 %v2913_v4  ;;  %v689_v0 = vld [vmem:[%s4209_s13 + $0x9c0] sm:$0xff]  ;;  %v698_v4 = vld [vmem:[%s4209_s13 + $0xa08] sm:$0xff]  ;;  %v2945_v40 = vpack.c.bf16 %v740_v31, %v732_v30  ;;  %v4418_v43 = vld [vmem:[%s4202_s11 + $0x18] sm:$0xff] }
  0xe6   : > { %v2807_v8 = vpack.c.bf16 %v689_v0, %v681_v63  ;;  %v748_v44 = vld [vmem:[%s4209_s13 + $0xb98] sm:$0xff]  ;;  %v747_v51 = vld [vmem:[%s4209_s13 + $0xb90] sm:$0xff]  ;;  %v770_v55 = vld [vmem:[%s4209_s13 + $0xc48] sm:$0xff] }
  0xe7   : > { %2788 = vmatpush1.bf16.msra.mxu0 %v2787_v10  ;;  %v2809_v10 = vpack.c.bf16 %v706_v5, %v698_v4  ;;  %v756_v45 = vld [vmem:[%s4209_s13 + $0xbd8] sm:$0xff]  ;;  %v755_v53 = vld [vmem:[%s4209_s13 + $0xbd0] sm:$0xff]  ;;  %v786_v3 = vld [vmem:[%s4209_s13 + $0xcc8] sm:$0xff] }
  0xe8   : > { %2916 = vmatpush1.bf16.msra.mxu1 %v2915_v11  ;;  %2790 = vmatprep.subr.bf16.mxu0 %v2789_v12  ;;  %v697_v11 = vld [vmem:[%s4209_s13 + $0xa00] sm:$0xff]  ;;  %v2949_v52 = vpack.c.bf16 %v756_v45, %v748_v44  ;;  %v764_v56 = vld [vmem:[%s4209_s13 + $0xc18] sm:$0xff]  ;;  %v2951_v59 = vpack.c.bf16 %v755_v53, %v747_v51  ;;  %v763_v63 = vld [vmem:[%s4209_s13 + $0xc10] sm:$0xff] }
  0xe9   : > { %2918 = vmatprep.subr.bf16.mxu1 %v2917_v16  ;;  %v705_v12 = vld [vmem:[%s4209_s13 + $0xa40] sm:$0xff]  ;;  %v714_v16 = vld [vmem:[%s4209_s13 + $0xa88] sm:$0xff]  ;;  %v772_v57 = vld [vmem:[%s4209_s13 + $0xc58] sm:$0xff] }
  0xea   : > { %v2811_v20 = vpack.c.bf16 %v705_v12, %v697_v11  ;;  %v2953_v0 = vpack.c.bf16 %v772_v57, %v764_v56  ;;  %v771_v1 = vld [vmem:[%s4209_s13 + $0xc50] sm:$0xff]  ;;  %v780_v4 = vld [vmem:[%s4209_s13 + $0xc98] sm:$0xff]  ;;  %v802_v15 = vld [vmem:[%s4209_s13 + $0xd48] sm:$0xff] }
  0xeb   : > { %2792 = vmatpush1.bf16.msra.mxu0 %v2791_v22  ;;  %v2813_v22 = vpack.c.bf16 %v722_v17, %v714_v16  ;;  %v788_v5 = vld [vmem:[%s4209_s13 + $0xcd8] sm:$0xff]  ;;  %v2955_v7 = vpack.c.bf16 %v771_v1, %v763_v63  ;;  %v779_v11 = vld [vmem:[%s4209_s13 + $0xc90] sm:$0xff]  ;;  %v850_v53 = vld [vmem:[%s4209_s13 + $0xec8] sm:$0xff] }
  0xec   : > { %2920 = vmatpush1.bf16.msra.mxu1 %v2919_v23  ;;  %2794 = vmatprep.subr.bf16.mxu0 %v2793_v24  ;;  %v713_v23 = vld [vmem:[%s4209_s13 + $0xa80] sm:$0xff]  ;;  %v2957_v12 = vpack.c.bf16 %v788_v5, %v780_v4  ;;  %v787_v13 = vld [vmem:[%s4209_s13 + $0xcd0] sm:$0xff]  ;;  %v796_v16 = vld [vmem:[%s4209_s13 + $0xd18] sm:$0xff] }
  0xed   : > { %2922 = vmatprep.subr.bf16.mxu1 %v2921_v28  ;;  %v721_v24 = vld [vmem:[%s4209_s13 + $0xac0] sm:$0xff]  ;;  %v730_v28 = vld [vmem:[%s4209_s13 + $0xb08] sm:$0xff]  ;;  %v804_v17 = vld [vmem:[%s4209_s13 + $0xd58] sm:$0xff]  ;;  %v2959_v19 = vpack.c.bf16 %v787_v13, %v779_v11 }
  0xee   : > { %954 = vmatmul.mubr.f32.vlgmr.msra.gmra.mrb[0].mxu0 %v373_v34  ;;  %v2815_v32 = vpack.c.bf16 %v721_v24, %v713_v23  ;;  %v795_v23 = vld [vmem:[%s4209_s13 + $0xd10] sm:$0xff]  ;;  %v2961_v24 = vpack.c.bf16 %v804_v17, %v796_v16  ;;  %v866_v1 = vld [vmem:[%s4209_s13 + $0xf48] sm:$0xff] }
  0xef   : > { %2796 = vmatpush1.bf16.msra.mxu0 %v2795_v36  ;;  %1096 = vmatmul.mubr.f32.vlgmr.msra.gmra.mrb[0].mxu1 %v373_v34  ;;  %v2943_v34 = vpack.c.bf16 %v723_v27, %v715_v25  ;;  %v2817_v36 = vpack.c.bf16 %v738_v29, %v730_v28  ;;  %v803_v25 = vld [vmem:[%s4209_s13 + $0xd50] sm:$0xff]  ;;  %v818_v27 = vld [vmem:[%s4209_s13 + $0xdc8] sm:$0xff]  ;;  %v812_v28 = vld [vmem:[%s4209_s13 + $0xd98] sm:$0xff] }
  0xf0   : > { %2924 = vmatpush1.bf16.msra.mxu1 %v2923_v37  ;;  %2798 = vmatprep.subr.bf16.mxu0 %v2797_v38  ;;  %v737_v37 = vld [vmem:[%s4209_s13 + $0xb40] sm:$0xff]  ;;  %v731_v38 = vld [vmem:[%s4209_s13 + $0xb10] sm:$0xff]  ;;  %v820_v29 = vld [vmem:[%s4209_s13 + $0xdd8] sm:$0xff]  ;;  %v2963_v31 = vpack.c.bf16 %v803_v25, %v795_v23 }
  0xf1   : > { %2926 = vmatprep.subr.bf16.mxu1 %v2925_v42  ;;  %v754_v42 = vld [vmem:[%s4209_s13 + $0xbc8] sm:$0xff]  ;;  %1024 = vmatprep.mubr.f32.mxu0 %v4418_v43  ;;  %v2819_v46 = vpack.c.bf16 %v737_v37, %v729_v33  ;;  %v2947_v47 = vpack.c.bf16 %v739_v39, %v731_v38  ;;  %v809_v33 = vld [vmem:[%s4209_s13 + $0xd80] sm:$0xff]  ;;  %v2965_v37 = vpack.c.bf16 %v820_v29, %v812_v28  ;;  %v819_v38 = vld [vmem:[%s4209_s13 + $0xdd0] sm:$0xff] }
  0xf2   : > { %1166 = vmatprep.mubr.f32.mxu1 %v4418_v43  ;;  %v826_v39 = vld [vmem:[%s4209_s13 + $0xe08] sm:$0xff]  ;;  %v835_v51 = vld [vmem:[%s4209_s13 + $0xe50] sm:$0xff] }
  0xf3   : > { %2800 = vmatpush1.bf16.msra.mxu0 %v2799_v48  ;;  %v2821_v48 = vpack.c.bf16 %v754_v42, %v746_v41  ;;  %v828_v41 = vld [vmem:[%s4209_s13 + $0xe18] sm:$0xff]  ;;  %v851_v63 = vld [vmem:[%s4209_s13 + $0xed0] sm:$0xff]  ;;  %v882_v13 = vld [vmem:[%s4209_s13 + $0xfc8] sm:$0xff] }
  0xf4   : > { %2928 = vmatpush1.bf16.msra.mxu1 %v2927_v49  ;;  %2802 = vmatprep.subr.bf16.mxu0 %v2801_v50  ;;  %v745_v49 = vld [vmem:[%s4209_s13 + $0xb80] sm:$0xff]  ;;  %v836_v42 = vld [vmem:[%s4209_s13 + $0xe58] sm:$0xff]  ;;  %v867_v11 = vld [vmem:[%s4209_s13 + $0xf50] sm:$0xff] }
  0xf5   : > { %2930 = vmatprep.subr.bf16.mxu1 %v2929_v54  ;;  %v753_v50 = vld [vmem:[%s4209_s13 + $0xbc0] sm:$0xff]  ;;  %v762_v54 = vld [vmem:[%s4209_s13 + $0xc08] sm:$0xff]  ;;  %v883_v23 = vld [vmem:[%s4209_s13 + $0xfd0] sm:$0xff] }
  0xf6   : > { %v2823_v58 = vpack.c.bf16 %v753_v50, %v745_v49  ;;  %v827_v49 = vld [vmem:[%s4209_s13 + $0xe10] sm:$0xff]  ;;  %v2969_v50 = vpack.c.bf16 %v836_v42, %v828_v41  ;;  %v390_v25 = vld [vmem:[%s4209_s13 + $0x68] sm:$0xff] }
  0xf7   : > { %2804 = vmatpush1.bf16.msra.mxu0 %v2803_v60  ;;  %v2825_v60 = vpack.c.bf16 %v770_v55, %v762_v54  ;;  %v844_v54 = vld [vmem:[%s4209_s13 + $0xe98] sm:$0xff]  ;;  %v2971_v57 = vpack.c.bf16 %v835_v51, %v827_v49  ;;  %v4505_v41 = vld [vmem:[%s4202_s11 + $0x10] sm:$0xff]  ;;  %v414_v51 = vld [vmem:[%s4209_s13 + $0x128] sm:$0xff] }
  0xf8   : > { %2932 = vmatpush1.bf16.msra.mxu1 %v2931_v61  ;;  %2806 = vmatprep.subr.bf16.mxu0 %v2805_v62  ;;  %v761_v61 = vld [vmem:[%s4209_s13 + $0xc00] sm:$0xff]  ;;  %v852_v55 = vld [vmem:[%s4209_s13 + $0xed8] sm:$0xff] }
  0xf9   : > { %2934 = vmatprep.subr.bf16.mxu1 %v2933_v2  ;;  %v769_v62 = vld [vmem:[%s4209_s13 + $0xc40] sm:$0xff]  ;;  %v778_v2 = vld [vmem:[%s4209_s13 + $0xc88] sm:$0xff] }
  0xfa   : > { %v2827_v6 = vpack.c.bf16 %v769_v62, %v761_v61  ;;  %v843_v61 = vld [vmem:[%s4209_s13 + $0xe90] sm:$0xff]  ;;  %v2973_v62 = vpack.c.bf16 %v852_v55, %v844_v54  ;;  %v424_v54 = vld [vmem:[%s4209_s13 + $0x178] sm:$0xff] }
  0xfb   : > { %2808 = vmatpush1.bf16.msra.mxu0 %v2807_v8  ;;  %v2829_v8 = vpack.c.bf16 %v786_v3, %v778_v2  ;;  %v860_v2 = vld [vmem:[%s4209_s13 + $0xf18] sm:$0xff]  ;;  %v2975_v5 = vpack.c.bf16 %v851_v63, %v843_v61  ;;  %v430_v63 = vld [vmem:[%s4209_s13 + $0x1a8] sm:$0xff] }
  0xfc   : > { %2936 = vmatpush1.bf16.msra.mxu1 %v2935_v9  ;;  %2810 = vmatprep.subr.bf16.mxu0 %v2809_v10  ;;  %v777_v9 = vld [vmem:[%s4209_s13 + $0xc80] sm:$0xff]  ;;  %v868_v3 = vld [vmem:[%s4209_s13 + $0xf58] sm:$0xff] }
  0xfd   : > { %2938 = vmatprep.subr.bf16.mxu1 %v2937_v14  ;;  %v785_v10 = vld [vmem:[%s4209_s13 + $0xcc0] sm:$0xff]  ;;  %v794_v14 = vld [vmem:[%s4209_s13 + $0xd08] sm:$0xff] }
  0xfe   : > { %v2831_v18 = vpack.c.bf16 %v785_v10, %v777_v9  ;;  %v859_v9 = vld [vmem:[%s4209_s13 + $0xf10] sm:$0xff]  ;;  %v2977_v10 = vpack.c.bf16 %v868_v3, %v860_v2  ;;  %v440_v2 = vld [vmem:[%s4209_s13 + $0x1f8] sm:$0xff] }
  0xff   : > { %2812 = vmatpush1.bf16.msra.mxu0 %v2811_v20  ;;  %v2833_v20 = vpack.c.bf16 %v802_v15, %v794_v14  ;;  %v876_v14 = vld [vmem:[%s4209_s13 + $0xf98] sm:$0xff]  ;;  %v2979_v17 = vpack.c.bf16 %v867_v11, %v859_v9  ;;  %v446_v11 = vld [vmem:[%s4209_s13 + $0x228] sm:$0xff] }
 0x100   : > { %2940 = vmatpush1.bf16.msra.mxu1 %v2939_v21  ;;  %2814 = vmatprep.subr.bf16.mxu0 %v2813_v22  ;;  %v793_v21 = vld [vmem:[%s4209_s13 + $0xd00] sm:$0xff]  ;;  %v884_v15 = vld [vmem:[%s4209_s13 + $0xfd8] sm:$0xff] }
 0x101   : > { %2942 = vmatprep.subr.bf16.mxu1 %v2941_v26  ;;  %v801_v22 = vld [vmem:[%s4209_s13 + $0xd40] sm:$0xff]  ;;  %v810_v26 = vld [vmem:[%s4209_s13 + $0xd88] sm:$0xff] }
 0x102   : > { %v2835_v30 = vpack.c.bf16 %v801_v22, %v793_v21  ;;  %v875_v21 = vld [vmem:[%s4209_s13 + $0xf90] sm:$0xff]  ;;  %v2981_v22 = vpack.c.bf16 %v884_v15, %v876_v14 }
 0x103   : > { %2816 = vmatpush1.bf16.msra.mxu0 %v2815_v32  ;;  %v2837_v32 = vpack.c.bf16 %v818_v27, %v810_v26  ;;  %v384_v26 = vld [vmem:[%s4209_s13 + $0x38] sm:$0xff]  ;;  %v2983_v29 = vpack.c.bf16 %v883_v23, %v875_v21  ;;  %v455_v21 = vld [vmem:[%s4209_s13 + $0x270] sm:$0xff]  ;;  %v470_v23 = vld [vmem:[%s4209_s13 + $0x2e8] sm:$0xff] }
 0x104   : > { %2944 = vmatpush1.bf16.msra.mxu1 %v2943_v34  ;;  %2818 = vmatprep.subr.bf16.mxu0 %v2817_v36  ;;  %v817_v34 = vld [vmem:[%s4209_s13 + $0xdc0] sm:$0xff]  ;;  %v811_v36 = vld [vmem:[%s4209_s13 + $0xd90] sm:$0xff]  ;;  %v392_v27 = vld [vmem:[%s4209_s13 + $0x78] sm:$0xff] }
 0x105   : > { %2946 = vmatprep.subr.bf16.mxu1 %v2945_v40  ;;  %v834_v40 = vld [vmem:[%s4209_s13 + $0xe48] sm:$0xff]  ;;  %v2839_v44 = vpack.c.bf16 %v817_v34, %v809_v33  ;;  %v2967_v45 = vpack.c.bf16 %v819_v38, %v811_v36  ;;  %v383_v33 = vld [vmem:[%s4209_s13 + $0x30] sm:$0xff]  ;;  %v3113_v34 = vpack.c.bf16 %v392_v27, %v384_v26 }
 0x106   : > { %v391_v36 = vld [vmem:[%s4209_s13 + $0x70] sm:$0xff]  ;;  %v406_v38 = vld [vmem:[%s4209_s13 + $0xe8] sm:$0xff] }
 0x107   : > { %2820 = vmatpush1.bf16.msra.mxu0 %v2819_v46  ;;  %v2841_v46 = vpack.c.bf16 %v834_v40, %v826_v39  ;;  %v400_v39 = vld [vmem:[%s4209_s13 + $0xb8] sm:$0xff] }
 0x108   : > { %2948 = vmatpush1.bf16.msra.mxu1 %v2947_v47  ;;  %2822 = vmatprep.subr.bf16.mxu0 %v2821_v48  ;;  %v825_v47 = vld [vmem:[%s4209_s13 + $0xe00] sm:$0xff]  ;;  %v408_v40 = vld [vmem:[%s4209_s13 + $0xf8] sm:$0xff] }
 0x109   : > { %2950 = vmatprep.subr.bf16.mxu1 %v2949_v52  ;;  %v833_v48 = vld [vmem:[%s4209_s13 + $0xe40] sm:$0xff]  ;;  %v842_v52 = vld [vmem:[%s4209_s13 + $0xe88] sm:$0xff]  ;;  %v3117_v49 = vpack.c.bf16 %v408_v40, %v400_v39 }
 0x10a   : > { %v2843_v56 = vpack.c.bf16 %v833_v48, %v825_v47  ;;  %v405_v47 = vld [vmem:[%s4209_s13 + $0xe0] sm:$0xff]  ;;  %v399_v48 = vld [vmem:[%s4209_s13 + $0xb0] sm:$0xff] }
 0x10b   : > { %2824 = vmatpush1.bf16.msra.mxu0 %v2823_v58  ;;  %v2845_v58 = vpack.c.bf16 %v850_v53, %v842_v52  ;;  %v422_v52 = vld [vmem:[%s4209_s13 + $0x168] sm:$0xff]  ;;  %v416_v53 = vld [vmem:[%s4209_s13 + $0x138] sm:$0xff] }
 0x10c   : > { %2952 = vmatpush1.bf16.msra.mxu1 %v2951_v59  ;;  %2826 = vmatprep.subr.bf16.mxu0 %v2825_v60  ;;  %v841_v59 = vld [vmem:[%s4209_s13 + $0xe80] sm:$0xff]  ;;  %v3121_v61 = vpack.c.bf16 %v424_v54, %v416_v53 }
 0x10d   : > { %2954 = vmatprep.subr.bf16.mxu1 %v2953_v0  ;;  %v849_v60 = vld [vmem:[%s4209_s13 + $0xec0] sm:$0xff]  ;;  %v858_v0 = vld [vmem:[%s4209_s13 + $0xf08] sm:$0xff] }
 0x10e   : > { %v2847_v4 = vpack.c.bf16 %v849_v60, %v841_v59  ;;  %v421_v59 = vld [vmem:[%s4209_s13 + $0x160] sm:$0xff]  ;;  %v415_v60 = vld [vmem:[%s4209_s13 + $0x130] sm:$0xff] }
 0x10f   : > { %2828 = vmatpush1.bf16.msra.mxu0 %v2827_v6  ;;  %v2849_v6 = vpack.c.bf16 %v866_v1, %v858_v0  ;;  %v438_v0 = vld [vmem:[%s4209_s13 + $0x1e8] sm:$0xff]  ;;  %v432_v1 = vld [vmem:[%s4209_s13 + $0x1b8] sm:$0xff] }
 0x110   : > { %2956 = vmatpush1.bf16.msra.mxu1 %v2955_v7  ;;  %2830 = vmatprep.subr.bf16.mxu0 %v2829_v8  ;;  %v857_v7 = vld [vmem:[%s4209_s13 + $0xf00] sm:$0xff]  ;;  %v3125_v9 = vpack.c.bf16 %v440_v2, %v432_v1 }
 0x111   : > { %2958 = vmatprep.subr.bf16.mxu1 %v2957_v12  ;;  %v865_v8 = vld [vmem:[%s4209_s13 + $0xf40] sm:$0xff]  ;;  %v874_v12 = vld [vmem:[%s4209_s13 + $0xf88] sm:$0xff] }
 0x112   : > { %v2851_v16 = vpack.c.bf16 %v865_v8, %v857_v7  ;;  %v437_v7 = vld [vmem:[%s4209_s13 + $0x1e0] sm:$0xff]  ;;  %v431_v8 = vld [vmem:[%s4209_s13 + $0x1b0] sm:$0xff] }
 0x113   : > { %2832 = vmatpush1.bf16.msra.mxu0 %v2831_v18  ;;  %v2853_v18 = vpack.c.bf16 %v882_v13, %v874_v12  ;;  %v448_v12 = vld [vmem:[%s4209_s13 + $0x238] sm:$0xff] }
 0x114   : > { %2960 = vmatpush1.bf16.msra.mxu1 %v2959_v19  ;;  %2834 = vmatprep.subr.bf16.mxu0 %v2833_v20  ;;  %v873_v19 = vld [vmem:[%s4209_s13 + $0xf80] sm:$0xff]  ;;  %v456_v13 = vld [vmem:[%s4209_s13 + $0x278] sm:$0xff] }
 0x115   : > { %2962 = vmatprep.subr.bf16.mxu1 %v2961_v24  ;;  %v881_v20 = vld [vmem:[%s4209_s13 + $0xfc0] sm:$0xff]  ;;  %v382_v24 = vld [vmem:[%s4209_s13 + $0x28] sm:$0xff] }
 0x116   : > { %v2855_v28 = vpack.c.bf16 %v881_v20, %v873_v19  ;;  %v447_v19 = vld [vmem:[%s4209_s13 + $0x230] sm:$0xff]  ;;  %v3129_v20 = vpack.c.bf16 %v456_v13, %v448_v12 }
 0x117   : > { %2836 = vmatpush1.bf16.msra.mxu0 %v2835_v30  ;;  %v2985_v30 = vpack.c.bf16 %v390_v25, %v382_v24  ;;  %v464_v24 = vld [vmem:[%s4209_s13 + $0x2b8] sm:$0xff]  ;;  %v3131_v27 = vpack.c.bf16 %v455_v21, %v447_v19  ;;  %v535_v19 = vld [vmem:[%s4209_s13 + $0x4f0] sm:$0xff]  ;;  %v550_v21 = vld [vmem:[%s4209_s13 + $0x568] sm:$0xff] }
 0x118   : > { %2964 = vmatpush1.bf16.msra.mxu1 %v2963_v31  ;;  %2838 = vmatprep.subr.bf16.mxu0 %v2837_v32  ;;  %v381_v31 = vld [vmem:[%s4209_s13 + $0x20] sm:$0xff]  ;;  %v472_v25 = vld [vmem:[%s4209_s13 + $0x2f8] sm:$0xff] }
 0x119   : > { %2966 = vmatprep.subr.bf16.mxu1 %v2965_v37  ;;  %v389_v32 = vld [vmem:[%s4209_s13 + $0x60] sm:$0xff]  ;;  %v398_v37 = vld [vmem:[%s4209_s13 + $0xa8] sm:$0xff] }
 0x11a   : > { %v2987_v42 = vpack.c.bf16 %v389_v32, %v381_v31  ;;  %v463_v31 = vld [vmem:[%s4209_s13 + $0x2b0] sm:$0xff]  ;;  %v3133_v32 = vpack.c.bf16 %v472_v25, %v464_v24 }
 0x11b   : > { %2840 = vmatpush1.bf16.msra.mxu0 %v2839_v44  ;;  %v3115_v44 = vpack.c.bf16 %v391_v36, %v383_v33  ;;  %v471_v33 = vld [vmem:[%s4209_s13 + $0x2f0] sm:$0xff]  ;;  %v486_v36 = vld [vmem:[%s4209_s13 + $0x368] sm:$0xff] }
 0x11c   : > { %2968 = vmatpush1.bf16.msra.mxu1 %v2967_v45  ;;  %2842 = vmatprep.subr.bf16.mxu0 %v2841_v46  ;;  %v2989_v45 = vpack.c.bf16 %v406_v38, %v398_v37  ;;  %v397_v46 = vld [vmem:[%s4209_s13 + $0xa0] sm:$0xff]  ;;  %v480_v37 = vld [vmem:[%s4209_s13 + $0x338] sm:$0xff]  ;;  %v3135_v40 = vpack.c.bf16 %v471_v33, %v463_v31  ;;  %v551_v31 = vld [vmem:[%s4209_s13 + $0x570] sm:$0xff] }
 0x11d   : > { %2970 = vmatprep.subr.bf16.mxu1 %v2969_v50  ;;  %v407_v50 = vld [vmem:[%s4209_s13 + $0xf0] sm:$0xff]  ;;  %v2991_v55 = vpack.c.bf16 %v405_v47, %v397_v46  ;;  %v488_v38 = vld [vmem:[%s4209_s13 + $0x378] sm:$0xff]  ;;  %v566_v33 = vld [vmem:[%s4209_s13 + $0x5e8] sm:$0xff] }
 0x11e   : > { %v479_v46 = vld [vmem:[%s4209_s13 + $0x330] sm:$0xff]  ;;  %v3137_v47 = vpack.c.bf16 %v488_v38, %v480_v37 }
 0x11f   : > { %2844 = vmatpush1.bf16.msra.mxu0 %v2843_v56  ;;  %v3119_v56 = vpack.c.bf16 %v407_v50, %v399_v48  ;;  %v487_v48 = vld [vmem:[%s4209_s13 + $0x370] sm:$0xff]  ;;  %v502_v50 = vld [vmem:[%s4209_s13 + $0x3e8] sm:$0xff] }
 0x120   : > { %2972 = vmatpush1.bf16.msra.mxu1 %v2971_v57  ;;  %2846 = vmatprep.subr.bf16.mxu0 %v2845_v58  ;;  %v2993_v57 = vpack.c.bf16 %v422_v52, %v414_v51  ;;  %v413_v58 = vld [vmem:[%s4209_s13 + $0x120] sm:$0xff]  ;;  %v496_v51 = vld [vmem:[%s4209_s13 + $0x3b8] sm:$0xff]  ;;  %v3139_v54 = vpack.c.bf16 %v487_v48, %v479_v46  ;;  %v567_v46 = vld [vmem:[%s4209_s13 + $0x5f0] sm:$0xff] }
 0x121   : > { %2974 = vmatprep.subr.bf16.mxu1 %v2973_v62  ;;  %v423_v62 = vld [vmem:[%s4209_s13 + $0x170] sm:$0xff]  ;;  %v2995_v3 = vpack.c.bf16 %v421_v59, %v413_v58  ;;  %v504_v52 = vld [vmem:[%s4209_s13 + $0x3f8] sm:$0xff]  ;;  %v582_v48 = vld [vmem:[%s4209_s13 + $0x668] sm:$0xff] }
 0x122   : > { %v495_v58 = vld [vmem:[%s4209_s13 + $0x3b0] sm:$0xff]  ;;  %v3141_v59 = vpack.c.bf16 %v504_v52, %v496_v51 }
 0x123   : > { %2848 = vmatpush1.bf16.msra.mxu0 %v2847_v4  ;;  %v3123_v4 = vpack.c.bf16 %v423_v62, %v415_v60  ;;  %v503_v60 = vld [vmem:[%s4209_s13 + $0x3f0] sm:$0xff]  ;;  %v518_v62 = vld [vmem:[%s4209_s13 + $0x468] sm:$0xff] }
 0x124   : > { %2976 = vmatpush1.bf16.msra.mxu1 %v2975_v5  ;;  %2850 = vmatprep.subr.bf16.mxu0 %v2849_v6  ;;  %v2997_v5 = vpack.c.bf16 %v438_v0, %v430_v63  ;;  %v429_v6 = vld [vmem:[%s4209_s13 + $0x1a0] sm:$0xff]  ;;  %v512_v63 = vld [vmem:[%s4209_s13 + $0x438] sm:$0xff]  ;;  %v3143_v2 = vpack.c.bf16 %v503_v60, %v495_v58  ;;  %v583_v58 = vld [vmem:[%s4209_s13 + $0x670] sm:$0xff] }
 0x125   : > { %2978 = vmatprep.subr.bf16.mxu1 %v2977_v10  ;;  %v439_v10 = vld [vmem:[%s4209_s13 + $0x1f0] sm:$0xff]  ;;  %v2999_v14 = vpack.c.bf16 %v437_v7, %v429_v6  ;;  %v520_v0 = vld [vmem:[%s4209_s13 + $0x478] sm:$0xff]  ;;  %v598_v60 = vld [vmem:[%s4209_s13 + $0x6e8] sm:$0xff] }
 0x126   : > { %v3127_v15 = vpack.c.bf16 %v439_v10, %v431_v8  ;;  %v511_v6 = vld [vmem:[%s4209_s13 + $0x430] sm:$0xff]  ;;  %v3145_v7 = vpack.c.bf16 %v520_v0, %v512_v63  ;;  %v534_v10 = vld [vmem:[%s4209_s13 + $0x4e8] sm:$0xff] }
 0x127   : > { %2852 = vmatpush1.bf16.msra.mxu0 %v2851_v16  ;;  %v519_v8 = vld [vmem:[%s4209_s13 + $0x470] sm:$0xff] }
 0x128   : > { %2980 = vmatpush1.bf16.msra.mxu1 %v2979_v17  ;;  %2854 = vmatprep.subr.bf16.mxu0 %v2853_v18  ;;  %v445_v17 = vld [vmem:[%s4209_s13 + $0x220] sm:$0xff]  ;;  %v3147_v13 = vpack.c.bf16 %v519_v8, %v511_v6  ;;  %v599_v6 = vld [vmem:[%s4209_s13 + $0x6f0] sm:$0xff]  ;;  %v614_v8 = vld [vmem:[%s4209_s13 + $0x768] sm:$0xff] }
 0x129   : > { %2982 = vmatprep.subr.bf16.mxu1 %v2981_v22  ;;  %v453_v18 = vld [vmem:[%s4209_s13 + $0x260] sm:$0xff]  ;;  %v462_v22 = vld [vmem:[%s4209_s13 + $0x2a8] sm:$0xff] }
 0x12a   : > { %v3003_v26 = vpack.c.bf16 %v453_v18, %v445_v17  ;;  %v527_v17 = vld [vmem:[%s4209_s13 + $0x4b0] sm:$0xff] }
 0x12b   : > { %2856 = vmatpush1.bf16.msra.mxu0 %v2855_v28  ;;  %v3005_v28 = vpack.c.bf16 %v470_v23, %v462_v22  ;;  %v544_v22 = vld [vmem:[%s4209_s13 + $0x538] sm:$0xff]  ;;  %v3151_v25 = vpack.c.bf16 %v535_v19, %v527_v17  ;;  %v615_v17 = vld [vmem:[%s4209_s13 + $0x770] sm:$0xff]  ;;  %v630_v19 = vld [vmem:[%s4209_s13 + $0x7e8] sm:$0xff] }
 0x12c   : > { %2984 = vmatpush1.bf16.msra.mxu1 %v2983_v29  ;;  %2986 = vmatprep.subr.bf16.mxu0 %v2985_v30  ;;  %v461_v29 = vld [vmem:[%s4209_s13 + $0x2a0] sm:$0xff]  ;;  %v552_v23 = vld [vmem:[%s4209_s13 + $0x578] sm:$0xff] }
 0x12d   : > { %3114 = vmatprep.subr.bf16.mxu1 %v3113_v34  ;;  %v469_v30 = vld [vmem:[%s4209_s13 + $0x2e0] sm:$0xff]  ;;  %v478_v34 = vld [vmem:[%s4209_s13 + $0x328] sm:$0xff] }
 0x12e   : > { %1025 = vmatmul.mubr.f32.vlgmr.msra.gmra.mrb[0].mxu0 %v4505_v41  ;;  %v3007_v39 = vpack.c.bf16 %v469_v30, %v461_v29  ;;  %v543_v29 = vld [vmem:[%s4209_s13 + $0x530] sm:$0xff]  ;;  %v3153_v30 = vpack.c.bf16 %v552_v23, %v544_v22 }
 0x12f   : > { %1167 = vmatmul.mubr.f32.vlgmr.msra.gmra.mrb[0].mxu1 %v4505_v41  ;;  %2988 = vmatpush1.bf16.msra.mxu0 %v2987_v42  ;;  %v3009_v42 = vpack.c.bf16 %v486_v36, %v478_v34  ;;  %v560_v34 = vld [vmem:[%s4209_s13 + $0x5b8] sm:$0xff]  ;;  %v3155_v38 = vpack.c.bf16 %v551_v31, %v543_v29  ;;  %v631_v29 = vld [vmem:[%s4209_s13 + $0x7f0] sm:$0xff]  ;;  %v646_v31 = vld [vmem:[%s4209_s13 + $0x868] sm:$0xff] }
 0x130   : > { %3116 = vmatpush1.bf16.msra.mxu1 %v3115_v44  ;;  %2990 = vmatprep.subr.bf16.mxu0 %v2989_v45  ;;  %v477_v44 = vld [vmem:[%s4209_s13 + $0x320] sm:$0xff]  ;;  %v568_v36 = vld [vmem:[%s4209_s13 + $0x5f8] sm:$0xff] }
 0x131   : > { %3118 = vmatprep.subr.bf16.mxu1 %v3117_v49  ;;  %1237 = vmatprep.mubr.f32.mxu0 %v4324_v35  ;;  %v485_v45 = vld [vmem:[%s4209_s13 + $0x360] sm:$0xff]  ;;  %v494_v49 = vld [vmem:[%s4209_s13 + $0x3a8] sm:$0xff] }
 0x132   : > { %1379 = vmatprep.mubr.f32.mxu1 %v4324_v35  ;;  %v454_v35 = vld [vmem:[%s4209_s13 + $0x268] sm:$0xff]  ;;  %v3011_v53 = vpack.c.bf16 %v485_v45, %v477_v44  ;;  %v559_v44 = vld [vmem:[%s4209_s13 + $0x5b0] sm:$0xff]  ;;  %v3157_v45 = vpack.c.bf16 %v568_v36, %v560_v34 }
 0x133   : > { %2992 = vmatpush1.bf16.msra.mxu0 %v2991_v55  ;;  %v3001_v16 = vpack.c.bf16 %v454_v35, %v446_v11  ;;  %v3013_v55 = vpack.c.bf16 %v502_v50, %v494_v49  ;;  %v528_v11 = vld [vmem:[%s4209_s13 + $0x4b8] sm:$0xff]  ;;  %v3159_v52 = vpack.c.bf16 %v567_v46, %v559_v44  ;;  %v647_v44 = vld [vmem:[%s4209_s13 + $0x870] sm:$0xff]  ;;  %v662_v46 = vld [vmem:[%s4209_s13 + $0x8e8] sm:$0xff] }
 0x134   : > { %3120 = vmatpush1.bf16.msra.mxu1 %v3119_v56  ;;  %2994 = vmatprep.subr.bf16.mxu0 %v2993_v57  ;;  %v493_v56 = vld [vmem:[%s4209_s13 + $0x3a0] sm:$0xff]  ;;  %v536_v35 = vld [vmem:[%s4209_s13 + $0x4f8] sm:$0xff] }
 0x135   : > { %3122 = vmatprep.subr.bf16.mxu1 %v3121_v61  ;;  %v501_v57 = vld [vmem:[%s4209_s13 + $0x3e0] sm:$0xff]  ;;  %v510_v61 = vld [vmem:[%s4209_s13 + $0x428] sm:$0xff]  ;;  %v3149_v18 = vpack.c.bf16 %v536_v35, %v528_v11  ;;  %v576_v49 = vld [vmem:[%s4209_s13 + $0x638] sm:$0xff] }
 0x136   : > { %v3015_v1 = vpack.c.bf16 %v501_v57, %v493_v56  ;;  %v584_v50 = vld [vmem:[%s4209_s13 + $0x678] sm:$0xff]  ;;  %v575_v56 = vld [vmem:[%s4209_s13 + $0x630] sm:$0xff] }
 0x137   : > { %2996 = vmatpush1.bf16.msra.mxu0 %v2995_v3  ;;  %v3017_v3 = vpack.c.bf16 %v518_v62, %v510_v61  ;;  %v3161_v57 = vpack.c.bf16 %v584_v50, %v576_v49  ;;  %v592_v61 = vld [vmem:[%s4209_s13 + $0x6b8] sm:$0xff]  ;;  %v3163_v0 = vpack.c.bf16 %v583_v58, %v575_v56  ;;  %v663_v56 = vld [vmem:[%s4209_s13 + $0x8f0] sm:$0xff]  ;;  %v678_v58 = vld [vmem:[%s4209_s13 + $0x968] sm:$0xff] }
 0x138   : > { %3124 = vmatpush1.bf16.msra.mxu1 %v3123_v4  ;;  %2998 = vmatprep.subr.bf16.mxu0 %v2997_v5  ;;  %v509_v4 = vld [vmem:[%s4209_s13 + $0x420] sm:$0xff]  ;;  %v600_v62 = vld [vmem:[%s4209_s13 + $0x6f8] sm:$0xff] }
 0x139   : > { %3126 = vmatprep.subr.bf16.mxu1 %v3125_v9  ;;  %v517_v5 = vld [vmem:[%s4209_s13 + $0x460] sm:$0xff]  ;;  %v526_v9 = vld [vmem:[%s4209_s13 + $0x4a8] sm:$0xff] }
 0x13a   : > { %v3019_v12 = vpack.c.bf16 %v517_v5, %v509_v4  ;;  %v591_v4 = vld [vmem:[%s4209_s13 + $0x6b0] sm:$0xff]  ;;  %v3165_v5 = vpack.c.bf16 %v600_v62, %v592_v61  ;;  %v680_v61 = vld [vmem:[%s4209_s13 + $0x978] sm:$0xff] }
 0x13b   : > { %3000 = vmatpush1.bf16.msra.mxu0 %v2999_v14  ;;  %v3021_v14 = vpack.c.bf16 %v534_v10, %v526_v9  ;;  %v608_v9 = vld [vmem:[%s4209_s13 + $0x738] sm:$0xff]  ;;  %v3167_v35 = vpack.c.bf16 %v599_v6, %v591_v4  ;;  %v686_v6 = vld [vmem:[%s4209_s13 + $0x9a8] sm:$0xff] }
 0x13c   : > { %3128 = vmatpush1.bf16.msra.mxu1 %v3127_v15  ;;  %3002 = vmatprep.subr.bf16.mxu0 %v3001_v16  ;;  %v525_v15 = vld [vmem:[%s4209_s13 + $0x4a0] sm:$0xff]  ;;  %v616_v10 = vld [vmem:[%s4209_s13 + $0x778] sm:$0xff] }
 0x13d   : > { %3130 = vmatprep.subr.bf16.mxu1 %v3129_v20  ;;  %v533_v16 = vld [vmem:[%s4209_s13 + $0x4e0] sm:$0xff]  ;;  %v542_v20 = vld [vmem:[%s4209_s13 + $0x528] sm:$0xff] }
 0x13e   : > { %v3023_v24 = vpack.c.bf16 %v533_v16, %v525_v15  ;;  %v607_v15 = vld [vmem:[%s4209_s13 + $0x730] sm:$0xff]  ;;  %v3169_v16 = vpack.c.bf16 %v616_v10, %v608_v9  ;;  %v696_v9 = vld [vmem:[%s4209_s13 + $0x9f8] sm:$0xff] }
 0x13f   : > { %3004 = vmatpush1.bf16.msra.mxu0 %v3003_v26  ;;  %v3025_v26 = vpack.c.bf16 %v550_v21, %v542_v20  ;;  %v624_v20 = vld [vmem:[%s4209_s13 + $0x7b8] sm:$0xff]  ;;  %v3171_v23 = vpack.c.bf16 %v615_v17, %v607_v15  ;;  %v702_v17 = vld [vmem:[%s4209_s13 + $0xa28] sm:$0xff] }
 0x140   : > { %3132 = vmatpush1.bf16.msra.mxu1 %v3131_v27  ;;  %3006 = vmatprep.subr.bf16.mxu0 %v3005_v28  ;;  %v541_v27 = vld [vmem:[%s4209_s13 + $0x520] sm:$0xff]  ;;  %v632_v21 = vld [vmem:[%s4209_s13 + $0x7f8] sm:$0xff] }
 0x141   : > { %3134 = vmatprep.subr.bf16.mxu1 %v3133_v32  ;;  %v549_v28 = vld [vmem:[%s4209_s13 + $0x560] sm:$0xff]  ;;  %v558_v32 = vld [vmem:[%s4209_s13 + $0x5a8] sm:$0xff] }
 0x142   : > { %v3027_v37 = vpack.c.bf16 %v549_v28, %v541_v27  ;;  %v623_v27 = vld [vmem:[%s4209_s13 + $0x7b0] sm:$0xff]  ;;  %v3173_v28 = vpack.c.bf16 %v632_v21, %v624_v20 }
 0x143   : > { %3008 = vmatpush1.bf16.msra.mxu0 %v3007_v39  ;;  %v3029_v39 = vpack.c.bf16 %v566_v33, %v558_v32  ;;  %v640_v32 = vld [vmem:[%s4209_s13 + $0x838] sm:$0xff]  ;;  %v3175_v36 = vpack.c.bf16 %v631_v29, %v623_v27  ;;  %v711_v27 = vld [vmem:[%s4209_s13 + $0xa70] sm:$0xff]  ;;  %v726_v29 = vld [vmem:[%s4209_s13 + $0xae8] sm:$0xff] }
 0x144   : > { %3136 = vmatpush1.bf16.msra.mxu1 %v3135_v40  ;;  %3010 = vmatprep.subr.bf16.mxu0 %v3009_v42  ;;  %v557_v40 = vld [vmem:[%s4209_s13 + $0x5a0] sm:$0xff]  ;;  %v648_v33 = vld [vmem:[%s4209_s13 + $0x878] sm:$0xff] }
 0x145   : > { %3138 = vmatprep.subr.bf16.mxu1 %v3137_v47  ;;  %v565_v42 = vld [vmem:[%s4209_s13 + $0x5e0] sm:$0xff]  ;;  %v574_v47 = vld [vmem:[%s4209_s13 + $0x628] sm:$0xff] }
 0x146   : > { %v3031_v51 = vpack.c.bf16 %v565_v42, %v557_v40  ;;  %v639_v40 = vld [vmem:[%s4209_s13 + $0x830] sm:$0xff]  ;;  %v3177_v42 = vpack.c.bf16 %v648_v33, %v640_v32 }
 0x147   : > { %3012 = vmatpush1.bf16.msra.mxu0 %v3011_v53  ;;  %v3033_v53 = vpack.c.bf16 %v582_v48, %v574_v47  ;;  %v656_v47 = vld [vmem:[%s4209_s13 + $0x8b8] sm:$0xff]  ;;  %v3179_v50 = vpack.c.bf16 %v647_v44, %v639_v40  ;;  %v727_v40 = vld [vmem:[%s4209_s13 + $0xaf0] sm:$0xff]  ;;  %v742_v44 = vld [vmem:[%s4209_s13 + $0xb68] sm:$0xff] }
 0x148   : > { %3140 = vmatpush1.bf16.msra.mxu1 %v3139_v54  ;;  %3014 = vmatprep.subr.bf16.mxu0 %v3013_v55  ;;  %v573_v54 = vld [vmem:[%s4209_s13 + $0x620] sm:$0xff]  ;;  %v664_v48 = vld [vmem:[%s4209_s13 + $0x8f8] sm:$0xff] }
 0x149   : > { %3142 = vmatprep.subr.bf16.mxu1 %v3141_v59  ;;  %v581_v55 = vld [vmem:[%s4209_s13 + $0x660] sm:$0xff]  ;;  %v590_v59 = vld [vmem:[%s4209_s13 + $0x6a8] sm:$0xff] }
 0x14a   : > { %v3035_v63 = vpack.c.bf16 %v581_v55, %v573_v54  ;;  %v655_v54 = vld [vmem:[%s4209_s13 + $0x8b0] sm:$0xff]  ;;  %v3181_v55 = vpack.c.bf16 %v664_v48, %v656_v47 }
 0x14b   : > { %3016 = vmatpush1.bf16.msra.mxu0 %v3015_v1  ;;  %v3037_v1 = vpack.c.bf16 %v598_v60, %v590_v59  ;;  %v3727_v59 = vld [vmem:[%s4202_s11] sm:$0xff]  ;;  %v672_v60 = vld [vmem:[%s4209_s13 + $0x938] sm:$0xff] }
 0x14c   : > { %3144 = vmatpush1.bf16.msra.mxu1 %v3143_v2  ;;  %3018 = vmatprep.subr.bf16.mxu0 %v3017_v3  ;;  %v589_v2 = vld [vmem:[%s4209_s13 + $0x6a0] sm:$0xff]  ;;  %v3185_v4 = vpack.c.bf16 %v680_v61, %v672_v60 }
 0x14d   : > { %3146 = vmatprep.subr.bf16.mxu1 %v3145_v7  ;;  %v597_v3 = vld [vmem:[%s4209_s13 + $0x6e0] sm:$0xff]  ;;  %v606_v7 = vld [vmem:[%s4209_s13 + $0x728] sm:$0xff] }
 0x14e   : > { %v3039_v11 = vpack.c.bf16 %v597_v3, %v589_v2  ;;  %v677_v2 = vld [vmem:[%s4209_s13 + $0x960] sm:$0xff]  ;;  %v671_v3 = vld [vmem:[%s4209_s13 + $0x930] sm:$0xff] }
 0x14f   : > { %3020 = vmatpush1.bf16.msra.mxu0 %v3019_v12  ;;  %v3041_v12 = vpack.c.bf16 %v614_v8, %v606_v7  ;;  %v694_v7 = vld [vmem:[%s4209_s13 + $0x9e8] sm:$0xff]  ;;  %v688_v8 = vld [vmem:[%s4209_s13 + $0x9b8] sm:$0xff] }
 0x150   : > { %3148 = vmatpush1.bf16.msra.mxu1 %v3147_v13  ;;  %3022 = vmatprep.subr.bf16.mxu0 %v3021_v14  ;;  %v605_v13 = vld [vmem:[%s4209_s13 + $0x720] sm:$0xff]  ;;  %v3189_v15 = vpack.c.bf16 %v696_v9, %v688_v8 }
 0x151   : > { %3150 = vmatprep.subr.bf16.mxu1 %v3149_v18  ;;  %v613_v14 = vld [vmem:[%s4209_s13 + $0x760] sm:$0xff]  ;;  %v622_v18 = vld [vmem:[%s4209_s13 + $0x7a8] sm:$0xff] }
 0x152   : > { %v3043_v22 = vpack.c.bf16 %v613_v14, %v605_v13  ;;  %v693_v13 = vld [vmem:[%s4209_s13 + $0x9e0] sm:$0xff]  ;;  %v687_v14 = vld [vmem:[%s4209_s13 + $0x9b0] sm:$0xff] }
 0x153   : > { %3024 = vmatpush1.bf16.msra.mxu0 %v3023_v24  ;;  %v3045_v24 = vpack.c.bf16 %v630_v19, %v622_v18  ;;  %v704_v18 = vld [vmem:[%s4209_s13 + $0xa38] sm:$0xff] }
 0x154   : > { %3152 = vmatpush1.bf16.msra.mxu1 %v3151_v25  ;;  %3026 = vmatprep.subr.bf16.mxu0 %v3025_v26  ;;  %v621_v25 = vld [vmem:[%s4209_s13 + $0x7a0] sm:$0xff]  ;;  %v712_v19 = vld [vmem:[%s4209_s13 + $0xa78] sm:$0xff] }
 0x155   : > { %3154 = vmatprep.subr.bf16.mxu1 %v3153_v30  ;;  %v629_v26 = vld [vmem:[%s4209_s13 + $0x7e0] sm:$0xff]  ;;  %v638_v30 = vld [vmem:[%s4209_s13 + $0x828] sm:$0xff] }
 0x156   : > { %v3047_v34 = vpack.c.bf16 %v629_v26, %v621_v25  ;;  %v703_v25 = vld [vmem:[%s4209_s13 + $0xa30] sm:$0xff]  ;;  %v3193_v26 = vpack.c.bf16 %v712_v19, %v704_v18 }
 0x157   : > { %3028 = vmatpush1.bf16.msra.mxu0 %v3027_v37  ;;  %v3049_v37 = vpack.c.bf16 %v646_v31, %v638_v30  ;;  %v720_v30 = vld [vmem:[%s4209_s13 + $0xab8] sm:$0xff]  ;;  %v3195_v33 = vpack.c.bf16 %v711_v27, %v703_v25  ;;  %v798_v25 = vld [vmem:[%s4209_s13 + $0xd28] sm:$0xff] }
 0x158   : > { %3156 = vmatpush1.bf16.msra.mxu1 %v3155_v38  ;;  %3030 = vmatprep.subr.bf16.mxu0 %v3029_v39  ;;  %v637_v38 = vld [vmem:[%s4209_s13 + $0x820] sm:$0xff]  ;;  %v728_v31 = vld [vmem:[%s4209_s13 + $0xaf8] sm:$0xff] }
 0x159   : > { %3158 = vmatprep.subr.bf16.mxu1 %v3157_v45  ;;  %v645_v39 = vld [vmem:[%s4209_s13 + $0x860] sm:$0xff]  ;;  %v654_v45 = vld [vmem:[%s4209_s13 + $0x8a8] sm:$0xff]  ;;  %v800_v27 = vld [vmem:[%s4209_s13 + $0xd38] sm:$0xff] }
 0x15a   : > { %v3051_v49 = vpack.c.bf16 %v645_v39, %v637_v38  ;;  %v719_v38 = vld [vmem:[%s4209_s13 + $0xab0] sm:$0xff]  ;;  %v3197_v39 = vpack.c.bf16 %v728_v31, %v720_v30 }
 0x15b   : > { %3032 = vmatpush1.bf16.msra.mxu0 %v3031_v51  ;;  %v3053_v51 = vpack.c.bf16 %v662_v46, %v654_v45  ;;  %v736_v45 = vld [vmem:[%s4209_s13 + $0xb38] sm:$0xff]  ;;  %v3199_v48 = vpack.c.bf16 %v727_v40, %v719_v38  ;;  %v814_v38 = vld [vmem:[%s4209_s13 + $0xda8] sm:$0xff] }
 0x15c   : > { %3160 = vmatpush1.bf16.msra.mxu1 %v3159_v52  ;;  %3034 = vmatprep.subr.bf16.mxu0 %v3033_v53  ;;  %v653_v52 = vld [vmem:[%s4209_s13 + $0x8a0] sm:$0xff]  ;;  %v744_v46 = vld [vmem:[%s4209_s13 + $0xb78] sm:$0xff] }
 0x15d   : > { %3162 = vmatprep.subr.bf16.mxu1 %v3161_v57  ;;  %v661_v53 = vld [vmem:[%s4209_s13 + $0x8e0] sm:$0xff]  ;;  %v670_v57 = vld [vmem:[%s4209_s13 + $0x928] sm:$0xff]  ;;  %v816_v40 = vld [vmem:[%s4209_s13 + $0xdb8] sm:$0xff] }
 0x15e   : > { %v3055_v62 = vpack.c.bf16 %v661_v53, %v653_v52  ;;  %v735_v52 = vld [vmem:[%s4209_s13 + $0xb30] sm:$0xff]  ;;  %v3201_v53 = vpack.c.bf16 %v744_v46, %v736_v45 }
 0x15f   : > { %3036 = vmatpush1.bf16.msra.mxu0 %v3035_v63  ;;  %v3183_v63 = vpack.c.bf16 %v663_v56, %v655_v54  ;;  %v743_v54 = vld [vmem:[%s4209_s13 + $0xb70] sm:$0xff]  ;;  %v758_v56 = vld [vmem:[%s4209_s13 + $0xbe8] sm:$0xff] }
 0x160   : > { %3164 = vmatpush1.bf16.msra.mxu1 %v3163_v0  ;;  %3038 = vmatprep.subr.bf16.mxu0 %v3037_v1  ;;  %v3057_v0 = vpack.c.bf16 %v678_v58, %v670_v57  ;;  %v669_v1 = vld [vmem:[%s4209_s13 + $0x920] sm:$0xff]  ;;  %v752_v57 = vld [vmem:[%s4209_s13 + $0xbb8] sm:$0xff]  ;;  %v3203_v60 = vpack.c.bf16 %v743_v54, %v735_v52  ;;  %v830_v52 = vld [vmem:[%s4209_s13 + $0xe28] sm:$0xff] }
 0x161   : > { %3166 = vmatprep.subr.bf16.mxu1 %v3165_v5  ;;  %v679_v5 = vld [vmem:[%s4209_s13 + $0x970] sm:$0xff]  ;;  %v3059_v10 = vpack.c.bf16 %v677_v2, %v669_v1  ;;  %v760_v58 = vld [vmem:[%s4209_s13 + $0xbf8] sm:$0xff] }
 0x162   : > { %v3205_v1 = vpack.c.bf16 %v760_v58, %v752_v57  ;;  %v759_v2 = vld [vmem:[%s4209_s13 + $0xbf0] sm:$0xff]  ;;  %v832_v54 = vld [vmem:[%s4209_s13 + $0xe38] sm:$0xff] }
 0x163   : > { %3040 = vmatpush1.bf16.msra.mxu0 %v3039_v11  ;;  %v3187_v11 = vpack.c.bf16 %v679_v5, %v671_v3  ;;  %v766_v3 = vld [vmem:[%s4209_s13 + $0xc28] sm:$0xff]  ;;  %v768_v5 = vld [vmem:[%s4209_s13 + $0xc38] sm:$0xff] }
 0x164   : > { %3168 = vmatpush1.bf16.msra.mxu1 %v3167_v35  ;;  %3042 = vmatprep.subr.bf16.mxu0 %v3041_v12  ;;  %v3061_v35 = vpack.c.bf16 %v694_v7, %v686_v6  ;;  %v685_v12 = vld [vmem:[%s4209_s13 + $0x9a0] sm:$0xff]  ;;  %v776_v6 = vld [vmem:[%s4209_s13 + $0xc78] sm:$0xff] }
 0x165   : > { %3170 = vmatprep.subr.bf16.mxu1 %v3169_v16  ;;  %v695_v16 = vld [vmem:[%s4209_s13 + $0x9f0] sm:$0xff]  ;;  %v3063_v20 = vpack.c.bf16 %v693_v13, %v685_v12  ;;  %v3209_v12 = vpack.c.bf16 %v776_v6, %v768_v5 }
 0x166   : > { %v3191_v21 = vpack.c.bf16 %v695_v16, %v687_v14  ;;  %v775_v13 = vld [vmem:[%s4209_s13 + $0xc70] sm:$0xff]  ;;  %v782_v14 = vld [vmem:[%s4209_s13 + $0xca8] sm:$0xff]  ;;  %v784_v16 = vld [vmem:[%s4209_s13 + $0xcb8] sm:$0xff] }
 0x167   : > { %3044 = vmatpush1.bf16.msra.mxu0 %v3043_v22 }
 0x168   : > { %3172 = vmatpush1.bf16.msra.mxu1 %v3171_v23  ;;  %3046 = vmatprep.subr.bf16.mxu0 %v3045_v24  ;;  %v701_v23 = vld [vmem:[%s4209_s13 + $0xa20] sm:$0xff] }
 0x169   : > { %3174 = vmatprep.subr.bf16.mxu1 %v3173_v28  ;;  %v709_v24 = vld [vmem:[%s4209_s13 + $0xa60] sm:$0xff]  ;;  %v718_v28 = vld [vmem:[%s4209_s13 + $0xaa8] sm:$0xff] }
 0x16a   : > { %v3067_v32 = vpack.c.bf16 %v709_v24, %v701_v23  ;;  %v791_v24 = vld [vmem:[%s4209_s13 + $0xcf0] sm:$0xff] }
 0x16b   : > { %3048 = vmatpush1.bf16.msra.mxu0 %v3047_v34  ;;  %v3069_v34 = vpack.c.bf16 %v726_v29, %v718_v28  ;;  %v808_v28 = vld [vmem:[%s4209_s13 + $0xd78] sm:$0xff] }
 0x16c   : > { %3176 = vmatpush1.bf16.msra.mxu1 %v3175_v36  ;;  %3050 = vmatprep.subr.bf16.mxu0 %v3049_v37  ;;  %v717_v36 = vld [vmem:[%s4209_s13 + $0xaa0] sm:$0xff] }
 0x16d   : > { %3178 = vmatprep.subr.bf16.mxu1 %v3177_v42  ;;  %v725_v37 = vld [vmem:[%s4209_s13 + $0xae0] sm:$0xff]  ;;  %v734_v42 = vld [vmem:[%s4209_s13 + $0xb28] sm:$0xff] }
 0x16e   : > { %1238 = vmatmul.mubr.f32.vlgmr.msra.gmra.mrb[2].mxu0 %v3727_v59  ;;  %v3071_v47 = vpack.c.bf16 %v725_v37, %v717_v36  ;;  %v3217_v36 = vpack.c.bf16 %v808_v28, %v800_v27  ;;  %v807_v37 = vld [vmem:[%s4209_s13 + $0xd70] sm:$0xff] }
 0x16f   : > { %3052 = vmatpush1.bf16.msra.mxu0 %v3051_v49  ;;  %1380 = vmatmul.mubr.f32.vlgmr.msra.gmra.mrb[2].mxu1 %v3727_v59  ;;  %v3073_v49 = vpack.c.bf16 %v742_v44, %v734_v42  ;;  %v824_v42 = vld [vmem:[%s4209_s13 + $0xdf8] sm:$0xff] }
 0x170   : > { %3180 = vmatpush1.bf16.msra.mxu1 %v3179_v50  ;;  %3054 = vmatprep.subr.bf16.mxu0 %v3053_v51  ;;  %v733_v50 = vld [vmem:[%s4209_s13 + $0xb20] sm:$0xff] }
 0x171   : > { %3182 = vmatprep.subr.bf16.mxu1 %v3181_v55  ;;  %1308 = vmatprep.mubr.f32.mxu0 %v4418_v43  ;;  %v741_v51 = vld [vmem:[%s4209_s13 + $0xb60] sm:$0xff]  ;;  %v750_v55 = vld [vmem:[%s4209_s13 + $0xba8] sm:$0xff] }
 0x172   : > { %1450 = vmatprep.mubr.f32.mxu1 %v4418_v43  ;;  %v710_v43 = vld [vmem:[%s4209_s13 + $0xa68] sm:$0xff]  ;;  %v3075_v59 = vpack.c.bf16 %v741_v51, %v733_v50  ;;  %v3077_v61 = vpack.c.bf16 %v758_v56, %v750_v55  ;;  %v3221_v50 = vpack.c.bf16 %v824_v42, %v816_v40  ;;  %v823_v51 = vld [vmem:[%s4209_s13 + $0xdf0] sm:$0xff]  ;;  %v840_v55 = vld [vmem:[%s4209_s13 + $0xe78] sm:$0xff] }
 0x173   : > { %3056 = vmatpush1.bf16.msra.mxu0 %v3055_v62  ;;  %v3065_v22 = vpack.c.bf16 %v710_v43, %v702_v17  ;;  %v749_v62 = vld [vmem:[%s4209_s13 + $0xba0] sm:$0xff]  ;;  %v792_v17 = vld [vmem:[%s4209_s13 + $0xcf8] sm:$0xff] }
 0x174   : > { %3184 = vmatpush1.bf16.msra.mxu1 %v3183_v63  ;;  %3058 = vmatprep.subr.bf16.mxu0 %v3057_v0  ;;  %v757_v63 = vld [vmem:[%s4209_s13 + $0xbe0] sm:$0xff]  ;;  %v751_v0 = vld [vmem:[%s4209_s13 + $0xbb0] sm:$0xff]  ;;  %v3213_v23 = vpack.c.bf16 %v792_v17, %v784_v16  ;;  %v368_v42 = vld [vmem:[#allocation2 + $0x18] sm:$0xff] }
 0x175   : > { %3186 = vmatprep.subr.bf16.mxu1 %v3185_v4  ;;  %v774_v4 = vld [vmem:[%s4209_s13 + $0xc68] sm:$0xff]  ;;  %v3079_v7 = vpack.c.bf16 %v757_v63, %v749_v62  ;;  %v3207_v8 = vpack.c.bf16 %v759_v2, %v751_v0  ;;  %v3225_v62 = vpack.c.bf16 %v840_v55, %v832_v54  ;;  %v839_v63 = vld [vmem:[%s4209_s13 + $0xe70] sm:$0xff]  ;;  %v848_v2 = vld [vmem:[%s4209_s13 + $0xeb8] sm:$0xff] }
 0x176   : > { %v3081_v9 = vpack.c.bf16 %v774_v4, %v766_v3  ;;  %v846_v0 = vld [vmem:[%s4209_s13 + $0xea8] sm:$0xff]  ;;  %v856_v3 = vld [vmem:[%s4209_s13 + $0xef8] sm:$0xff] }
 0x177   : > { %3060 = vmatpush1.bf16.msra.mxu0 %v3059_v10  ;;  %v765_v10 = vld [vmem:[%s4209_s13 + $0xc20] sm:$0xff]  ;;  %v372_v54 = vld [vmem:[#allocation2 + $0x38] sm:$0xff] }
 0x178   : > { %3188 = vmatpush1.bf16.msra.mxu1 %v3187_v11  ;;  %3062 = vmatprep.subr.bf16.mxu0 %v3061_v35  ;;  %v773_v11 = vld [vmem:[%s4209_s13 + $0xc60] sm:$0xff]  ;;  %v767_v35 = vld [vmem:[%s4209_s13 + $0xc30] sm:$0xff] }
 0x179   : > { %3190 = vmatprep.subr.bf16.mxu1 %v3189_v15  ;;  %v790_v15 = vld [vmem:[%s4209_s13 + $0xce8] sm:$0xff]  ;;  %v3083_v43 = vpack.c.bf16 %v773_v11, %v765_v10  ;;  %v3211_v18 = vpack.c.bf16 %v775_v13, %v767_v35  ;;  %v3229_v10 = vpack.c.bf16 %v856_v3, %v848_v2  ;;  %v855_v11 = vld [vmem:[%s4209_s13 + $0xef0] sm:$0xff]  ;;  %v864_v13 = vld [vmem:[%s4209_s13 + $0xf38] sm:$0xff] }
 0x17a   : > { %v3085_v19 = vpack.c.bf16 %v790_v15, %v782_v14  ;;  %v862_v35 = vld [vmem:[%s4209_s13 + $0xf28] sm:$0xff]  ;;  %v872_v14 = vld [vmem:[%s4209_s13 + $0xf78] sm:$0xff] }
 0x17b   : > { %3064 = vmatpush1.bf16.msra.mxu0 %v3063_v20  ;;  %v781_v20 = vld [vmem:[%s4209_s13 + $0xca0] sm:$0xff]  ;;  %v1585_v2 = vld [vmem:[#allocation9 + $0x320] sm:$0xff] (!%p2581_p12) }
 0x17c   : > { %3192 = vmatpush1.bf16.msra.mxu1 %v3191_v21  ;;  %3066 = vmatprep.subr.bf16.mxu0 %v3065_v22  ;;  %v789_v21 = vld [vmem:[%s4209_s13 + $0xce0] sm:$0xff]  ;;  %v783_v22 = vld [vmem:[%s4209_s13 + $0xcb0] sm:$0xff]  ;;  %v1485_v3 = vld [vmem:[#allocation9] sm:$0xff] (!%p2581_p12) }
 0x17d   : > { %3194 = vmatprep.subr.bf16.mxu1 %v3193_v26  ;;  %v806_v26 = vld [vmem:[%s4209_s13 + $0xd68] sm:$0xff]  ;;  %v3087_v29 = vpack.c.bf16 %v789_v21, %v781_v20  ;;  %v3215_v30 = vpack.c.bf16 %v791_v24, %v783_v22  ;;  %v3233_v20 = vpack.c.bf16 %v872_v14, %v864_v13  ;;  %v871_v21 = vld [vmem:[%s4209_s13 + $0xf70] sm:$0xff]  ;;  %v880_v24 = vld [vmem:[%s4209_s13 + $0xfb8] sm:$0xff] }
 0x17e   : > { %v3089_v31 = vpack.c.bf16 %v806_v26, %v798_v25  ;;  %v878_v22 = vld [vmem:[%s4209_s13 + $0xfa8] sm:$0xff]  ;;  %v888_v25 = vld [vmem:[%s4209_s13 + $0xff8] sm:$0xff] }
 0x17f   : > { %3068 = vmatpush1.bf16.msra.mxu0 %v3067_v32  ;;  %v797_v32 = vld [vmem:[%s4209_s13 + $0xd20] sm:$0xff] }
 0x180   : > { %3196 = vmatpush1.bf16.msra.mxu1 %v3195_v33  ;;  %3070 = vmatprep.subr.bf16.mxu0 %v3069_v34  ;;  %v805_v33 = vld [vmem:[%s4209_s13 + $0xd60] sm:$0xff]  ;;  %v799_v34 = vld [vmem:[%s4209_s13 + $0xd30] sm:$0xff] }
 0x181   : > { %3198 = vmatprep.subr.bf16.mxu1 %v3197_v39  ;;  %v822_v39 = vld [vmem:[%s4209_s13 + $0xde8] sm:$0xff]  ;;  %v3091_v44 = vpack.c.bf16 %v805_v33, %v797_v32  ;;  %v3219_v45 = vpack.c.bf16 %v807_v37, %v799_v34  ;;  %v879_v32 = vld [vmem:[%s4209_s13 + $0xfb0] sm:$0xff]  ;;  %v365_v37 = vld [vmem:[#allocation2] sm:$0xff] }
 0x182   : > { %v3093_v46 = vpack.c.bf16 %v822_v39, %v814_v38  ;;  %v887_v33 = vld [vmem:[%s4209_s13 + $0xff0] sm:$0xff]  ;;  %v366_v39 = vld [vmem:[#allocation2 + $0x8] sm:$0xff] }
 0x183   : > { %3072 = vmatpush1.bf16.msra.mxu0 %v3071_v47  ;;  %v813_v47 = vld [vmem:[%s4209_s13 + $0xda0] sm:$0xff]  ;;  %v367_v38 = vld [vmem:[#allocation2 + $0x10] sm:$0xff] }
 0x184   : > { %3200 = vmatpush1.bf16.msra.mxu1 %v3199_v48  ;;  %3074 = vmatprep.subr.bf16.mxu0 %v3073_v49  ;;  %v821_v48 = vld [vmem:[%s4209_s13 + $0xde0] sm:$0xff]  ;;  %v815_v49 = vld [vmem:[%s4209_s13 + $0xdb0] sm:$0xff] }
 0x185   : > { %3202 = vmatprep.subr.bf16.mxu1 %v3201_v53  ;;  %v838_v53 = vld [vmem:[%s4209_s13 + $0xe68] sm:$0xff]  ;;  %v3095_v56 = vpack.c.bf16 %v821_v48, %v813_v47  ;;  %v3223_v57 = vpack.c.bf16 %v823_v51, %v815_v49  ;;  %v369_v51 = vld [vmem:[#allocation2 + $0x20] sm:$0xff] }
 0x186   : > { %v3097_v58 = vpack.c.bf16 %v838_v53, %v830_v52  ;;  %v371_v52 = vld [vmem:[#allocation2 + $0x30] sm:$0xff]  ;;  %v370_v53 = vld [vmem:[#allocation2 + $0x28] sm:$0xff] }
 0x187   : > { %3076 = vmatpush1.bf16.msra.mxu0 %v3075_v59  ;;  %v829_v59 = vld [vmem:[%s4209_s13 + $0xe20] sm:$0xff] }
 0x188   : > { %3204 = vmatpush1.bf16.msra.mxu1 %v3203_v60  ;;  %3078 = vmatprep.subr.bf16.mxu0 %v3077_v61  ;;  %v837_v60 = vld [vmem:[%s4209_s13 + $0xe60] sm:$0xff]  ;;  %v831_v61 = vld [vmem:[%s4209_s13 + $0xe30] sm:$0xff] }
 0x189   : > { %3206 = vmatprep.subr.bf16.mxu1 %v3205_v1  ;;  %v854_v1 = vld [vmem:[%s4209_s13 + $0xee8] sm:$0xff]  ;;  %v3099_v4 = vpack.c.bf16 %v837_v60, %v829_v59  ;;  %v3227_v5 = vpack.c.bf16 %v839_v63, %v831_v61 }
 0x18a   : > { %v3101_v6 = vpack.c.bf16 %v854_v1, %v846_v0  ;;  %v1489_v63 = vld [vmem:[#allocation9 + $0x20] sm:$0xff] (!%p2581_p12)  ;;  %v1582_v0 = vld [vmem:[#allocation9 + $0x308] sm:$0xff] (!%p2581_p12) }
 0x18b   : > { %3080 = vmatpush1.bf16.msra.mxu0 %v3079_v7  ;;  %v845_v7 = vld [vmem:[%s4209_s13 + $0xea0] sm:$0xff] }
 0x18c   : > { %3208 = vmatpush1.bf16.msra.mxu1 %v3207_v8  ;;  %3082 = vmatprep.subr.bf16.mxu0 %v3081_v9  ;;  %v853_v8 = vld [vmem:[%s4209_s13 + $0xee0] sm:$0xff]  ;;  %v847_v9 = vld [vmem:[%s4209_s13 + $0xeb0] sm:$0xff] }
 0x18d   : > { %3210 = vmatprep.subr.bf16.mxu1 %v3209_v12  ;;  %v870_v12 = vld [vmem:[%s4209_s13 + $0xf68] sm:$0xff]  ;;  %v3103_v15 = vpack.c.bf16 %v853_v8, %v845_v7  ;;  %v3231_v16 = vpack.c.bf16 %v855_v11, %v847_v9  ;;  %v1584_v8 = vld [vmem:[#allocation9 + $0x318] sm:$0xff] (!%p2581_p12)  ;;  %v1495_v11 = vld [vmem:[#allocation9 + $0x50] sm:$0xff] (!%p2581_p12) }
 0x18e   : > { %v3105_v17 = vpack.c.bf16 %v870_v12, %v862_v35  ;;  %v1581_v7 = vld [vmem:[#allocation9 + $0x300] sm:$0xff] (!%p2581_p12)  ;;  %v1492_v9 = vld [vmem:[#allocation9 + $0x38] sm:$0xff] (!%p2581_p12)  ;;  %v1591_v12 = vld [vmem:[#allocation9 + $0x350] sm:$0xff] (!%p2581_p12) }
 0x18f   : > { %3084 = vmatpush1.bf16.msra.mxu0 %v3083_v43  ;;  %v861_v43 = vld [vmem:[%s4209_s13 + $0xf20] sm:$0xff]  ;;  %v3245_v13 = vpack.c.bf16 (!%p2581_p12), %v1495_v11, %v1492_v9  ;;  %v1521_v11 = vld [vmem:[#allocation9 + $0x120] sm:$0xff] (!%p2581_p12) }
 0x190   : > { %3212 = vmatpush1.bf16.msra.mxu1 %v3211_v18  ;;  %3086 = vmatprep.subr.bf16.mxu0 %v3085_v19  ;;  %v869_v18 = vld [vmem:[%s4209_s13 + $0xf60] sm:$0xff]  ;;  %v863_v19 = vld [vmem:[%s4209_s13 + $0xf30] sm:$0xff] }
 0x191   : > { %3214 = vmatprep.subr.bf16.mxu1 %v3213_v23  ;;  %v886_v23 = vld [vmem:[%s4209_s13 + $0xfe8] sm:$0xff]  ;;  %v3107_v26 = vpack.c.bf16 %v869_v18, %v861_v43  ;;  %v3235_v27 = vpack.c.bf16 %v871_v21, %v863_v19  ;;  %v1588_v35 = vld [vmem:[#allocation9 + $0x338] sm:$0xff] (!%p2581_p12)  ;;  %v1590_v18 = vld [vmem:[#allocation9 + $0x348] sm:$0xff] (!%p2581_p12) }
 0x192   : > { %v3109_v28 = vpack.c.bf16 %v886_v23, %v878_v22  ;;  %v3309_v14 = vpack.c.bf16 (!%p2581_p12), %v1591_v12, %v1588_v35  ;;  %v1498_v19 = vld [vmem:[#allocation9 + $0x68] sm:$0xff] (!%p2581_p12)  ;;  %v1524_v35 = vld [vmem:[#allocation9 + $0x138] sm:$0xff] (!%p2581_p12)  ;;  %v1617_v12 = vld [vmem:[#allocation9 + $0x420] sm:$0xff] (!%p2581_p12) }
 0x193   : > { %3088 = vmatpush1.bf16.msra.mxu0 %v3087_v29  ;;  %v877_v29 = vld [vmem:[%s4209_s13 + $0xfa0] sm:$0xff]  ;;  %v1594_v23 = vld [vmem:[#allocation9 + $0x368] sm:$0xff] (!%p2581_p12) }
 0x194   : > { %3216 = vmatpush1.bf16.msra.mxu1 %v3215_v30  ;;  %3090 = vmatprep.subr.bf16.mxu0 %v3089_v31  ;;  %v885_v30 = vld [vmem:[%s4209_s13 + $0xfe0] sm:$0xff]  ;;  %v3237_v31 = vpack.c.bf16 %v888_v25, %v880_v24  ;;  %v1597_v24 = vld [vmem:[#allocation9 + $0x380] sm:$0xff] (!%p2581_p12) }
 0x195   : > { %3218 = vmatprep.subr.bf16.mxu1 %v3217_v36  ;;  %v3111_v34 = vpack.c.bf16 %v885_v30, %v877_v29  ;;  %v3239_v36 = vpack.c.bf16 %v887_v33, %v879_v32  ;;  %v1497_v25 = vld [vmem:[#allocation9 + $0x60] sm:$0xff] (!%p2581_p12)  ;;  %v1596_v29 = vld [vmem:[#allocation9 + $0x378] sm:$0xff] (!%p2581_p12)  ;;  %v1507_v32 = vld [vmem:[#allocation9 + $0xb0] sm:$0xff] (!%p2581_p12) }
 0x196   : > { %v1600_v33 = vld [vmem:[#allocation9 + $0x398] sm:$0xff] (!%p2581_p12) }
 0x197   : > { %3092 = vmatpush1.bf16.msra.mxu0 %v3091_v44 }
 0x198   : > { %3220 = vmatpush1.bf16.msra.mxu1 %v3219_v45  ;;  %3094 = vmatprep.subr.bf16.mxu0 %v3093_v46 }
 0x199   : > { %3222 = vmatprep.subr.bf16.mxu1 %v3221_v50 }
 0x19b   : > { %3096 = vmatpush1.bf16.msra.mxu0 %v3095_v56 }
 0x19c   : > { %3224 = vmatpush1.bf16.msra.mxu1 %v3223_v57  ;;  %3098 = vmatprep.subr.bf16.mxu0 %v3097_v58 }
 0x19d   : > { %3226 = vmatprep.subr.bf16.mxu1 %v3225_v62  ;;  %v1486_v62 = vld [vmem:[#allocation9 + $0x8] sm:$0xff] (!%p2581_p12) }
 0x19e   : > { %v3241_v1 = vpack.c.bf16 (!%p2581_p12), %v1489_v63, %v1486_v62  ;;  %v1515_v63 = vld [vmem:[#allocation9 + $0xf0] sm:$0xff] (!%p2581_p12) }
 0x19f   : > { %3100 = vmatpush1.bf16.msra.mxu0 %v3099_v4  ;;  %v1488_v4 = vld [vmem:[#allocation9 + $0x18] sm:$0xff] (!%p2581_p12) }
 0x1a0   : > { %3228 = vmatpush1.bf16.msra.mxu1 %v3227_v5  ;;  %3102 = vmatprep.subr.bf16.mxu0 %v3101_v6  ;;  %v3305_v5 = vpack.c.bf16 (!%p2581_p12), %v1585_v2, %v1582_v0  ;;  %v3243_v6 = vpack.c.bf16 (!%p2581_p12), %v1488_v4, %v1485_v3  ;;  %v1518_v0 = vld [vmem:[#allocation9 + $0x108] sm:$0xff] (!%p2581_p12) }
 0x1a1   : > { %3230 = vmatprep.subr.bf16.mxu1 %v3229_v10  ;;  %v3307_v10 = vpack.c.bf16 (!%p2581_p12), %v1584_v8, %v1581_v7  ;;  %v1614_v3 = vld [vmem:[#allocation9 + $0x408] sm:$0xff] (!%p2581_p12)  ;;  %v1621_v7 = vld [vmem:[#allocation9 + $0x440] sm:$0xff] (!%p2581_p12)  ;;  %v3263_v8 = vpack.c.bf16 (!%p2581_p12), %v1518_v0, %v1515_v63  ;;  %v1644_v63 = vld [vmem:[#allocation9 + $0x4f8] sm:$0xff] (!%p2581_p12) }
 0x1a2   : > { %v1522_v4 = vld [vmem:[#allocation9 + $0x128] sm:$0xff] (!%p2581_p12)  ;;  %v1552_v0 = vld [vmem:[#allocation9 + $0x218] sm:$0xff] (!%p2581_p12) }
 0x1a3   : > { %3104 = vmatpush1.bf16.msra.mxu0 %v3103_v15  ;;  %v1491_v15 = vld [vmem:[#allocation9 + $0x30] sm:$0xff] (!%p2581_p12) }
 0x1a4   : > { %3232 = vmatpush1.bf16.msra.mxu1 %v3231_v16  ;;  %3106 = vmatprep.subr.bf16.mxu0 %v3105_v17  ;;  %v1494_v16 = vld [vmem:[#allocation9 + $0x48] sm:$0xff] (!%p2581_p12)  ;;  %v1587_v17 = vld [vmem:[#allocation9 + $0x330] sm:$0xff] (!%p2581_p12) }
 0x1a5   : > { %3234 = vmatprep.subr.bf16.mxu1 %v3233_v20  ;;  %v3247_v43 = vpack.c.bf16 (!%p2581_p12), %v1494_v16, %v1491_v15  ;;  %v1501_v20 = vld [vmem:[#allocation9 + $0x80] sm:$0xff] (!%p2581_p12)  ;;  %v3311_v21 = vpack.c.bf16 (!%p2581_p12), %v1590_v18, %v1587_v17  ;;  %v1528_v15 = vld [vmem:[#allocation9 + $0x158] sm:$0xff] (!%p2581_p12)  ;;  %v1531_v16 = vld [vmem:[#allocation9 + $0x170] sm:$0xff] (!%p2581_p12)  ;;  %v3267_v18 = vpack.c.bf16 (!%p2581_p12), %v1524_v35, %v1521_v11 }
 0x1a6   : > { %v3249_v22 = vpack.c.bf16 (!%p2581_p12), %v1501_v20, %v1498_v19  ;;  %v1624_v17 = vld [vmem:[#allocation9 + $0x458] sm:$0xff] (!%p2581_p12)  ;;  %v3269_v20 = vpack.c.bf16 (!%p2581_p12), %v1531_v16, %v1528_v15  ;;  %v1558_v35 = vld [vmem:[#allocation9 + $0x248] sm:$0xff] (!%p2581_p12)  ;;  %v1657_v15 = vld [vmem:[#allocation9 + $0x560] sm:$0xff] (!%p2581_p12) }
 0x1a7   : > { %3108 = vmatpush1.bf16.msra.mxu0 %v3107_v26  ;;  %v3313_v26 = vpack.c.bf16 (!%p2581_p12), %v1597_v24, %v1594_v23  ;;  %v1623_v23 = vld [vmem:[#allocation9 + $0x450] sm:$0xff] (!%p2581_p12) }
 0x1a8   : > { %3236 = vmatpush1.bf16.msra.mxu1 %v3235_v27  ;;  %3110 = vmatprep.subr.bf16.mxu0 %v3109_v28  ;;  %v1500_v27 = vld [vmem:[#allocation9 + $0x78] sm:$0xff] (!%p2581_p12)  ;;  %v1593_v28 = vld [vmem:[#allocation9 + $0x360] sm:$0xff] (!%p2581_p12) }
 0x1a9   : > { %3238 = vmatprep.subr.bf16.mxu1 %v3237_v31  ;;  %v3251_v30 = vpack.c.bf16 (!%p2581_p12), %v1500_v27, %v1497_v25  ;;  %v1504_v31 = vld [vmem:[#allocation9 + $0x98] sm:$0xff] (!%p2581_p12)  ;;  %v1626_v25 = vld [vmem:[#allocation9 + $0x468] sm:$0xff] (!%p2581_p12)  ;;  %v1537_v27 = vld [vmem:[#allocation9 + $0x1a0] sm:$0xff] (!%p2581_p12) }
 0x1ab   : > { %3112 = vmatpush1.bf16.msra.mxu0 %v3111_v34  ;;  %v3315_v34 = vpack.c.bf16 (!%p2581_p12), %v1596_v29, %v1593_v28  ;;  %v1630_v28 = vld [vmem:[#allocation9 + $0x488] sm:$0xff] (!%p2581_p12)  ;;  %v1633_v29 = vld [vmem:[#allocation9 + $0x4a0] sm:$0xff] (!%p2581_p12) }
 0x1ac   : > { %3240 = vmatpush1.bf16.msra.mxu1 %v3239_v36  ;;  %3306 = vmatprep.subr.bf16.mxu0 (!%p2581_p12), %v3305_v5  ;;  %v3253_v36 = vpack.c.bf16 (!%p2581_p12), %v1507_v32, %v1504_v31  ;;  %v1525_v5 = vld [vmem:[#allocation9 + $0x140] sm:$0xff] (!%p2581_p12)  ;;  %v3335_v31 = vpack.c.bf16 (!%p2581_p12), %v1626_v25, %v1623_v23  ;;  %v1656_v23 = vld [vmem:[#allocation9 + $0x558] sm:$0xff] (!%p2581_p12)  ;;  %v1567_v25 = vld [vmem:[#allocation9 + $0x290] sm:$0xff] (!%p2581_p12) }
 0x1ad   : > { %3242 = vmatprep.subr.bf16.mxu1 (!%p2581_p12), %v3241_v1  ;;  %v1611_v1 = vld [vmem:[#allocation9 + $0x3f0] sm:$0xff] (!%p2581_p12) }
 0x1ae   : > { %1309 = vmatmul.mubr.f32.vlgmr.msra.gmra.mrb[2].mxu0 %v4505_v41  ;;  %v3327_v9 = vpack.c.bf16 (!%p2581_p12), %v1614_v3, %v1611_v1  ;;  %v1555_v1 = vld [vmem:[#allocation9 + $0x230] sm:$0xff] (!%p2581_p12) }
 0x1af   : > { %1451 = vmatmul.mubr.f32.vlgmr.msra.gmra.mrb[2].mxu1 %v4505_v41  ;;  %3308 = vmatpush1.bf16.msra.mxu0 (!%p2581_p12), %v3307_v10  ;;  %v3265_v10 = vpack.c.bf16 (!%p2581_p12), %v1525_v5, %v1522_v4  ;;  %v1651_v3 = vld [vmem:[#allocation9 + $0x530] sm:$0xff] (!%p2581_p12) }
 0x1b0   : > { %3244 = vmatpush1.bf16.msra.mxu1 (!%p2581_p12), %v3243_v6  ;;  %3310 = vmatprep.subr.bf16.mxu0 (!%p2581_p12), %v3309_v14  ;;  %v1618_v6 = vld [vmem:[#allocation9 + $0x428] sm:$0xff] (!%p2581_p12)  ;;  %v1620_v14 = vld [vmem:[#allocation9 + $0x438] sm:$0xff] (!%p2581_p12)  ;;  %v1551_v5 = vld [vmem:[#allocation9 + $0x210] sm:$0xff] (!%p2581_p12) }
 0x1b1   : > { %3246 = vmatprep.subr.bf16.mxu1 (!%p2581_p12), %v3245_v13  ;;  %v3329_v13 = vpack.c.bf16 (!%p2581_p12), %v1621_v7, %v1618_v6  ;;  %v3331_v19 = vpack.c.bf16 (!%p2581_p12), %v1620_v14, %v1617_v12  ;;  %v3285_v7 = vpack.c.bf16 (!%p2581_p12), %v1555_v1, %v1552_v0  ;;  %v1561_v12 = vld [vmem:[#allocation9 + $0x260] sm:$0xff] (!%p2581_p12)  ;;  %v1654_v14 = vld [vmem:[#allocation9 + $0x548] sm:$0xff] (!%p2581_p12) }
 0x1b2   : > { %v1678_v0 = vld [vmem:[#allocation9 + $0x608] sm:$0xff] (!%p2581_p12)  ;;  %v1681_v1 = vld [vmem:[#allocation9 + $0x620] sm:$0xff] (!%p2581_p12) }
 0x1b3   : > { %3312 = vmatpush1.bf16.msra.mxu0 (!%p2581_p12), %v3311_v21  ;;  %v1527_v21 = vld [vmem:[#allocation9 + $0x150] sm:$0xff] (!%p2581_p12) }
 0x1b4   : > { %3248 = vmatpush1.bf16.msra.mxu1 (!%p2581_p12), %v3247_v43  ;;  %3314 = vmatprep.subr.bf16.mxu0 (!%p2581_p12), %v3313_v26  ;;  %v1627_v43 = vld [vmem:[#allocation9 + $0x470] sm:$0xff] (!%p2581_p12)  ;;  %v1534_v26 = vld [vmem:[#allocation9 + $0x188] sm:$0xff] (!%p2581_p12) }
 0x1b5   : > { %3250 = vmatprep.subr.bf16.mxu1 (!%p2581_p12), %v3249_v22  ;;  %v1530_v22 = vld [vmem:[#allocation9 + $0x168] sm:$0xff] (!%p2581_p12)  ;;  %v3333_v24 = vpack.c.bf16 (!%p2581_p12), %v1627_v43, %v1624_v17  ;;  %v3273_v32 = vpack.c.bf16 (!%p2581_p12), %v1537_v27, %v1534_v26  ;;  %v1660_v26 = vld [vmem:[#allocation9 + $0x578] sm:$0xff] (!%p2581_p12)  ;;  %v1663_v27 = vld [vmem:[#allocation9 + $0x590] sm:$0xff] (!%p2581_p12) }
 0x1b7   : > { %3316 = vmatpush1.bf16.msra.mxu0 (!%p2581_p12), %v3315_v34  ;;  %v1536_v34 = vld [vmem:[#allocation9 + $0x198] sm:$0xff] (!%p2581_p12) }
 0x1b8   : > { %3252 = vmatpush1.bf16.msra.mxu1 (!%p2581_p12), %v3251_v30  ;;  %v3271_v30 = vpack.c.bf16 (!%p2581_p12), %v1530_v22, %v1527_v21  ;;  %v1653_v21 = vld [vmem:[#allocation9 + $0x540] sm:$0xff] (!%p2581_p12)  ;;  %v3353_v22 = vpack.c.bf16 (!%p2581_p12), %v1657_v15, %v1654_v14 }
 0x1b9   : > { %3254 = vmatprep.subr.bf16.mxu1 (!%p2581_p12), %v3253_v36  ;;  %v1629_v36 = vld [vmem:[#allocation9 + $0x480] sm:$0xff] (!%p2581_p12) }
 0x201   : > { %v1026_v40 = vpop.f32.mrb[0].mxu0 }
 0x202   : > { %v1457_v44 = vadd.f32 %v1026_v40, %v365_v37  ;;  %v1168_v45 = vpop.f32.mrb[0].mxu1  ;;  %v1028_v46 = vpop.f32.mrb[1].mxu0  ;;  %v1603_v37 = vld [vmem:[#allocation9 + $0x3b0] sm:$0xff] (!%p2581_p12) }
 0x203   : > { %v1459_v47 = vadd.f32 %v1168_v45, %v367_v38  ;;  %v1458_v48 = vadd.f32 %v1028_v46, %v366_v39  ;;  %v1170_v49 = vpop.f32.mrb[1].mxu1  ;;  %v1503_v38 = vld [vmem:[#allocation9 + $0x90] sm:$0xff] (!%p2581_p12)  ;;  %v1506_v39 = vld [vmem:[#allocation9 + $0xa8] sm:$0xff] (!%p2581_p12)  ;;  %v3317_v40 = vpack.c.bf16 (!%p2581_p12), %v1603_v37, %v1600_v33  ;;  %v1513_v46 = vld [vmem:[#allocation9 + $0xe0] sm:$0xff] (!%p2581_p12)  ;;  %v3337_v37 = vpack.c.bf16 (!%p2581_p12), %v1633_v29, %v1630_v28 }
 0x204   : > { %1465 = vst [vmem:[#allocation2] sm:$0xff] %v1457_v44  ;;  %v1460_v50 = vadd.f32 %v1170_v49, %v368_v42  ;;  %v1599_v42 = vld [vmem:[#allocation9 + $0x390] sm:$0xff] (!%p2581_p12)  ;;  %v1602_v44 = vld [vmem:[#allocation9 + $0x3a8] sm:$0xff] (!%p2581_p12)  ;;  %v3255_v49 = vpack.c.bf16 (!%p2581_p12), %v1506_v39, %v1503_v38  ;;  %v1533_v33 = vld [vmem:[#allocation9 + $0x180] sm:$0xff] (!%p2581_p12)  ;;  %v3355_v29 = vpack.c.bf16 (!%p2581_p12), %v1656_v23, %v1653_v21 }
 0x205   : > { %1467 = vst [vmem:[#allocation2 + $0x10] sm:$0xff] %v1459_v47  ;;  %1466 = vst [vmem:[#allocation2 + $0x8] sm:$0xff] %v1458_v48  ;;  %v1510_v45 = vld [vmem:[#allocation9 + $0xc8] sm:$0xff] (!%p2581_p12)  ;;  %v1609_v48 = vld [vmem:[#allocation9 + $0x3e0] sm:$0xff] (!%p2581_p12)  ;;  %3318 = vmatprep.subr.bf16.mxu0 (!%p2581_p12), %v3317_v40 }
 0x206   : > { %1468 = vst [vmem:[#allocation2 + $0x18] sm:$0xff] %v1460_v50  ;;  %v1606_v47 = vld [vmem:[#allocation9 + $0x3c8] sm:$0xff] (!%p2581_p12)  ;;  %v3319_v50 = vpack.c.bf16 (!%p2581_p12), %v1602_v44, %v1599_v42  ;;  %3256 = vmatpush1.bf16.msra.mxu1 (!%p2581_p12), %v3255_v49  ;;  %v1632_v38 = vld [vmem:[#allocation9 + $0x498] sm:$0xff] (!%p2581_p12)  ;;  %v1543_v40 = vld [vmem:[#allocation9 + $0x1d0] sm:$0xff] (!%p2581_p12) }
 0x207   : > { %v1540_v39 = vld [vmem:[#allocation9 + $0x1b8] sm:$0xff] (!%p2581_p12)  ;;  %v1639_v44 = vld [vmem:[#allocation9 + $0x4d0] sm:$0xff] (!%p2581_p12)  ;;  %v1542_v49 = vld [vmem:[#allocation9 + $0x1c8] sm:$0xff] (!%p2581_p12) }
 0x208   : > { %3320 = vmatpush1.bf16.msra.mxu0 (!%p2581_p12), %v3319_v50  ;;  %v1636_v42 = vld [vmem:[#allocation9 + $0x4b8] sm:$0xff] (!%p2581_p12)  ;;  %v1635_v50 = vld [vmem:[#allocation9 + $0x4b0] sm:$0xff] (!%p2581_p12)  ;;  %v1686_v23 = vld [vmem:[#allocation9 + $0x648] sm:$0xff] (!%p2581_p12) }
 0x209   : > { %v1496_v21 = vld [vmem:[#allocation9 + $0x58] sm:$0xff] (!%p2581_p12) }
 0x20b   : > { %v4767_v14 = vld [vmem:[#allocation2] sm:$0xff] (!%p2581_p12) }
 0x20c   : > { %v4769_v15 = vld [vmem:[#allocation2 + $0x10] sm:$0xff] (!%p2581_p12) }
 0x20d   : > { %v4764_v16 = vld [vmem:[#allocation2 + $0x18] sm:$0xff] (!%p2581_p12) }
 0x20e   : > { %2021 = vmatprep.mubr.f32.mxu0 (!%p2581_p12), %v4764_v16 }
 0x280   : > { %1476 = sbr.rel (%p2581_p12) target bundleno = 1039 (0x40f), region = 68 }
 0x281   : > { %v1310_v41 = vpop.f32.mrb[2].mxu0 }
 0x282   : > { %v1461_v55 = vadd.f32 %v1310_v41, %v369_v51  ;;  %v1452_v56 = vpop.f32.mrb[2].mxu1  ;;  %v1312_v57 = vpop.f32.mrb[3].mxu0  ;;  %v3257_v51 = vpack.c.bf16 (!%p2581_p12), %v1513_v46, %v1510_v45  ;;  %v1605_v41 = vld [vmem:[#allocation9 + $0x3c0] sm:$0xff] (!%p2581_p12)  ;;  %v3275_v45 = vpack.c.bf16 (!%p2581_p12), %v1536_v34, %v1533_v33  ;;  %v3339_v46 = vpack.c.bf16 (!%p2581_p12), %v1632_v38, %v1629_v36  ;;  %v1659_v33 = vld [vmem:[#allocation9 + $0x570] sm:$0xff] (!%p2581_p12)  ;;  %v1662_v36 = vld [vmem:[#allocation9 + $0x588] sm:$0xff] (!%p2581_p12) }
 0x283   : > { %v1463_v58 = vadd.f32 %v1452_v56, %v371_v52  ;;  %v1462_v59 = vadd.f32 %v1312_v57, %v370_v53  ;;  %v1454_v60 = vpop.f32.mrb[3].mxu1  ;;  %v1509_v52 = vld [vmem:[#allocation9 + $0xc0] sm:$0xff] (!%p2581_p12)  ;;  %v1512_v53 = vld [vmem:[#allocation9 + $0xd8] sm:$0xff] (!%p2581_p12)  ;;  %v1519_v57 = vld [vmem:[#allocation9 + $0x110] sm:$0xff] (!%p2581_p12)  ;;  %v3357_v34 = vpack.c.bf16 (!%p2581_p12), %v1663_v27, %v1660_v26 }
 0x284   : > { %1469 = vst [vmem:[#allocation2 + $0x20] sm:$0xff] %v1461_v55  ;;  %v1464_v61 = vadd.f32 %v1454_v60, %v372_v54  ;;  %v3321_v54 = vpack.c.bf16 (!%p2581_p12), %v1609_v48, %v1606_v47  ;;  %v1608_v55 = vld [vmem:[#allocation9 + $0x3d8] sm:$0xff] (!%p2581_p12)  ;;  %v3259_v60 = vpack.c.bf16 (!%p2581_p12), %v1512_v53, %v1509_v52  ;;  %3258 = vmatprep.subr.bf16.mxu1 (!%p2581_p12), %v3257_v51  ;;  %v1539_v48 = vld [vmem:[#allocation9 + $0x1b0] sm:$0xff] (!%p2581_p12)  ;;  %v1638_v52 = vld [vmem:[#allocation9 + $0x4c8] sm:$0xff] (!%p2581_p12) }
 0x285   : > { %1471 = vst [vmem:[#allocation2 + $0x30] sm:$0xff] %v1463_v58  ;;  %1470 = vst [vmem:[#allocation2 + $0x28] sm:$0xff] %v1462_v59  ;;  %v1516_v56 = vld [vmem:[#allocation9 + $0xf8] sm:$0xff] (!%p2581_p12)  ;;  %v1615_v59 = vld [vmem:[#allocation9 + $0x410] sm:$0xff] (!%p2581_p12)  ;;  %v3277_v47 = vpack.c.bf16 (!%p2581_p12), %v1543_v40, %v1540_v39  ;;  %v3341_v51 = vpack.c.bf16 (!%p2581_p12), %v1639_v44, %v1636_v42  ;;  %v3359_v44 = vpack.c.bf16 (!%p2581_p12), %v1662_v36, %v1659_v33 }
 0x286   : > { %1472 = vst [vmem:[#allocation2 + $0x38] sm:$0xff] %v1464_v61  ;;  %v1612_v58 = vld [vmem:[#allocation9 + $0x3f8] sm:$0xff] (!%p2581_p12)  ;;  %v3323_v61 = vpack.c.bf16 (!%p2581_p12), %v1608_v55, %v1605_v41  ;;  %v3261_v62 = vpack.c.bf16 (!%p2581_p12), %v1519_v57, %v1516_v56  ;;  %3322 = vmatprep.subr.bf16.mxu0 (!%p2581_p12), %v3321_v54  ;;  %3260 = vmatpush1.bf16.msra.mxu1 (!%p2581_p12), %v3259_v60  ;;  %v1546_v53 = vld [vmem:[#allocation9 + $0x1e8] sm:$0xff] (!%p2581_p12)  ;;  %v1549_v41 = vld [vmem:[#allocation9 + $0x200] sm:$0xff] (!%p2581_p12) }
 0x287   : > { %v3325_v2 = vpack.c.bf16 %v1615_v59, %v1612_v58  ;;  %v1642_v54 = vld [vmem:[#allocation9 + $0x4e8] sm:$0xff]  ;;  %v1645_v55 = vld [vmem:[#allocation9 + $0x500] sm:$0xff]  ;;  %v3279_v56 = vpack.c.bf16 %v1542_v49, %v1539_v48  ;;  %v3343_v57 = vpack.c.bf16 %v1638_v52, %v1635_v50  ;;  %v3281_v58 = vpack.c.bf16 %v1549_v41, %v1546_v53  ;;  %v1548_v60 = vld [vmem:[#allocation9 + $0x1f8] sm:$0xff] }
 0x288   : > { %3324 = vmatpush1.bf16.msra.mxu0 %v3323_v61  ;;  %3262 = vmatprep.subr.bf16.mxu1 %v3261_v62  ;;  %v1545_v59 = vld [vmem:[#allocation9 + $0x1e0] sm:$0xff]  ;;  %v3345_v62 = vpack.c.bf16 %v1645_v55, %v1642_v54  ;;  %v1666_v39 = vld [vmem:[#allocation9 + $0x5a8] sm:$0xff]  ;;  %v1668_v50 = vld [vmem:[#allocation9 + $0x5b8] sm:$0xff] }
 0x289   : > { %3326 = vmatprep.subr.bf16.mxu0 %v3325_v2  ;;  %v1641_v61 = vld [vmem:[#allocation9 + $0x4e0] sm:$0xff]  ;;  %v1648_v2 = vld [vmem:[#allocation9 + $0x518] sm:$0xff]  ;;  %v3283_v4 = vpack.c.bf16 %v1548_v60, %v1545_v59  ;;  %v1579_v52 = vld [vmem:[#allocation9 + $0x2f0] sm:$0xff] }
 0x28a   : > { %3264 = vmatpush1.bf16.msra.mxu1 %v3263_v8  ;;  %v3347_v6 = vpack.c.bf16 %v1644_v63, %v1641_v61  ;;  %v1554_v8 = vld [vmem:[#allocation9 + $0x228] sm:$0xff]  ;;  %v3349_v11 = vpack.c.bf16 %v1651_v3, %v1648_v2  ;;  %v1573_v38 = vld [vmem:[#allocation9 + $0x2c0] sm:$0xff]  ;;  %v1672_v53 = vld [vmem:[#allocation9 + $0x5d8] sm:$0xff] }
 0x28b   : > { %3266 = vmatprep.subr.bf16.mxu1 %v3265_v10  ;;  %v1650_v10 = vld [vmem:[#allocation9 + $0x528] sm:$0xff]  ;;  %v3287_v17 = vpack.c.bf16 %v1554_v8, %v1551_v5  ;;  %v1669_v40 = vld [vmem:[#allocation9 + $0x5c0] sm:$0xff]  ;;  %v1675_v41 = vld [vmem:[#allocation9 + $0x5f0] sm:$0xff]  ;;  %v3369_v8 = vpack.c.bf16 %v1681_v1, %v1678_v0 }
 0x28c   : > { %3328 = vmatpush1.bf16.msra.mxu0 %v3327_v9  ;;  %v1647_v9 = vld [vmem:[#allocation9 + $0x510] sm:$0xff]  ;;  %v1665_v48 = vld [vmem:[#allocation9 + $0x5a0] sm:$0xff]  ;;  %v3361_v49 = vpack.c.bf16 %v1669_v40, %v1666_v39  ;;  %v3365_v60 = vpack.c.bf16 %v1675_v41, %v1672_v53  ;;  %v1674_v61 = vld [vmem:[#allocation9 + $0x5e8] sm:$0xff] }
 0x28d   : > { %3330 = vmatprep.subr.bf16.mxu0 %v3329_v13  ;;  %v4761_v13 = vld [vmem:[#allocation2 + $0x8] sm:$0xff]  ;;  %v3351_v43 = vpack.c.bf16 %v1650_v10, %v1647_v9  ;;  %v3363_v55 = vpack.c.bf16 %v1668_v50, %v1665_v48  ;;  %v1671_v59 = vld [vmem:[#allocation9 + $0x5d0] sm:$0xff]  ;;  %v1538_v63 = vld [vmem:[#allocation9 + $0x1a8] sm:$0xff] }
 0x28e   : > { %3268 = vmatpush1.bf16.msra.mxu1 %v3267_v18  ;;  %1950 = vmatprep.mubr.f32.mxu1 %v4761_v13  ;;  %v3289_v18 = vpack.c.bf16 %v1561_v12, %v1558_v35  ;;  %v3367_v3 = vpack.c.bf16 %v1674_v61, %v1671_v59  ;;  %v1677_v5 = vld [vmem:[#allocation9 + $0x600] sm:$0xff]  ;;  %v1680_v9 = vld [vmem:[#allocation9 + $0x618] sm:$0xff]  ;;  %v1687_v12 = vld [vmem:[#allocation9 + $0x650] sm:$0xff] }
 0x28f   : > { %3270 = vmatprep.subr.bf16.mxu1 %v3269_v20  ;;  %v1560_v20 = vld [vmem:[#allocation9 + $0x258] sm:$0xff]  ;;  %v1541_v10 = vld [vmem:[#allocation9 + $0x1c0] sm:$0xff]  ;;  %v1690_v26 = vld [vmem:[#allocation9 + $0x668] sm:$0xff] }
 0x290   : > { %3332 = vmatpush1.bf16.msra.mxu0 %v3331_v19  ;;  %v1557_v19 = vld [vmem:[#allocation9 + $0x240] sm:$0xff]  ;;  %v1684_v35 = vld [vmem:[#allocation9 + $0x638] sm:$0xff]  ;;  %v1502_v33 = vld [vmem:[#allocation9 + $0x88] sm:$0xff] }
 0x291   : > { %3334 = vmatprep.subr.bf16.mxu0 %v3333_v24  ;;  %v1564_v24 = vld [vmem:[#allocation9 + $0x278] sm:$0xff]  ;;  %v3291_v28 = vpack.c.bf16 %v1560_v20, %v1557_v19  ;;  %v1683_v19 = vld [vmem:[#allocation9 + $0x630] sm:$0xff]  ;;  %v1493_v20 = vld [vmem:[#allocation9 + $0x40] sm:$0xff] }
 0x292   : > { %3272 = vmatpush1.bf16.msra.mxu1 %v3271_v30  ;;  %v3293_v30 = vpack.c.bf16 %v1567_v25, %v1564_v24  ;;  %v1547_v24 = vld [vmem:[#allocation9 + $0x1f0] sm:$0xff]  ;;  %v1550_v25 = vld [vmem:[#allocation9 + $0x208] sm:$0xff]  ;;  %v1693_v27 = vld [vmem:[#allocation9 + $0x680] sm:$0xff] }
 0x293   : > { %3274 = vmatprep.subr.bf16.mxu1 %v3273_v32  ;;  %v1566_v32 = vld [vmem:[#allocation9 + $0x288] sm:$0xff]  ;;  %v1692_v36 = vld [vmem:[#allocation9 + $0x678] sm:$0xff]  ;;  %v1699_v40 = vld [vmem:[#allocation9 + $0x6b0] sm:$0xff] }
 0x294   : > { %3336 = vmatpush1.bf16.msra.mxu0 %v3335_v31  ;;  %v1563_v31 = vld [vmem:[#allocation9 + $0x270] sm:$0xff]  ;;  %v1696_v39 = vld [vmem:[#allocation9 + $0x698] sm:$0xff]  ;;  %v1698_v50 = vld [vmem:[#allocation9 + $0x6a8] sm:$0xff] }
 0x295   : > { %3338 = vmatprep.subr.bf16.mxu0 %v3337_v37  ;;  %v1570_v37 = vld [vmem:[#allocation9 + $0x2a8] sm:$0xff]  ;;  %v3295_v42 = vpack.c.bf16 %v1566_v32, %v1563_v31  ;;  %v1689_v31 = vld [vmem:[#allocation9 + $0x660] sm:$0xff]  ;;  %v1499_v32 = vld [vmem:[#allocation9 + $0x70] sm:$0xff] }
 0x296   : > { %3276 = vmatpush1.bf16.msra.mxu1 %v3275_v45  ;;  %v3297_v45 = vpack.c.bf16 %v1573_v38, %v1570_v37  ;;  %v1553_v37 = vld [vmem:[#allocation9 + $0x220] sm:$0xff]  ;;  %v1556_v38 = vld [vmem:[#allocation9 + $0x238] sm:$0xff]  ;;  %v1702_v53 = vld [vmem:[#allocation9 + $0x6c8] sm:$0xff] }
 0x297   : > { %3278 = vmatprep.subr.bf16.mxu1 %v3277_v47  ;;  %v1572_v47 = vld [vmem:[#allocation9 + $0x2b8] sm:$0xff]  ;;  %v1705_v41 = vld [vmem:[#allocation9 + $0x6e0] sm:$0xff]  ;;  %v1711_v0 = vld [vmem:[#allocation9 + $0x710] sm:$0xff] }
 0x298   : > { %3340 = vmatpush1.bf16.msra.mxu0 %v3339_v46  ;;  %v1569_v46 = vld [vmem:[#allocation9 + $0x2a0] sm:$0xff]  ;;  %v1508_v48 = vld [vmem:[#allocation9 + $0xb8] sm:$0xff]  ;;  %v3385_v59 = vpack.c.bf16 %v1705_v41, %v1702_v53  ;;  %v1735_v41 = vld [vmem:[#allocation9 + $0x7d0] sm:$0xff] }
 0x299   : > { %3342 = vmatprep.subr.bf16.mxu0 %v3341_v51  ;;  %v1576_v51 = vld [vmem:[#allocation9 + $0x2d8] sm:$0xff]  ;;  %v3299_v54 = vpack.c.bf16 %v1572_v47, %v1569_v46  ;;  %v1695_v46 = vld [vmem:[#allocation9 + $0x690] sm:$0xff]  ;;  %v1505_v47 = vld [vmem:[#allocation9 + $0xa0] sm:$0xff] }
 0x29a   : > { %3280 = vmatpush1.bf16.msra.mxu1 %v3279_v56  ;;  %v3301_v56 = vpack.c.bf16 %v1579_v52, %v1576_v51  ;;  %v1559_v51 = vld [vmem:[#allocation9 + $0x250] sm:$0xff]  ;;  %v1562_v52 = vld [vmem:[#allocation9 + $0x268] sm:$0xff]  ;;  %v1565_v61 = vld [vmem:[#allocation9 + $0x280] sm:$0xff] }
 0x29b   : > { %3282 = vmatprep.subr.bf16.mxu1 %v3281_v58  ;;  %v1578_v58 = vld [vmem:[#allocation9 + $0x2e8] sm:$0xff]  ;;  %v1732_v53 = vld [vmem:[#allocation9 + $0x7b8] sm:$0xff] }
 0x29c   : > { %3344 = vmatpush1.bf16.msra.mxu0 %v3343_v57  ;;  %v1575_v57 = vld [vmem:[#allocation9 + $0x2d0] sm:$0xff] }
 0x29d   : > { %3346 = vmatprep.subr.bf16.mxu0 %v3345_v62  ;;  %v1535_v62 = vld [vmem:[#allocation9 + $0x190] sm:$0xff]  ;;  %v3303_v2 = vpack.c.bf16 %v1578_v58, %v1575_v57  ;;  %v1514_v58 = vld [vmem:[#allocation9 + $0xe8] sm:$0xff] }
 0x29e   : > { %3284 = vmatpush1.bf16.msra.mxu1 %v3283_v4  ;;  %v3497_v4 = vpack.c.bf16 %v1538_v63, %v1535_v62  ;;  %v1511_v57 = vld [vmem:[#allocation9 + $0xd0] sm:$0xff]  ;;  %v1568_v62 = vld [vmem:[#allocation9 + $0x298] sm:$0xff] }
 0x29f   : > { %3286 = vmatprep.subr.bf16.mxu1 %v3285_v7  ;;  %v1490_v7 = vld [vmem:[#allocation9 + $0x28] sm:$0xff]  ;;  %v1708_v63 = vld [vmem:[#allocation9 + $0x6f8] sm:$0xff]  ;;  %v3515_v1 = vpack.c.bf16 %v1514_v58, %v1511_v57  ;;  %v1589_v57 = vld [vmem:[#allocation9 + $0x340] sm:$0xff] }
 0x2a0   : > { %3348 = vmatpush1.bf16.msra.mxu0 %v3347_v6  ;;  %v1487_v6 = vld [vmem:[#allocation9 + $0x10] sm:$0xff]  ;;  %v1592_v58 = vld [vmem:[#allocation9 + $0x358] sm:$0xff] }
 0x2a1   : > { %3350 = vmatprep.subr.bf16.mxu0 %v3349_v11  ;;  %v1544_v11 = vld [vmem:[#allocation9 + $0x1d8] sm:$0xff] }
 0x2a2   : > { %3288 = vmatpush1.bf16.msra.mxu1 %v3287_v17  ;;  %v3499_v17 = vpack.c.bf16 %v1490_v7, %v1487_v6  ;;  %v1520_v6 = vld [vmem:[#allocation9 + $0x118] sm:$0xff]  ;;  %v3389_v7 = vpack.c.bf16 %v1711_v0, %v1708_v63  ;;  %v1738_v63 = vld [vmem:[#allocation9 + $0x7e8] sm:$0xff]  ;;  %v1741_v0 = vld [vmem:[#allocation9 + $0x800] sm:$0xff] }
 0x2a3   : > { %3290 = vmatprep.subr.bf16.mxu1 %v3289_v18  ;;  %v3501_v18 = vpack.c.bf16 %v1544_v11, %v1541_v10  ;;  %v1574_v10 = vld [vmem:[#allocation9 + $0x2c8] sm:$0xff] }
 0x2a4   : > { %3352 = vmatpush1.bf16.msra.mxu0 %v3351_v43  ;;  %v3371_v43 = vpack.c.bf16 %v1680_v9, %v1677_v5  ;;  %v1517_v5 = vld [vmem:[#allocation9 + $0x100] sm:$0xff]  ;;  %v1571_v9 = vld [vmem:[#allocation9 + $0x2b0] sm:$0xff]  ;;  %v1714_v11 = vld [vmem:[#allocation9 + $0x728] sm:$0xff] }
 0x2a5   : > { %3354 = vmatprep.subr.bf16.mxu0 %v3353_v22  ;;  %v3373_v22 = vpack.c.bf16 %v1687_v12, %v1684_v35  ;;  %v1717_v35 = vld [vmem:[#allocation9 + $0x740] sm:$0xff]  ;;  %v3519_v12 = vpack.c.bf16 %v1520_v6, %v1517_v5  ;;  %v1595_v5 = vld [vmem:[#allocation9 + $0x370] sm:$0xff]  ;;  %v1598_v6 = vld [vmem:[#allocation9 + $0x388] sm:$0xff] }
 0x2a6   : > { %3292 = vmatpush1.bf16.msra.mxu1 %v3291_v28  ;;  %v3503_v28 = vpack.c.bf16 %v1496_v21, %v1493_v20  ;;  %v1523_v20 = vld [vmem:[#allocation9 + $0x130] sm:$0xff]  ;;  %v1526_v21 = vld [vmem:[#allocation9 + $0x148] sm:$0xff] }
 0x2a7   : > { %3294 = vmatprep.subr.bf16.mxu1 %v3293_v30  ;;  %v3505_v30 = vpack.c.bf16 %v1550_v25, %v1547_v24  ;;  %v1580_v24 = vld [vmem:[#allocation9 + $0x2f8] sm:$0xff]  ;;  %v4774_v25 = vld [vmem:[#allocation2 + $0x28] sm:$0xff] }
 0x2a8   : > { %3356 = vmatpush1.bf16.msra.mxu0 %v3355_v29  ;;  %v3375_v29 = vpack.c.bf16 %v1686_v23, %v1683_v19  ;;  %v1716_v19 = vld [vmem:[#allocation9 + $0x738] sm:$0xff]  ;;  %v1577_v23 = vld [vmem:[#allocation9 + $0x2e0] sm:$0xff] }
 0x2a9   : > { %3358 = vmatprep.subr.bf16.mxu0 %v3357_v34  ;;  %v3377_v34 = vpack.c.bf16 %v1693_v27, %v1690_v26  ;;  %v1720_v26 = vld [vmem:[#allocation9 + $0x758] sm:$0xff]  ;;  %v1723_v27 = vld [vmem:[#allocation9 + $0x770] sm:$0xff] }
 0x2aa   : > { %3296 = vmatpush1.bf16.msra.mxu1 %v3295_v42  ;;  %v3507_v42 = vpack.c.bf16 %v1502_v33, %v1499_v32  ;;  %v1529_v32 = vld [vmem:[#allocation9 + $0x160] sm:$0xff]  ;;  %v1532_v33 = vld [vmem:[#allocation9 + $0x178] sm:$0xff] }
 0x2ab   : > { %3298 = vmatprep.subr.bf16.mxu1 %v3297_v45  ;;  %v3509_v45 = vpack.c.bf16 %v1556_v38, %v1553_v37  ;;  %v1631_v37 = vld [vmem:[#allocation9 + $0x490] sm:$0xff]  ;;  %v1634_v38 = vld [vmem:[#allocation9 + $0x4a8] sm:$0xff] }
 0x2ac   : > { %3360 = vmatpush1.bf16.msra.mxu0 %v3359_v44  ;;  %v3379_v44 = vpack.c.bf16 %v1692_v36, %v1689_v31  ;;  %v1719_v31 = vld [vmem:[#allocation9 + $0x750] sm:$0xff]  ;;  %v1722_v36 = vld [vmem:[#allocation9 + $0x768] sm:$0xff] }
 0x2ad   : > { %3362 = vmatprep.subr.bf16.mxu0 %v3361_v49  ;;  %v3381_v49 = vpack.c.bf16 %v1699_v40, %v1696_v39  ;;  %v1726_v39 = vld [vmem:[#allocation9 + $0x788] sm:$0xff]  ;;  %v1729_v40 = vld [vmem:[#allocation9 + $0x7a0] sm:$0xff] }
 0x2ae   : > { %3300 = vmatpush1.bf16.msra.mxu1 %v3299_v54  ;;  %v3383_v54 = vpack.c.bf16 %v1698_v50, %v1695_v46  ;;  %v1725_v46 = vld [vmem:[#allocation9 + $0x780] sm:$0xff]  ;;  %v1728_v50 = vld [vmem:[#allocation9 + $0x798] sm:$0xff] }
 0x2af   : > { %3302 = vmatprep.subr.bf16.mxu1 %v3301_v56  ;;  %v1701_v56 = vld [vmem:[#allocation9 + $0x6c0] sm:$0xff] }
 0x2b0   : > { %3364 = vmatpush1.bf16.msra.mxu0 %v3363_v55  ;;  %v3513_v55 = vpack.c.bf16 %v1562_v52, %v1559_v51  ;;  %v1637_v51 = vld [vmem:[#allocation9 + $0x4c0] sm:$0xff]  ;;  %v1640_v52 = vld [vmem:[#allocation9 + $0x4d8] sm:$0xff] }
 0x2b1   : > { %3366 = vmatprep.subr.bf16.mxu0 %v3365_v60  ;;  %v1704_v60 = vld [vmem:[#allocation9 + $0x6d8] sm:$0xff] }
 0x2b2   : > { %3304 = vmatpush1.bf16.msra.mxu1 %v3303_v2  ;;  %v3387_v2 = vpack.c.bf16 %v1704_v60, %v1701_v56  ;;  %v1731_v56 = vld [vmem:[#allocation9 + $0x7b0] sm:$0xff]  ;;  %v1734_v60 = vld [vmem:[#allocation9 + $0x7c8] sm:$0xff] }
 0x2b3   : > { %3498 = vmatprep.subr.bf16.mxu1 %v3497_v4  ;;  %v1707_v4 = vld [vmem:[#allocation9 + $0x6f0] sm:$0xff] }
 0x2b4   : > { %3368 = vmatpush1.bf16.msra.mxu0 %v3367_v3  ;;  %v3517_v3 = vpack.c.bf16 %v1568_v62, %v1565_v61  ;;  %v1643_v61 = vld [vmem:[#allocation9 + $0x4f0] sm:$0xff]  ;;  %v1646_v62 = vld [vmem:[#allocation9 + $0x508] sm:$0xff] }
 0x2b5   : > { %3370 = vmatprep.subr.bf16.mxu0 %v3369_v8  ;;  %1951 = vmatmul.mubr.f32.vlgmr.msra.gmra.mrb[0].mxu1 %v4767_v14  ;;  %v1710_v8 = vld [vmem:[#allocation9 + $0x708] sm:$0xff] }
 0x2b6   : > { %3500 = vmatpush3.bf16.msra.mxu1 %v3499_v17  ;;  %2234 = vmatprep.mubr.f32.mxu1 %v4761_v13  ;;  %v3511_v13 = vpack.c.bf16 %v1508_v48, %v1505_v47  ;;  %v1713_v17 = vld [vmem:[#allocation9 + $0x720] sm:$0xff]  ;;  %v1583_v47 = vld [vmem:[#allocation9 + $0x310] sm:$0xff]  ;;  %v1586_v48 = vld [vmem:[#allocation9 + $0x328] sm:$0xff] }
 0x2b7   : > { %2022 = vmatmul.mubr.f32.vlgmr.msra.gmra.mrb[0].mxu0 %v4769_v15  ;;  %3502 = vmatprep.subr.bf16.mxu1 %v3501_v18  ;;  %v3521_v18 = vpack.c.bf16 %v1574_v10, %v1571_v9  ;;  %v1649_v9 = vld [vmem:[#allocation9 + $0x520] sm:$0xff]  ;;  %v1652_v10 = vld [vmem:[#allocation9 + $0x538] sm:$0xff] }
 0x2b8   : > { %3372 = vmatpush1.bf16.msra.mxu0 %v3371_v43  ;;  %v3391_v43 = vpack.c.bf16 %v1710_v8, %v1707_v4  ;;  %2092 = vmatprep.mubr.f32.mxu0 %v4774_v25  ;;  %v1737_v4 = vld [vmem:[#allocation9 + $0x7e0] sm:$0xff]  ;;  %v1740_v8 = vld [vmem:[#allocation9 + $0x7f8] sm:$0xff] }
 0x2b9   : > { %3374 = vmatprep.subr.bf16.mxu0 %v3373_v22  ;;  %v3393_v22 = vpack.c.bf16 %v1717_v35, %v1714_v11  ;;  %v1744_v11 = vld [vmem:[#allocation9 + $0x818] sm:$0xff]  ;;  %v3539_v35 = vpack.c.bf16 %v1598_v6, %v1595_v5  ;;  %v1770_v6 = vld [vmem:[#allocation9 + $0x8e8] sm:$0xff] }
 0x2ba   : > { %3504 = vmatpush3.bf16.msra.mxu1 %v3503_v28  ;;  %v3523_v28 = vpack.c.bf16 %v1526_v21, %v1523_v20  ;;  %v1746_v20 = vld [vmem:[#allocation9 + $0x828] sm:$0xff]  ;;  %v1655_v21 = vld [vmem:[#allocation9 + $0x550] sm:$0xff] }
 0x2bb   : > { %3506 = vmatprep.subr.bf16.mxu1 %v3505_v30  ;;  %v3525_v30 = vpack.c.bf16 %v1580_v24, %v1577_v23  ;;  %v1750_v23 = vld [vmem:[#allocation9 + $0x848] sm:$0xff]  ;;  %v1753_v24 = vld [vmem:[#allocation9 + $0x860] sm:$0xff] }
 0x2bc   : > { %3376 = vmatpush1.bf16.msra.mxu0 %v3375_v29  ;;  %v3395_v29 = vpack.c.bf16 %v1716_v19, %v1713_v17  ;;  %v1743_v17 = vld [vmem:[#allocation9 + $0x810] sm:$0xff] }
 0x2bd   : > { %3378 = vmatprep.subr.bf16.mxu0 %v3377_v34  ;;  %v3397_v34 = vpack.c.bf16 %v1723_v27, %v1720_v26  ;;  %v3415_v27 = vpack.c.bf16 %v1746_v20, %v1743_v17  ;;  %v1682_v17 = vld [vmem:[#allocation9 + $0x628] sm:$0xff]  ;;  %v1736_v20 = vld [vmem:[#allocation9 + $0x7d8] sm:$0xff] }
 0x2be   : > { %3508 = vmatpush3.bf16.msra.mxu1 %v3507_v42  ;;  %v3527_v42 = vpack.c.bf16 %v1532_v33, %v1529_v32  ;;  %v3417_v32 = vpack.c.bf16 %v1753_v24, %v1750_v23  ;;  %v1752_v33 = vld [vmem:[#allocation9 + $0x858] sm:$0xff] }
 0x2bf   : > { %3510 = vmatprep.subr.bf16.mxu1 %v3509_v45  ;;  %v3529_v45 = vpack.c.bf16 %v1634_v38, %v1631_v37  ;;  %v1756_v37 = vld [vmem:[#allocation9 + $0x878] sm:$0xff]  ;;  %v1759_v38 = vld [vmem:[#allocation9 + $0x890] sm:$0xff] }
 0x2c0   : > { %3380 = vmatpush1.bf16.msra.mxu0 %v3379_v44  ;;  %v3399_v44 = vpack.c.bf16 %v1722_v36, %v1719_v31  ;;  %v1610_v31 = vld [vmem:[#allocation9 + $0x3e8] sm:$0xff]  ;;  %v1664_v36 = vld [vmem:[#allocation9 + $0x598] sm:$0xff] }
 0x2c1   : > { %3382 = vmatprep.subr.bf16.mxu0 %v3381_v49  ;;  %v3401_v49 = vpack.c.bf16 %v1729_v40, %v1726_v39  ;;  %v4779_v23 = vld [vmem:[#allocation2 + $0x20] sm:$0xff] }
 0x2c2   : > { %3512 = vmatpush3.bf16.msra.mxu1 %v3511_v13  ;;  %v3531_v13 = vpack.c.bf16 %v1586_v48, %v1583_v47  ;;  %v3421_v47 = vpack.c.bf16 %v1759_v38, %v1756_v37  ;;  %v1758_v48 = vld [vmem:[#allocation9 + $0x888] sm:$0xff]  ;;  %v1789_v37 = vld [vmem:[#allocation9 + $0x980] sm:$0xff] }
 0x2c3   : > { %3514 = vmatprep.subr.bf16.mxu1 %v3513_v55  ;;  %v3533_v55 = vpack.c.bf16 %v1640_v52, %v1637_v51  ;;  %v1762_v51 = vld [vmem:[#allocation9 + $0x8a8] sm:$0xff]  ;;  %v1765_v52 = vld [vmem:[#allocation9 + $0x8c0] sm:$0xff] }
 0x2c4   : > { %3384 = vmatpush1.bf16.msra.mxu0 %v3383_v54  ;;  %v3403_v54 = vpack.c.bf16 %v1728_v50, %v1725_v46  ;;  %v1616_v46 = vld [vmem:[#allocation9 + $0x418] sm:$0xff]  ;;  %v1670_v50 = vld [vmem:[#allocation9 + $0x5c8] sm:$0xff] }
 0x2c5   : > { %3386 = vmatprep.subr.bf16.mxu0 %v3385_v59  ;;  %v3405_v59 = vpack.c.bf16 %v1735_v41, %v1732_v53 }
 0x2c6   : > { %3516 = vmatpush3.bf16.msra.mxu1 %v3515_v1  ;;  %v3535_v1 = vpack.c.bf16 %v1592_v58, %v1589_v57  ;;  %v3425_v57 = vpack.c.bf16 %v1765_v52, %v1762_v51  ;;  %v1764_v58 = vld [vmem:[#allocation9 + $0x8b8] sm:$0xff]  ;;  %v1795_v51 = vld [vmem:[#allocation9 + $0x9b0] sm:$0xff] }
 0x2c7   : > { %3518 = vmatprep.subr.bf16.mxu1 %v3517_v3  ;;  %v3537_v3 = vpack.c.bf16 %v1646_v62, %v1643_v61  ;;  %v1768_v61 = vld [vmem:[#allocation9 + $0x8d8] sm:$0xff]  ;;  %v1771_v62 = vld [vmem:[#allocation9 + $0x8f0] sm:$0xff] }
 0x2c8   : > { %3388 = vmatpush1.bf16.msra.mxu0 %v3387_v2  ;;  %v3407_v2 = vpack.c.bf16 %v1734_v60, %v1731_v56  ;;  %v1622_v56 = vld [vmem:[#allocation9 + $0x448] sm:$0xff]  ;;  %v1676_v60 = vld [vmem:[#allocation9 + $0x5f8] sm:$0xff]  ;;  %v3429_v5 = vpack.c.bf16 %v1771_v62, %v1768_v61 }
 0x2c9   : > { %3390 = vmatprep.subr.bf16.mxu0 %v3389_v7  ;;  %v3409_v7 = vpack.c.bf16 %v1741_v0, %v1738_v63 }
 0x2ca   : > { %3520 = vmatpush3.bf16.msra.mxu1 %v3519_v12  ;;  %v3411_v12 = vpack.c.bf16 %v1740_v8, %v1737_v4  ;;  %v1628_v4 = vld [vmem:[#allocation9 + $0x478] sm:$0xff]  ;;  %v1730_v8 = vld [vmem:[#allocation9 + $0x7a8] sm:$0xff] }
 0x2cb   : > { %3522 = vmatprep.subr.bf16.mxu1 %v3521_v18  ;;  %v1604_v18 = vld [vmem:[#allocation9 + $0x3b8] sm:$0xff] }
 0x2cc   : > { %3392 = vmatpush1.bf16.msra.mxu0 %v3391_v43  ;;  %v1601_v43 = vld [vmem:[#allocation9 + $0x3a0] sm:$0xff] }
 0x2cd   : > { %3394 = vmatprep.subr.bf16.mxu0 %v3393_v22  ;;  %v1658_v22 = vld [vmem:[#allocation9 + $0x568] sm:$0xff]  ;;  %v3543_v26 = vpack.c.bf16 %v1604_v18, %v1601_v43  ;;  %v1776_v18 = vld [vmem:[#allocation9 + $0x918] sm:$0xff] }
 0x2ce   : > { %3524 = vmatpush3.bf16.msra.mxu1 %v3523_v28  ;;  %v3545_v28 = vpack.c.bf16 %v1658_v22, %v1655_v21  ;;  %v1780_v21 = vld [vmem:[#allocation9 + $0x938] sm:$0xff]  ;;  %v1783_v22 = vld [vmem:[#allocation9 + $0x950] sm:$0xff] }
 0x2cf   : > { %3526 = vmatprep.subr.bf16.mxu1 %v3525_v30  ;;  %v1607_v30 = vld [vmem:[#allocation9 + $0x3d0] sm:$0xff] }
 0x2d0   : > { %3396 = vmatpush1.bf16.msra.mxu0 %v3395_v29  ;;  %v1749_v29 = vld [vmem:[#allocation9 + $0x840] sm:$0xff]  ;;  %v3547_v39 = vpack.c.bf16 %v1610_v31, %v1607_v30  ;;  %v1688_v30 = vld [vmem:[#allocation9 + $0x658] sm:$0xff]  ;;  %v3437_v31 = vpack.c.bf16 %v1783_v22, %v1780_v21 }
 0x2d1   : > { %3398 = vmatprep.subr.bf16.mxu0 %v3397_v34  ;;  %v1661_v34 = vld [vmem:[#allocation9 + $0x580] sm:$0xff]  ;;  %v3419_v40 = vpack.c.bf16 %v1752_v33, %v1749_v29  ;;  %v1739_v33 = vld [vmem:[#allocation9 + $0x7f0] sm:$0xff] }
 0x2d2   : > { %3528 = vmatpush3.bf16.msra.mxu1 %v3527_v42  ;;  %v3549_v42 = vpack.c.bf16 %v1664_v36, %v1661_v34  ;;  %v1685_v29 = vld [vmem:[#allocation9 + $0x640] sm:$0xff]  ;;  %v1742_v34 = vld [vmem:[#allocation9 + $0x808] sm:$0xff] }
 0x2d3   : > { %3530 = vmatprep.subr.bf16.mxu1 %v3529_v45  ;;  %v1613_v45 = vld [vmem:[#allocation9 + $0x400] sm:$0xff]  ;;  %v1786_v36 = vld [vmem:[#allocation9 + $0x968] sm:$0xff]  ;;  %v3567_v38 = vpack.c.bf16 %v1688_v30, %v1685_v29  ;;  %v1812_v30 = vld [vmem:[#allocation9 + $0xa38] sm:$0xff] }
 0x2d4   : > { %3400 = vmatpush1.bf16.msra.mxu0 %v3399_v44  ;;  %v1755_v44 = vld [vmem:[#allocation9 + $0x870] sm:$0xff]  ;;  %v3551_v53 = vpack.c.bf16 %v1616_v46, %v1613_v45  ;;  %v1694_v46 = vld [vmem:[#allocation9 + $0x688] sm:$0xff] }
 0x2d5   : > { %3402 = vmatprep.subr.bf16.mxu0 %v3401_v49  ;;  %2235 = vmatmul.mubr.f32.vlgmr.msra.gmra.mrb[2].mxu1 %v4767_v14  ;;  %v1747_v14 = vld [vmem:[#allocation9 + $0x830] sm:$0xff]  ;;  %v3423_v41 = vpack.c.bf16 %v1758_v48, %v1755_v44  ;;  %v1785_v44 = vld [vmem:[#allocation9 + $0x960] sm:$0xff]  ;;  %v1788_v48 = vld [vmem:[#allocation9 + $0x978] sm:$0xff] }
 0x2d6   : > { %3532 = vmatpush3.bf16.msra.mxu1 %v3531_v13  ;;  %2304 = vmatprep.mubr.f32.mxu1 %v4764_v16  ;;  %v3541_v16 = vpack.c.bf16 %v1652_v10, %v1649_v9  ;;  %v3413_v19 = vpack.c.bf16 %v1747_v14, %v1744_v11  ;;  %v1667_v49 = vld [vmem:[#allocation9 + $0x5b0] sm:$0xff]  ;;  %v1774_v9 = vld [vmem:[#allocation9 + $0x908] sm:$0xff]  ;;  %v1777_v10 = vld [vmem:[#allocation9 + $0x920] sm:$0xff] }
 0x2d7   : > { %3534 = vmatprep.subr.bf16.mxu1 %v3533_v55  ;;  %v3553_v13 = vpack.c.bf16 %v1670_v50, %v1667_v49  ;;  %v1619_v55 = vld [vmem:[#allocation9 + $0x430] sm:$0xff]  ;;  %v3433_v43 = vpack.c.bf16 %v1777_v10, %v1774_v9  ;;  %v1745_v49 = vld [vmem:[#allocation9 + $0x820] sm:$0xff]  ;;  %v1792_v50 = vld [vmem:[#allocation9 + $0x998] sm:$0xff] }
 0x2d8   : > { %3404 = vmatpush1.bf16.msra.mxu0 %v3403_v54  ;;  %v1761_v54 = vld [vmem:[#allocation9 + $0x8a0] sm:$0xff]  ;;  %v3555_v63 = vpack.c.bf16 %v1622_v56, %v1619_v55  ;;  %v1691_v45 = vld [vmem:[#allocation9 + $0x670] sm:$0xff]  ;;  %v1700_v55 = vld [vmem:[#allocation9 + $0x6b8] sm:$0xff]  ;;  %v3445_v56 = vpack.c.bf16 %v1795_v51, %v1792_v50 }
 0x2d9   : > { %3406 = vmatprep.subr.bf16.mxu0 %v3405_v59  ;;  %v1673_v59 = vld [vmem:[#allocation9 + $0x5e0] sm:$0xff]  ;;  %v3427_v0 = vpack.c.bf16 %v1764_v58, %v1761_v54  ;;  %v3571_v52 = vpack.c.bf16 %v1694_v46, %v1691_v45  ;;  %v1751_v58 = vld [vmem:[#allocation9 + $0x850] sm:$0xff]  ;;  %v1818_v46 = vld [vmem:[#allocation9 + $0xa68] sm:$0xff] }
 0x2da   : > { %3536 = vmatpush3.bf16.msra.mxu1 %v3535_v1  ;;  %v3557_v1 = vpack.c.bf16 %v1676_v60, %v1673_v59  ;;  %v1697_v54 = vld [vmem:[#allocation9 + $0x6a0] sm:$0xff]  ;;  %v1754_v59 = vld [vmem:[#allocation9 + $0x868] sm:$0xff] }
 0x2db   : > { %3538 = vmatprep.subr.bf16.mxu1 %v3537_v3  ;;  %v1625_v3 = vld [vmem:[#allocation9 + $0x460] sm:$0xff]  ;;  %v1798_v60 = vld [vmem:[#allocation9 + $0x9c8] sm:$0xff]  ;;  %v3575_v61 = vpack.c.bf16 %v1700_v55, %v1697_v54  ;;  %v1824_v55 = vld [vmem:[#allocation9 + $0xa98] sm:$0xff] }
 0x2dc   : > { %3408 = vmatpush1.bf16.msra.mxu0 %v3407_v2  ;;  %v1767_v2 = vld [vmem:[#allocation9 + $0x8d0] sm:$0xff]  ;;  %v3559_v11 = vpack.c.bf16 %v1628_v4, %v1625_v3  ;;  %v1800_v4 = vld [vmem:[#allocation9 + $0x9d8] sm:$0xff] }
 0x2dd   : > { %3410 = vmatprep.subr.bf16.mxu0 %v3409_v7  ;;  %v1727_v7 = vld [vmem:[#allocation9 + $0x790] sm:$0xff]  ;;  %v3431_v14 = vpack.c.bf16 %v1770_v6, %v1767_v2  ;;  %v1706_v2 = vld [vmem:[#allocation9 + $0x6e8] sm:$0xff]  ;;  %v1760_v6 = vld [vmem:[#allocation9 + $0x898] sm:$0xff] }
 0x2de   : > { %3540 = vmatpush3.bf16.msra.mxu1 %v3539_v35  ;;  %v3561_v35 = vpack.c.bf16 %v1730_v8, %v1727_v7  ;;  %v1804_v7 = vld [vmem:[#allocation9 + $0x9f8] sm:$0xff]  ;;  %v1807_v8 = vld [vmem:[#allocation9 + $0xa10] sm:$0xff] }
 0x2df   : > { %3542 = vmatprep.subr.bf16.mxu1 %v3541_v16  ;;  %v1679_v16 = vld [vmem:[#allocation9 + $0x610] sm:$0xff] }
 0x2e0   : > { %3412 = vmatpush1.bf16.msra.mxu0 %v3411_v12  ;;  %v1773_v12 = vld [vmem:[#allocation9 + $0x900] sm:$0xff]  ;;  %v3563_v24 = vpack.c.bf16 %v1682_v17, %v1679_v16  ;;  %v3453_v16 = vpack.c.bf16 %v1807_v8, %v1804_v7  ;;  %v1806_v17 = vld [vmem:[#allocation9 + $0xa08] sm:$0xff] }
 0x2e1   : > { %3414 = vmatprep.subr.bf16.mxu0 %v3413_v19  ;;  %v1733_v19 = vld [vmem:[#allocation9 + $0x7c0] sm:$0xff] }
 0x2e2   : > { %3544 = vmatpush3.bf16.msra.mxu1 %v3543_v26  ;;  %v3435_v26 = vpack.c.bf16 %v1776_v18, %v1773_v12  ;;  %v1712_v12 = vld [vmem:[#allocation9 + $0x718] sm:$0xff]  ;;  %v1766_v18 = vld [vmem:[#allocation9 + $0x8c8] sm:$0xff] }
 0x2e3   : > { %3546 = vmatprep.subr.bf16.mxu1 %v3545_v28  ;;  %v1779_v28 = vld [vmem:[#allocation9 + $0x930] sm:$0xff] }
 0x2e4   : > { %3416 = vmatpush1.bf16.msra.mxu0 %v3415_v27  ;;  %v3565_v27 = vpack.c.bf16 %v1736_v20, %v1733_v19  ;;  %v1810_v19 = vld [vmem:[#allocation9 + $0xa28] sm:$0xff]  ;;  %v1813_v20 = vld [vmem:[#allocation9 + $0xa40] sm:$0xff] }
 0x2e5   : > { %3418 = vmatprep.subr.bf16.mxu0 %v3417_v32  ;;  %v1782_v32 = vld [vmem:[#allocation9 + $0x948] sm:$0xff]  ;;  %v3457_v29 = vpack.c.bf16 %v1813_v20, %v1810_v19  ;;  %v1839_v20 = vld [vmem:[#allocation9 + $0xb10] sm:$0xff] }
 0x2e6   : > { %3548 = vmatpush3.bf16.msra.mxu1 %v3547_v39  ;;  %v4783_v39 = vld [vmem:[#allocation2 + $0x38] sm:$0xff] }
 0x2e7   : > { %3550 = vmatprep.subr.bf16.mxu1 %v3549_v42  ;;  %v3569_v42 = vpack.c.bf16 %v1742_v34, %v1739_v33  ;;  %v1816_v33 = vld [vmem:[#allocation9 + $0xa58] sm:$0xff]  ;;  %v1819_v34 = vld [vmem:[#allocation9 + $0xa70] sm:$0xff] }
 0x2e8   : > { %3420 = vmatpush1.bf16.msra.mxu0 %v3419_v40  ;;  %v3439_v40 = vpack.c.bf16 %v1782_v32, %v1779_v28  ;;  %v1718_v28 = vld [vmem:[#allocation9 + $0x748] sm:$0xff]  ;;  %v1772_v32 = vld [vmem:[#allocation9 + $0x8f8] sm:$0xff]  ;;  %v3461_v45 = vpack.c.bf16 %v1819_v34, %v1816_v33  ;;  %v1845_v34 = vld [vmem:[#allocation9 + $0xb40] sm:$0xff] }
 0x2e9   : > { %3422 = vmatprep.subr.bf16.mxu0 %v3421_v47  ;;  %v3441_v47 = vpack.c.bf16 %v1789_v37, %v1786_v36 }
 0x2ea   : > { %3552 = vmatpush3.bf16.msra.mxu1 %v3551_v53  ;;  %v3443_v53 = vpack.c.bf16 %v1788_v48, %v1785_v44  ;;  %v1724_v44 = vld [vmem:[#allocation9 + $0x778] sm:$0xff]  ;;  %v1826_v48 = vld [vmem:[#allocation9 + $0xaa8] sm:$0xff] }
 0x2eb   : > { %3554 = vmatprep.subr.bf16.mxu1 %v3553_v13  ;;  %v1791_v13 = vld [vmem:[#allocation9 + $0x990] sm:$0xff] }
 0x2ec   : > { %3424 = vmatpush1.bf16.msra.mxu0 %v3423_v41 }
 0x2ed   : > { %3426 = vmatprep.subr.bf16.mxu0 %v3425_v57  ;;  %v1794_v57 = vld [vmem:[#allocation9 + $0x9a8] sm:$0xff] }
 0x2ee   : > { %3556 = vmatpush3.bf16.msra.mxu1 %v3555_v63  ;;  %v3447_v62 = vpack.c.bf16 %v1794_v57, %v1791_v13  ;;  %v3577_v63 = vpack.c.bf16 %v1754_v59, %v1751_v58  ;;  %v1778_v13 = vld [vmem:[#allocation9 + $0x928] sm:$0xff]  ;;  %v1832_v57 = vld [vmem:[#allocation9 + $0xad8] sm:$0xff]  ;;  %v1831_v59 = vld [vmem:[#allocation9 + $0xad0] sm:$0xff] }
 0x2ef   : > { %3558 = vmatprep.subr.bf16.mxu1 %v3557_v1  ;;  %v1703_v1 = vld [vmem:[#allocation9 + $0x6d0] sm:$0xff]  ;;  %v1828_v58 = vld [vmem:[#allocation9 + $0xab8] sm:$0xff] }
 0x2f0   : > { %3428 = vmatpush1.bf16.msra.mxu0 %v3427_v0  ;;  %v1797_v0 = vld [vmem:[#allocation9 + $0x9c0] sm:$0xff]  ;;  %v3579_v9 = vpack.c.bf16 %v1706_v2, %v1703_v1  ;;  %v3469_v1 = vpack.c.bf16 %v1831_v59, %v1828_v58  ;;  %v1830_v2 = vld [vmem:[#allocation9 + $0xac8] sm:$0xff] }
 0x2f1   : > { %3430 = vmatprep.subr.bf16.mxu0 %v3429_v5  ;;  %v1757_v5 = vld [vmem:[#allocation9 + $0x880] sm:$0xff]  ;;  %v3451_v10 = vpack.c.bf16 %v1800_v4, %v1797_v0  ;;  %v1784_v0 = vld [vmem:[#allocation9 + $0x958] sm:$0xff]  ;;  %v1838_v4 = vld [vmem:[#allocation9 + $0xb08] sm:$0xff] }
 0x2f2   : > { %3560 = vmatpush3.bf16.msra.mxu1 %v3559_v11  ;;  %v3581_v11 = vpack.c.bf16 %v1760_v6, %v1757_v5  ;;  %v1834_v5 = vld [vmem:[#allocation9 + $0xae8] sm:$0xff]  ;;  %v1837_v6 = vld [vmem:[#allocation9 + $0xb00] sm:$0xff] }
 0x2f3   : > { %3562 = vmatprep.subr.bf16.mxu1 %v3561_v35  ;;  %v1709_v35 = vld [vmem:[#allocation9 + $0x700] sm:$0xff] }
 0x2f4   : > { %3432 = vmatpush1.bf16.msra.mxu0 %v3431_v14  ;;  %v1803_v14 = vld [vmem:[#allocation9 + $0x9f0] sm:$0xff]  ;;  %v3583_v21 = vpack.c.bf16 %v1712_v12, %v1709_v35  ;;  %v3473_v35 = vpack.c.bf16 %v1837_v6, %v1834_v5  ;;  %v1836_v12 = vld [vmem:[#allocation9 + $0xaf8] sm:$0xff]  ;;  %v1857_v59 = vld [vmem:[#allocation9 + $0xba0] sm:$0xff] }
 0x2f5   : > { %3434 = vmatprep.subr.bf16.mxu0 %v3433_v43  ;;  %2305 = vmatmul.mubr.f32.vlgmr.msra.gmra.mrb[4].mxu1 %v4769_v15  ;;  %v1748_v15 = vld [vmem:[#allocation9 + $0x838] sm:$0xff]  ;;  %v1763_v43 = vld [vmem:[#allocation9 + $0x8b0] sm:$0xff]  ;;  %v3455_v22 = vpack.c.bf16 %v1806_v17, %v1803_v14  ;;  %v1790_v14 = vld [vmem:[#allocation9 + $0x988] sm:$0xff] }
 0x2f6   : > { %3564 = vmatpush3.bf16.msra.mxu1 %v3563_v24  ;;  %2374 = vmatprep.mubr.f32.mxu1 %v4774_v25  ;;  %v3573_v41 = vpack.c.bf16 %v1748_v15, %v1745_v49  ;;  %v1801_v25 = vld [vmem:[#allocation9 + $0x9e0] sm:$0xff]  ;;  %v3585_v24 = vpack.c.bf16 %v1766_v18, %v1763_v43  ;;  %v1822_v49 = vld [vmem:[#allocation9 + $0xa88] sm:$0xff]  ;;  %v1844_v17 = vld [vmem:[#allocation9 + $0xb38] sm:$0xff] }
 0x2f7   : > { %2093 = vmatmul.mubr.f32.vlgmr.msra.gmra.mrb[0].mxu0 %v4779_v23  ;;  %3566 = vmatprep.subr.bf16.mxu1 %v3565_v27  ;;  %v3449_v3 = vpack.c.bf16 %v1801_v25, %v1798_v60  ;;  %v1715_v27 = vld [vmem:[#allocation9 + $0x730] sm:$0xff]  ;;  %v1825_v15 = vld [vmem:[#allocation9 + $0xaa0] sm:$0xff]  ;;  %v1840_v43 = vld [vmem:[#allocation9 + $0xb18] sm:$0xff] }
 0x2f8   : > { %3436 = vmatpush1.bf16.msra.mxu0 %v3435_v26  ;;  %2163 = vmatprep.mubr.f32.mxu0 %v4783_v39  ;;  %v1809_v26 = vld [vmem:[#allocation9 + $0xa20] sm:$0xff]  ;;  %v3587_v36 = vpack.c.bf16 %v1718_v28, %v1715_v27  ;;  %v3465_v54 = vpack.c.bf16 %v1825_v15, %v1822_v49  ;;  %v1847_v27 = vld [vmem:[#allocation9 + $0xb50] sm:$0xff]  ;;  %v1850_v28 = vld [vmem:[#allocation9 + $0xb68] sm:$0xff] }
 0x2f9   : > { %3438 = vmatprep.subr.bf16.mxu0 %v3437_v31  ;;  %v1769_v31 = vld [vmem:[#allocation9 + $0x8e0] sm:$0xff]  ;;  %v3459_v37 = vpack.c.bf16 %v1812_v30, %v1809_v26  ;;  %v1842_v26 = vld [vmem:[#allocation9 + $0xb28] sm:$0xff]  ;;  %v3609_v33 = vpack.c.bf16 %v1850_v28, %v1847_v27  ;;  %v1851_v15 = vld [vmem:[#allocation9 + $0xb70] sm:$0xff] }
 0x2fa   : > { %3568 = vmatpush3.bf16.msra.mxu1 %v3567_v38  ;;  %v3589_v38 = vpack.c.bf16 %v1772_v32, %v1769_v31  ;;  %v1849_v30 = vld [vmem:[#allocation9 + $0xb60] sm:$0xff]  ;;  %v3479_v32 = vpack.c.bf16 %v1842_v26, %v1839_v20 }
 0x2fb   : > { %3570 = vmatprep.subr.bf16.mxu1 %v3569_v42  ;;  %v1721_v42 = vld [vmem:[#allocation9 + $0x760] sm:$0xff] }
 0x2fc   : > { %3440 = vmatpush1.bf16.msra.mxu0 %v3439_v40  ;;  %v1815_v40 = vld [vmem:[#allocation9 + $0xa50] sm:$0xff]  ;;  %v3591_v50 = vpack.c.bf16 %v1724_v44, %v1721_v42  ;;  %v1853_v42 = vld [vmem:[#allocation9 + $0xb80] sm:$0xff]  ;;  %v1856_v44 = vld [vmem:[#allocation9 + $0xb98] sm:$0xff] }
 0x2fd   : > { %3442 = vmatprep.subr.bf16.mxu0 %v3441_v47  ;;  %v1823_v47 = vld [vmem:[#allocation9 + $0xa90] sm:$0xff]  ;;  %v3463_v51 = vpack.c.bf16 %v1818_v46, %v1815_v40  ;;  %v1848_v40 = vld [vmem:[#allocation9 + $0xb58] sm:$0xff]  ;;  %v3613_v49 = vpack.c.bf16 %v1856_v44, %v1853_v42  ;;  %v1817_v6 = vld [vmem:[#allocation9 + $0xa60] sm:$0xff] }
 0x2fe   : > { %3572 = vmatpush3.bf16.msra.mxu1 %v3571_v52  ;;  %v3593_v52 = vpack.c.bf16 %v1826_v48, %v1823_v47  ;;  %v1855_v46 = vld [vmem:[#allocation9 + $0xb90] sm:$0xff]  ;;  %v3483_v48 = vpack.c.bf16 %v1848_v40, %v1845_v34  ;;  %v1869_v20 = vld [vmem:[#allocation11] sm:$0x7] }
 0x2ff   : > { %3574 = vmatprep.subr.bf16.mxu1 %v3573_v41  ;;  %v1775_v41 = vld [vmem:[#allocation9 + $0x910] sm:$0xff] }
 0x300   : > { %3444 = vmatpush1.bf16.msra.mxu0 %v3443_v53  ;;  %v1821_v53 = vld [vmem:[#allocation9 + $0xa80] sm:$0xff]  ;;  %v3595_v60 = vpack.c.bf16 %v1778_v13, %v1775_v41  ;;  %v1859_v41 = vld [vmem:[#allocation9 + $0xbb0] sm:$0xff]  ;;  %v1862_v13 = vld [vmem:[#allocation9 + $0xbc8] sm:$0xff] }
 0x301   : > { %3446 = vmatprep.subr.bf16.mxu0 %v3445_v56  ;;  %v1829_v56 = vld [vmem:[#allocation9 + $0xac0] sm:$0xff]  ;;  %v3467_v25 = vpack.c.bf16 %v1824_v55, %v1821_v53  ;;  %v1854_v53 = vld [vmem:[#allocation9 + $0xb88] sm:$0xff]  ;;  %v3617_v58 = vpack.c.bf16 %v1862_v13, %v1859_v41 }
 0x302   : > { %3576 = vmatpush3.bf16.msra.mxu1 %v3575_v61  ;;  %v3597_v61 = vpack.c.bf16 %v1832_v57, %v1829_v56  ;;  %v1861_v55 = vld [vmem:[#allocation9 + $0xbc0] sm:$0xff]  ;;  %v3487_v57 = vpack.c.bf16 %v1854_v53, %v1851_v15 }
 0x303   : > { %3578 = vmatprep.subr.bf16.mxu1 %v3577_v63  ;;  %v1781_v63 = vld [vmem:[#allocation9 + $0x940] sm:$0xff] }
 0x304   : > { %3448 = vmatpush1.bf16.msra.mxu0 %v3447_v62  ;;  %v1827_v62 = vld [vmem:[#allocation9 + $0xab0] sm:$0xff]  ;;  %v3599_v7 = vpack.c.bf16 %v1784_v0, %v1781_v63  ;;  %v1865_v63 = vld [vmem:[#allocation9 + $0xbe0] sm:$0xff]  ;;  %v1868_v0 = vld [vmem:[#allocation9 + $0xbf8] sm:$0xff] }
 0x305   : > { %3450 = vmatprep.subr.bf16.mxu0 %v3449_v3  ;;  %v1835_v3 = vld [vmem:[#allocation9 + $0xaf0] sm:$0xff]  ;;  %v3471_v8 = vpack.c.bf16 %v1830_v2, %v1827_v62  ;;  %v1860_v62 = vld [vmem:[#allocation9 + $0xbb8] sm:$0xff]  ;;  %v3621_v5 = vpack.c.bf16 %v1868_v0, %v1865_v63 }
 0x306   : > { %3580 = vmatpush3.bf16.msra.mxu1 %v3579_v9  ;;  %v3601_v9 = vpack.c.bf16 %v1838_v4, %v1835_v3  ;;  %v1867_v2 = vld [vmem:[#allocation9 + $0xbf0] sm:$0xff]  ;;  %v3491_v4 = vpack.c.bf16 %v1860_v62, %v1857_v59 }
 0x307   : > { %3582 = vmatprep.subr.bf16.mxu1 %v3581_v11  ;;  %v1787_v11 = vld [vmem:[#allocation9 + $0x970] sm:$0xff] }
 0x308   : > { %3452 = vmatpush1.bf16.msra.mxu0 %v3451_v10  ;;  %v1833_v10 = vld [vmem:[#allocation9 + $0xae0] sm:$0xff]  ;;  %v3603_v18 = vpack.c.bf16 %v1790_v14, %v1787_v11 }
 0x309   : > { %3454 = vmatprep.subr.bf16.mxu0 %v3453_v16  ;;  %v1841_v16 = vld [vmem:[#allocation9 + $0xb20] sm:$0xff]  ;;  %v3475_v19 = vpack.c.bf16 %v1836_v12, %v1833_v10  ;;  %v1866_v10 = vld [vmem:[#allocation9 + $0xbe8] sm:$0xff] }
 0x30a   : > { %3584 = vmatpush3.bf16.msra.mxu1 %v3583_v21  ;;  %v1793_v21 = vld [vmem:[#allocation9 + $0x9a0] sm:$0xff] }
 0x30b   : > { %3586 = vmatprep.subr.bf16.mxu1 %v3585_v24 }
 0x30c   : > { %3456 = vmatpush1.bf16.msra.mxu0 %v3455_v22  ;;  %v1796_v22 = vld [vmem:[#allocation9 + $0x9b8] sm:$0xff] }
 0x30d   : > { %3458 = vmatprep.subr.bf16.mxu0 %v3457_v29  ;;  %v1846_v29 = vld [vmem:[#allocation9 + $0xb48] sm:$0xff]  ;;  %v3607_v31 = vpack.c.bf16 %v1796_v22, %v1793_v21 }
 0x30e   : > { %3588 = vmatpush3.bf16.msra.mxu1 %v3587_v36  ;;  %v1799_v36 = vld [vmem:[#allocation9 + $0x9d0] sm:$0xff] }
 0x30f   : > { %3590 = vmatprep.subr.bf16.mxu1 %v3589_v38  ;;  %v3481_v38 = vpack.c.bf16 %v1849_v30, %v1846_v29 }
 0x310   : > { %3460 = vmatpush1.bf16.msra.mxu0 %v3459_v37  ;;  %v1802_v37 = vld [vmem:[#allocation9 + $0x9e8] sm:$0xff] }
 0x311   : > { %3462 = vmatprep.subr.bf16.mxu0 %v3461_v45  ;;  %v1852_v45 = vld [vmem:[#allocation9 + $0xb78] sm:$0xff]  ;;  %v3611_v47 = vpack.c.bf16 %v1802_v37, %v1799_v36 }
 0x312   : > { %3592 = vmatpush3.bf16.msra.mxu1 %v3591_v50  ;;  %v1805_v50 = vld [vmem:[#allocation9 + $0xa00] sm:$0xff] }
 0x313   : > { %3594 = vmatprep.subr.bf16.mxu1 %v3593_v52  ;;  %v3485_v52 = vpack.c.bf16 %v1855_v46, %v1852_v45 }
 0x314   : > { %3464 = vmatpush1.bf16.msra.mxu0 %v3463_v51  ;;  %v1808_v51 = vld [vmem:[#allocation9 + $0xa18] sm:$0xff] }
 0x315   : > { %3466 = vmatprep.subr.bf16.mxu0 %v3465_v54  ;;  %2375 = vmatmul.mubr.f32.vlgmr.msra.gmra.mrb[6].mxu1 %v4779_v23  ;;  %v1843_v23 = vld [vmem:[#allocation9 + $0xb30] sm:$0xff]  ;;  %v1858_v54 = vld [vmem:[#allocation9 + $0xba8] sm:$0xff]  ;;  %v3615_v56 = vpack.c.bf16 %v1808_v51, %v1805_v50 }
 0x316   : > { %3596 = vmatpush3.bf16.msra.mxu1 %v3595_v60  ;;  %2444 = vmatprep.mubr.f32.mxu1 %v4783_v39  ;;  %v3605_v39 = vpack.c.bf16 %v1844_v17, %v1841_v16  ;;  %v3477_v24 = vpack.c.bf16 %v1843_v23, %v1840_v43  ;;  %v1811_v60 = vld [vmem:[#allocation9 + $0xa30] sm:$0xff] }
 0x317   : > { %3598 = vmatprep.subr.bf16.mxu1 %v3597_v61  ;;  %v3489_v61 = vpack.c.bf16 %v1861_v55, %v1858_v54 }
 0x318   : > { %3468 = vmatpush1.bf16.msra.mxu0 %v3467_v25  ;;  %v1814_v25 = vld [vmem:[#allocation9 + $0xa48] sm:$0xff] }
 0x319   : > { %3470 = vmatprep.subr.bf16.mxu0 %v3469_v1  ;;  %v1864_v1 = vld [vmem:[#allocation9 + $0xbd8] sm:$0xff]  ;;  %v3619_v3 = vpack.c.bf16 %v1814_v25, %v1811_v60 }
 0x31a   : > { %3600 = vmatpush3.bf16.msra.mxu1 %v3599_v7  ;;  %v1820_v7 = vld [vmem:[#allocation9 + $0xa78] sm:$0xff] }
 0x31b   : > { %3602 = vmatprep.subr.bf16.mxu1 %v3601_v9  ;;  %v1863_v9 = vld [vmem:[#allocation9 + $0xbd0] sm:$0xff]  ;;  %v3623_v11 = vpack.c.bf16 %v1820_v7, %v1817_v6 }
 0x31c   : > { %3472 = vmatpush1.bf16.msra.mxu0 %v3471_v8  ;;  %v3493_v8 = vpack.c.bf16 %v1867_v2, %v1864_v1  ;;  %v3495_v14 = vpack.c.bf16 %v1866_v10, %v1863_v9 }
 0x31d   : > { %3474 = vmatprep.subr.bf16.mxu0 %v3473_v35  ;;  %v1483_v35 = vld [vmem:[#allocation2 + $0x30] sm:$0xff] }
 0x31e   : > { %3604 = vmatpush3.bf16.msra.mxu1 %v3603_v18  ;;  %v1871_v18 = vlaneseq }
 0x31f   : > { %3606 = vmatprep.subr.bf16.mxu1 %v3605_v39 }
 0x320   : > { %3476 = vmatpush1.bf16.msra.mxu0 %v3475_v19  ;;  %v1872_v19 = vshrl.u32 %v1871_v18, 7 }
 0x321   : > { %3478 = vmatprep.subr.bf16.mxu0 %v3477_v24 }
 0x322   : > { %3608 = vmatpush3.bf16.msra.mxu1 %v3607_v31  ;;  %v1881_v39 = vsub.s32 2, %v1872_v19  ;;  %v1877_v34 = vsub.s32 1, %v1872_v19 }
 0x323   : > { %3610 = vmatprep.subr.bf16.mxu1 %v3609_v33  ;;  %v1873_v33 = vsub.s32 0, %v1872_v19 }
 0x324   : > { %3480 = vmatpush1.bf16.msra.mxu0 %v3479_v32  ;;  %v1882_v21 = vrot.slane %v1869_v20, %v1881_v39  ;;  %v1878_v37 = vrot.slane %v1869_v20, %v1877_v34 }
 0x325   : > { %3482 = vmatprep.subr.bf16.mxu0 %v3481_v38  ;;  %v1874_v36 = vrot.slane %v1869_v20, %v1873_v33 }
 0x326   : > { %3612 = vmatpush3.bf16.msra.mxu1 %v3611_v47 }
 0x327   : > { %3614 = vmatprep.subr.bf16.mxu1 %v3613_v49 }
 0x328   : > { %3484 = vmatpush1.bf16.msra.mxu0 %v3483_v48 }
 0x329   : > { %3486 = vmatprep.subr.bf16.mxu0 %v3485_v52 }
 0x32a   : > { %3616 = vmatpush3.bf16.msra.mxu1 %v3615_v56 }
 0x32b   : > { %3618 = vmatprep.subr.bf16.mxu1 %v3617_v58 }
 0x32c   : > { %3488 = vmatpush1.bf16.msra.mxu0 %v3487_v57 }
 0x32d   : > { %3490 = vmatprep.subr.bf16.mxu0 %v3489_v61 }
 0x32e   : > { %3620 = vmatpush3.bf16.msra.mxu1 %v3619_v3 }
 0x32f   : > { %3622 = vmatprep.subr.bf16.mxu1 %v3621_v5 }
 0x330   : > { %3492 = vmatpush1.bf16.msra.mxu0 %v3491_v4 }
 0x331   : > { %3494 = vmatprep.subr.bf16.mxu0 %v3493_v8 }
 0x332   : > { %3624 = vmatpush3.bf16.msra.mxu1 %v3623_v11 }
 0x334   : > { %3496 = vmatpush1.bf16.msra.mxu0 %v3495_v14 }
 0x335   : > { %2445 = vmatmul.mubr.f32.vlgmr.msra.gmra.mrb[8].mxu1 %v1483_v35 }
 0x337   : > { %2164 = vmatmul.mubr.f32.vlgmr.msra.gmra.mrb[0].mxu0 %v1483_v35 }
 0x388   : > { %v1952_v12 = vpop.f32.mrb[0].mxu1 }
 0x389   : > { %v1954_v16 = vpop.f32.mrb[1].mxu1  ;;  %v1953_v38 = vadd.f32 %v1952_v12, %v1874_v36 }
 0x38a   : > { %v1955_v42 = vadd.f32 %v1954_v16, %v1878_v37 }
 0x3a8   : > { %v2621_v17 = vpop.f32.mrb[2].mxu1 }
 0x3a9   : > { %v2622_v43 = vpop.f32.mrb[3].mxu1 }
 0x3aa   : > { %v2623_v23 = vadd.f32 %v2622_v43, %v2621_v17 }
 0x3ac   : > { %v2237_v26 = vadd.f32 %v2623_v23, %v1882_v21 }
 0x3c8   : > { %v2656_v22 = vpop.f32.mrb[4].mxu1 }
 0x3c9   : > { %v2657_v24 = vpop.f32.mrb[5].mxu1 }
 0x3ca   : > { %v2658_v27 = vadd.f32 %v2657_v24, %v2656_v22 }
 0x3cc   : > { %v2307_v28 = vadd.f32 %v2658_v27, %v2237_v26 }
 0x3e8   : > { %v2691_v29 = vpop.f32.mrb[6].mxu1 }
 0x3e9   : > { %v2692_v30 = vpop.f32.mrb[7].mxu1 }
 0x3ea   : > { %v2693_v31 = vadd.f32 %v2692_v30, %v2691_v29 }
 0x3ec   : > { %v2377_v32 = vadd.f32 %v2693_v31, %v2307_v28 }
 0x408   : > { %v2726_v40 = vpop.f32.mrb[8].mxu1 }
 0x409   : > { %v2727_v45 = vpop.f32.mrb[9].mxu1 }
 0x40a   : > { %v2165_v44 = vpop.f32.mrb[0].mxu0  ;;  %v2728_v48 = vadd.f32 %v2727_v45, %v2726_v40 }
 0x40b   : > { %v3634_v46 = vadd.f32 %v2165_v44, %v1953_v38  ;;  %v2167_v47 = vpop.f32.mrb[1].mxu0 }
 0x40c   : > { %v3636_v49 = vadd.f32 %v2167_v47, %v1955_v42  ;;  %v2447_v15 = vadd.f32 %v2728_v48, %v2377_v32 }
 0x40d   : > { %2450 = vst [vmem:[#allocation12] sm:$0xff] %v3634_v46 }
 0x40e   : > { %2451 = vst [vmem:[#allocation12 + $0x8] sm:$0xff] %v3636_v49  ;;  %2452 = vst [vmem:[#allocation12 + $0x10] sm:$0xff] %v2447_v15 }
 0x40f PF: > { %p3685_p0 = scmp.eq.s32.totalorder %s4009_s22, 1  ;;  %s3959_s23 = smov [#allocation12]  }
 0x410   : > { %s2460_s24 = sshll.u32 %s3959_s23, 4  ;;  %s2461_s24 = int_to_ptr.vmem [resolvable:$true] %s2460_s24 }
 0x411   : > { %s3872_s6 = scalar_lea.vmem %s2461_s24, 384  ;;  %p3879_p10 = scmp.lt.s32.totalorder %s2461_s24, %s2461_s24 }
 0x412   : > { %p3873_p2 = scmp.ne.s32.totalorder %s2461_s24, %s3872_s6  ;;  %p3880_p9 = scmp.lt.s32.totalorder %s3872_s6, %s3872_s6 }
 0x414   : > { %p3874_p13 = pnand %p3873_p2, %p3685_p0  ;;  %p3881_p6 = por %p3880_p9, %p3879_p10 }
 0x416   : > { %p3875_p3 = pneg %p3874_p13 }
 0x418   : > { %p3882_p7 = pnand %p3881_p6, %p3875_p3 }
 0x41a   : > { %3885 = shalt.err (!%p3882_p7)
}
 0x41b   : > { %s3886_s7 = scalar_lea.hbm %s4830_s5, 384 }
 0x41c   : > { %p3887_p8 = scmp.ne.s32.totalorder %s4830_s5, %s3886_s7  ;;  %p3892_p4 = scmp.lt.u32.totalorder %s3886_s7, %s4830_s5 }
 0x41e   : > { %p3888_p11 = pnand %p3887_p8, %p3685_p0 }
 0x420   : > { %p3889_p1 = pneg %p3888_p11 }
 0x422   : > { %p3894_p5 = pnand %p3892_p4, %p3889_p1 }
 0x424   : > { %3897 = shalt.err (!%p3894_p5)
}
 0x425   : > { %3658 = dma.vmem_to_hbm [thread:$0]  (%p3685_p0), %s2461_s24, 384, %s4830_s5, [#allocation5]  }
 0x426   : > { %3931 = dma.done.wait (%p3685_p0), [#allocation5], 384  }
 0x427   : > { %3933 = vsyncadd (%p3685_p0), [#allocation5], 4294966912 }
 0x428 PF: > { %p20_p12 = scmp.ge.s32.totalorder %s4105_s12, 4   ;;  %s4846_s18 = smov %s3940_s19 }
 0x429   : > { %s4847_s19 = smov %s3944_s20  ;;  %s4848_s20 = smov %s4115_s29 }
 0x42a   : > { %s4849_s21 = smov %s4105_s12  ;;  %22 = sbr.rel (!%p20_p12) target bundleno = 7 (0x7), region = 110 }
 0x431   :  { %2473 = vsyncpa [#allocation4], 1 }
 0x432   :  { %2475 = vsyncpa [#allocation4 + $0x1], 1 }
 0x433   :  { %2476 = vsyncpa [#allocation7], 1 }
 0x434   :  { %2478 = vsyncpa [#allocation7 + $0x1], 1 }
 0x435   :  { %2479 = vsyncpa [#allocation10], 1 }
 0x436   :  { %2480 = vsyncpa [#allocation5], 1 }
 0x437   :  { %2482 = vsyncpa [#allocation5 + $0x1], 1 }

</bundles_post_ra>
